<compile_context>
chip_gen: v7x
topology: tpu7x:2x2x1
jax: 0.10.0
libtpu: 0.0.40
codegen_flags: <defaults>
</compile_context>

<pallas_src>
import functools

import jax
import jax.numpy as jnp
from jax.experimental import pallas as pl
from jax.experimental.pallas import tpu as pltpu


# ---------------------------------------------------------------------------
# Tiling helpers
# ---------------------------------------------------------------------------

def _round_up(x, m):
    return ((x + m - 1) // m) * m


def _choose_k_tiling(input_size):
    """128-grained K padding; tile_k = largest 128-multiple divisor (<=512)."""
    k_pad = _round_up(max(input_size, 1), 128)
    if k_pad <= 512:
        return k_pad, k_pad
    for cand in (512, 384, 256, 128):
        if k_pad % cand == 0:
            return k_pad, cand
    return k_pad, 128


def _choose_tile_b(batch):
    """Batch tile: large enough to amortize the W1 HBM stream, and >=2 tiles
    whenever possible so the 'parallel' batch axis shards across both v7x TCs."""
    if batch >= 2048:
        return 1024
    if batch >= 1024:
        return 512
    if batch <= 8:
        return _round_up(max(batch, 1), 8)      # single tiny tile
    # 8 < batch < 1024: split into exactly two tiles (megacore sharding).
    return _round_up((batch + 1) // 2, 8)


def _compute_vmem_limit(tile_b, tile_k, n1, n2, n3, n_out):
    """Right-size the scoped VMEM limit from actual block bytes (+ headroom)."""
    bf16, f32 = 2, 4
    dbl = 2  # default double-buffering on pipelined blocks
    b = 0
    b += dbl * tile_b * tile_k * bf16                       # x tile (streamed)
    b += dbl * tile_k * n1 * bf16                           # W1 K-tile (streamed)
    b += dbl * (n1 * n2 + n2 * n3 + n3 * n_out) * bf16      # resident weights
    b += dbl * (n1 + n2 + n3 + n_out) * f32                 # shift / bias rows
    b += dbl * tile_b * n_out * f32                         # out tile
    b += tile_b * n1 * f32                                  # layer-1 accumulator
    # fused-epilogue temporaries: f32 hidden activations + bf16 cast copies
    b += tile_b * (n1 + n2 + n3) * (f32 + bf16)
    b += 6 << 20                                            # compiler scratch / spills
    return int(min(max(b, 16 << 20), 56 << 20))


# ---------------------------------------------------------------------------
# Kernel
# ---------------------------------------------------------------------------

def _mlp_kernel(x_ref,
                w1_ref, t1_ref,
                w2_ref, t2_ref,
                w3_ref, t3_ref,
                w4_ref, b4_ref,
                out_ref, acc_ref):
    """Fused MLP: K-tiled (Linear1) accumulate, then BN+ReLU and layers 2-4."""
    k = pl.program_id(1)

    @pl.when(k == 0)
    def _init():
        acc_ref[...] = jnp.zeros_like(acc_ref)

    # Layer 1 partial product (bf16 x bf16 -> f32 accumulate on the MXU).
    acc_ref[...] += jnp.dot(x_ref[...], w1_ref[...],
                            preferred_element_type=jnp.float32)

    @pl.when(k == pl.num_programs(1) - 1)
    def _finish():
        # Layer 1 epilogue: folded-BN shift + ReLU (f32), Dropout == identity.
        h = jnp.maximum(acc_ref[...] + t1_ref[...], 0.0)

        # Layer 2: Linear(1024, 512) + BN + ReLU
        h = jnp.dot(h.astype(w2_ref.dtype), w2_ref[...],
                    preferred_element_type=jnp.float32)
        h = jnp.maximum(h + t2_ref[...], 0.0)

        # Layer 3: Linear(512, 256) + BN + ReLU
        h = jnp.dot(h.astype(w3_ref.dtype), w3_ref[...],
                    preferred_element_type=jnp.float32)
        h = jnp.maximum(h + t3_ref[...], 0.0)

        # Layer 4: Linear(256, num_classes_padded)  (lane-dense output slab)
        out_ref[...] = (jnp.dot(h.astype(w4_ref.dtype), w4_ref[...],
                                preferred_element_type=jnp.float32)
                        + b4_ref[...])


# ---------------------------------------------------------------------------
# Wrapper
# ---------------------------------------------------------------------------

@functools.partial(jax.jit, static_argnames=("num_classes",))
def sound_classifier_mark2_forward(x, params, *, num_classes):
    """x: (batch, ...) -> flattened to (batch, input_size). Returns logits."""
    (w1, t1, w2, t2, w3, t3, w4, b4) = params

    batch = x.shape[0]
    # Cast to bf16 BEFORE padding: halves the wrapper-side HBM traffic for the
    # (possibly large) flattened input slab.
    x2d = x.reshape(batch, -1).astype(jnp.bfloat16)
    k_in = x2d.shape[1]

    k_pad = w1.shape[0]                       # padded flattened input features
    n1, n2, n3 = w1.shape[1], w2.shape[1], w3.shape[1]
    n_out = w4.shape[1]                       # padded to multiple of 128

    _, tile_k = _choose_k_tiling(k_in)
    assert k_pad % tile_k == 0 and k_pad == _round_up(k_in, 128)

    tile_b = _choose_tile_b(batch)
    b_pad = _round_up(batch, tile_b)
    num_b_tiles = b_pad // tile_b

    x_p = jnp.pad(x2d, ((0, b_pad - batch), (0, k_pad - k_in)))

    grid = (num_b_tiles, k_pad // tile_k)

    flops = 2 * b_pad * (k_pad * n1 + n1 * n2 + n2 * n3 + n3 * n_out)
    bytes_accessed = (b_pad * k_pad * 2                       # x slab (read once)
                      + num_b_tiles * k_pad * n1 * 2          # W1 re-streamed per batch tile
                      + (n1 * n2 + n2 * n3 + n3 * n_out) * 2  # resident weights
                      + (n1 + n2 + n3 + n_out) * 4            # shifts / bias
                      + b_pad * n_out * 4)                    # output slab

    grid_spec = pltpu.PrefetchScalarGridSpec(
        num_scalar_prefetch=0,
        grid=grid,
        in_specs=[
            pl.BlockSpec((tile_b, tile_k), lambda b, k: (b, k)),   # x tile
            pl.BlockSpec((tile_k, n1), lambda b, k: (k, 0)),       # W1 K-tile
            pl.BlockSpec((1, n1), lambda b, k: (0, 0)),            # t1 (resident)
            pl.BlockSpec((n1, n2), lambda b, k: (0, 0)),           # W2 (resident)
            pl.BlockSpec((1, n2), lambda b, k: (0, 0)),            # t2
            pl.BlockSpec((n2, n3), lambda b, k: (0, 0)),           # W3 (resident)
            pl.BlockSpec((1, n3), lambda b, k: (0, 0)),            # t3
            pl.BlockSpec((n3, n_out), lambda b, k: (0, 0)),        # W4 (resident)
            pl.BlockSpec((1, n_out), lambda b, k: (0, 0)),         # b4
        ],
        out_specs=pl.BlockSpec((tile_b, n_out), lambda b, k: (b, 0)),
        scratch_shapes=[pltpu.VMEM((tile_b, n1), jnp.float32)],
    )

    out = pl.pallas_call(
        _mlp_kernel,
        out_shape=jax.ShapeDtypeStruct((b_pad, n_out), jnp.float32),
        grid_spec=grid_spec,
        compiler_params=pltpu.CompilerParams(
            dimension_semantics=("parallel", "arbitrary"),
            vmem_limit_bytes=_compute_vmem_limit(tile_b, tile_k, n1, n2, n3, n_out),
        ),
        cost_estimate=pl.CostEstimate(
            flops=flops, transcendentals=0, bytes_accessed=bytes_accessed),
    )(x_p, w1, t1, w2, t2, w3, t3, w4, b4)

    return out[:batch, :num_classes]


# ---------------------------------------------------------------------------
# Parameters
# ---------------------------------------------------------------------------

def init_params(key, input_size, num_classes):
    """Raw PyTorch-style params: 3 x (W, b, gamma, beta, run_mean, run_var) + (W4, b4).

    Linear weights are stored transposed as (in_features, out_features).
    """
    dims = [input_size, 1024, 512, 256, num_classes]
    keys = jax.random.split(key, 14)
    ki = iter(range(14))

    def linear(fan_in, fan_out):
        bound = 1.0 / float(fan_in) ** 0.5
        w = jax.random.uniform(keys[next(ki)], (fan_in, fan_out),
                               jnp.float32, -bound, bound)
        b = jax.random.uniform(keys[next(ki)], (fan_out,),
                               jnp.float32, -bound, bound)
        return w, b

    def bn(n):
        gamma = 1.0 + 0.05 * jax.random.normal(keys[next(ki)], (n,), jnp.float32)
        beta = 0.05 * jax.random.normal(keys[next(ki)], (n,), jnp.float32)
        return gamma, beta, jnp.zeros((n,), jnp.float32), jnp.ones((n,), jnp.float32)

    raw = []
    for li in range(3):
        w, b = linear(dims[li], dims[li + 1])
        raw += [w, b, *bn(dims[li + 1])]
    raw += list(linear(dims[3], dims[4]))
    return tuple(raw)


def prepare_params(raw_params, input_size, num_classes, eps=1e-5):
    """Fold BN into the Linear weights, pad, and cast matmul operands to bf16."""
    (w1, b1, g1, be1, rm1, rv1,
     w2, b2, g2, be2, rm2, rv2,
     w3, b3, g3, be3, rm3, rv3,
     w4, b4) = raw_params

    def fold(w, b, g, be, rm, rv):
        s = g / jnp.sqrt(rv + eps)            # (out,)
        w_f = w * s[None, :]                  # fold BN scale into weights
        t = (b - rm) * s + be                 # per-feature shift
        return w_f, t.reshape(1, -1).astype(jnp.float32)

    w1f, t1 = fold(w1, b1, g1, be1, rm1, rv1)
    w2f, t2 = fold(w2, b2, g2, be2, rm2, rv2)
    w3f, t3 = fold(w3, b3, g3, be3, rm3, rv3)

    # Pad layer-1 rows (flattened input features) to the 128-grained K pad.
    k_pad, _ = _choose_k_tiling(input_size)
    w1f = jnp.pad(w1f, ((0, k_pad - input_size), (0, 0)))

    # Pad output features to a lane-dense multiple of 128 (128 is enough;
    # layer 4 is ~2% of FLOPs so we don't pad further).
    c_pad = _round_up(max(num_classes, 1), 128)
    w4p = jnp.pad(w4, ((0, 0), (0, c_pad - num_classes)))
    b4p = jnp.pad(b4.reshape(1, -1), ((0, 0), (0, c_pad - num_classes)))

    return (w1f.astype(jnp.bfloat16), t1,
            w2f.astype(jnp.bfloat16), t2,
            w3f.astype(jnp.bfloat16), t3,
            w4p.astype(jnp.bfloat16), b4p.astype(jnp.float32))


# ---------------------------------------------------------------------------
# Reference (mirrors the kernel's bf16-in / f32-accumulate quantization)
# ---------------------------------------------------------------------------

def _reference_forward(x, params, num_classes):
    (w1, t1, w2, t2, w3, t3, w4, b4) = params
    h = x.reshape(x.shape[0], -1).astype(jnp.float32)
    h = jnp.pad(h, ((0, 0), (0, w1.shape[0] - h.shape[1])))
    h = jnp.dot(h.astype(jnp.bfloat16), w1, preferred_element_type=jnp.float32)
    h = jnp.maximum(h + t1, 0.0)
    h = jnp.dot(h.astype(jnp.bfloat16), w2, preferred_element_type=jnp.float32)
    h = jnp.maximum(h + t2, 0.0)
    h = jnp.dot(h.astype(jnp.bfloat16), w3, preferred_element_type=jnp.float32)
    h = jnp.maximum(h + t3, 0.0)
    out = jnp.dot(h.astype(jnp.bfloat16), w4, preferred_element_type=jnp.float32) + b4
    return out[:, :num_classes]


if __name__ == "__main__":
    key = jax.random.PRNGKey(0)
    k_x, k_p = jax.random.split(key)

    # Small synthetic input: batch=16 (exercises the 2-batch-tile megacore
    # path: tile_b=8), flattened input_size = 4*16*16 = 1024 (exercises two
    # layer-1 K tiles of 512), num_classes = 16.
    batch, c, h, w = 16, 4, 16, 16
    input_size = c * h * w
    num_classes = 16

    x = jax.random.normal(k_x, (batch, c, h, w), jnp.float32)
    raw = init_params(k_p, input_size, num_classes)
    params = prepare_params(raw, input_size, num_classes)

    out = sound_classifier_mark2_forward(x, params, num_classes=num_classes)
    out = jax.block_until_ready(out)

    ref = _reference_forward(x, params, num_classes)
    assert out.shape == (batch, num_classes)
    assert jnp.allclose(out, ref, atol=1e-2, rtol=1e-2), \
        float(jnp.max(jnp.abs(out - ref)))

    print("KERNEL_OK")
</pallas_src>

<mosaic_0001>
module attributes {stable_mosaic.version = 11 : i64} {
  func.func @_mlp_kernel(%arg0: i32, %arg1: i32, %arg2: memref<8x512xbf16, #tpu.memory_space<vmem>>, %arg3: memref<512x1024xbf16, #tpu.memory_space<vmem>>, %arg4: memref<1x1024xf32, #tpu.memory_space<vmem>>, %arg5: memref<1024x512xbf16, #tpu.memory_space<vmem>>, %arg6: memref<1x512xf32, #tpu.memory_space<vmem>>, %arg7: memref<512x256xbf16, #tpu.memory_space<vmem>>, %arg8: memref<1x256xf32, #tpu.memory_space<vmem>>, %arg9: memref<256x128xbf16, #tpu.memory_space<vmem>>, %arg10: memref<1x128xf32, #tpu.memory_space<vmem>>, %arg11: memref<8x128xf32, #tpu.memory_space<vmem>>, %arg12: memref<8x1024xf32, #tpu.memory_space<vmem>>) attributes {dimension_semantics = [#tpu.dimension_semantics<parallel>, #tpu.dimension_semantics<arbitrary>], iteration_bounds = array<i64: 2, 2>, scalar_prefetch = 0 : i64, scratch_operands = 1 : i64, tpu.core_type = #tpu.core_type<tc>, window_params = [{transform_indices = @transform_0, window_bounds = array<i64: 8, 512>}, {transform_indices = @transform_1, window_bounds = array<i64: 512, 1024>}, {pipeline_mode = #tpu.pipeline_mode<synchronous>, transform_indices = @transform_2, window_bounds = array<i64: 1, 1024>}, {pipeline_mode = #tpu.pipeline_mode<synchronous>, transform_indices = @transform_3, window_bounds = array<i64: 1024, 512>}, {pipeline_mode = #tpu.pipeline_mode<synchronous>, transform_indices = @transform_4, window_bounds = array<i64: 1, 512>}, {pipeline_mode = #tpu.pipeline_mode<synchronous>, transform_indices = @transform_5, window_bounds = array<i64: 512, 256>}, {pipeline_mode = #tpu.pipeline_mode<synchronous>, transform_indices = @transform_6, window_bounds = array<i64: 1, 256>}, {pipeline_mode = #tpu.pipeline_mode<synchronous>, transform_indices = @transform_7, window_bounds = array<i64: 256, 128>}, {pipeline_mode = #tpu.pipeline_mode<synchronous>, transform_indices = @transform_8, window_bounds = array<i64: 1, 128>}, {transform_indices = @transform_9, window_bounds = array<i64: 8, 128>}]} {
    %c0_i32 = arith.constant 0 : i32
    %0 = arith.cmpi eq, %arg1, %c0_i32 : i32
    %1 = arith.extui %0 : i1 to i32
    %c0_i32_0 = arith.constant 0 : i32
    %2 = arith.cmpi ne, %1, %c0_i32_0 : i32
    scf.if %2 {
      %cst_9 = arith.constant 0.000000e+00 : f32
      %12 = vector.broadcast %cst_9 : f32 to vector<8x1024xf32>
      %c0_10 = arith.constant 0 : index
      %c0_11 = arith.constant 0 : index
      %13 = vector.load %arg12[%c0_10, %c0_11] : memref<8x1024xf32, #tpu.memory_space<vmem>>, vector<8x1024xf32>
      tpu.vector_store %arg12[%c0_10, %c0_11], %12 {strides = array<i32>} : memref<8x1024xf32, #tpu.memory_space<vmem>>, vector<8x1024xf32>,
    } else {
    }
    %c0 = arith.constant 0 : index
    %c0_1 = arith.constant 0 : index
    %3 = vector.load %arg12[%c0, %c0_1] : memref<8x1024xf32, #tpu.memory_space<vmem>>, vector<8x1024xf32>
    %c0_2 = arith.constant 0 : index
    %c0_3 = arith.constant 0 : index
    %4 = vector.load %arg2[%c0_2, %c0_3] : memref<8x512xbf16, #tpu.memory_space<vmem>>, vector<8x512xbf16>
    %c0_4 = arith.constant 0 : index
    %c0_5 = arith.constant 0 : index
    %5 = vector.load %arg3[%c0_4, %c0_5] : memref<512x1024xbf16, #tpu.memory_space<vmem>>, vector<512x1024xbf16>
    %cst = arith.constant dense<0.000000e+00> : vector<8x1024xf32>
    %6 = tpu.matmul %4, %5, %cst {dimension_numbers = #tpu.dot_dimension_numbers<[1], [0], [0], [1], [0, 0, 1, 1], [], []>} : vector<8x512xbf16>, vector<512x1024xbf16>, vector<8x1024xf32> -> vector<8x1024xf32>
    %7 = arith.addf %3, %6 : vector<8x1024xf32>
    %c0_6 = arith.constant 0 : index
    %c0_7 = arith.constant 0 : index
    %8 = vector.load %arg12[%c0_6, %c0_7] : memref<8x1024xf32, #tpu.memory_space<vmem>>, vector<8x1024xf32>
    tpu.vector_store %arg12[%c0_6, %c0_7], %7 {strides = array<i32>} : memref<8x1024xf32, #tpu.memory_space<vmem>>, vector<8x1024xf32>,
    %c1_i32 = arith.constant 1 : i32
    %9 = arith.cmpi eq, %arg1, %c1_i32 : i32
    %10 = arith.extui %9 : i1 to i32
    %c0_i32_8 = arith.constant 0 : i32
    %11 = arith.cmpi ne, %10, %c0_i32_8 : i32
    scf.if %11 {
      %c0_9 = arith.constant 0 : index
      %c0_10 = arith.constant 0 : index
      %12 = vector.load %arg12[%c0_9, %c0_10] : memref<8x1024xf32, #tpu.memory_space<vmem>>, vector<8x1024xf32>
      %c0_11 = arith.constant 0 : index
      %c0_12 = arith.constant 0 : index
      %13 = vector.load %arg4[%c0_11, %c0_12] : memref<1x1024xf32, #tpu.memory_space<vmem>>, vector<1x1024xf32>
      %14 = vector.broadcast %13 : vector<1x1024xf32> to vector<8x1024xf32>
      %15 = arith.addf %12, %14 : vector<8x1024xf32>
      %cst_13 = arith.constant 0.000000e+00 : f32
      %16 = vector.broadcast %cst_13 : f32 to vector<8x1024xf32>
      %17 = arith.maximumf %15, %16 : vector<8x1024xf32>
      %18 = arith.truncf %17 : vector<8x1024xf32> to vector<8x1024xbf16>
      %c0_14 = arith.constant 0 : index
      %c0_15 = arith.constant 0 : index
      %19 = vector.load %arg5[%c0_14, %c0_15] : memref<1024x512xbf16, #tpu.memory_space<vmem>>, vector<1024x512xbf16>
      %cst_16 = arith.constant dense<0.000000e+00> : vector<8x512xf32>
      %20 = tpu.matmul %18, %19, %cst_16 {dimension_numbers = #tpu.dot_dimension_numbers<[1], [0], [0], [1], [0, 0, 1, 1], [], []>} : vector<8x1024xbf16>, vector<1024x512xbf16>, vector<8x512xf32> -> vector<8x512xf32>
      %c0_17 = arith.constant 0 : index
      %c0_18 = arith.constant 0 : index
      %21 = vector.load %arg6[%c0_17, %c0_18] : memref<1x512xf32, #tpu.memory_space<vmem>>, vector<1x512xf32>
      %22 = vector.broadcast %21 : vector<1x512xf32> to vector<8x512xf32>
      %23 = arith.addf %20, %22 : vector<8x512xf32>
      %cst_19 = arith.constant 0.000000e+00 : f32
      %24 = vector.broadcast %cst_19 : f32 to vector<8x512xf32>
      %25 = arith.maximumf %23, %24 : vector<8x512xf32>
      %26 = arith.truncf %25 : vector<8x512xf32> to vector<8x512xbf16>
      %c0_20 = arith.constant 0 : index
      %c0_21 = arith.constant 0 : index
      %27 = vector.load %arg7[%c0_20, %c0_21] : memref<512x256xbf16, #tpu.memory_space<vmem>>, vector<512x256xbf16>
      %cst_22 = arith.constant dense<0.000000e+00> : vector<8x256xf32>
      %28 = tpu.matmul %26, %27, %cst_22 {dimension_numbers = #tpu.dot_dimension_numbers<[1], [0], [0], [1], [0, 0, 1, 1], [], []>} : vector<8x512xbf16>, vector<512x256xbf16>, vector<8x256xf32> -> vector<8x256xf32>
      %c0_23 = arith.constant 0 : index
      %c0_24 = arith.constant 0 : index
      %29 = vector.load %arg8[%c0_23, %c0_24] : memref<1x256xf32, #tpu.memory_space<vmem>>, vector<1x256xf32>
      %30 = vector.broadcast %29 : vector<1x256xf32> to vector<8x256xf32>
      %31 = arith.addf %28, %30 : vector<8x256xf32>
      %cst_25 = arith.constant 0.000000e+00 : f32
      %32 = vector.broadcast %cst_25 : f32 to vector<8x256xf32>
      %33 = arith.maximumf %31, %32 : vector<8x256xf32>
      %34 = arith.truncf %33 : vector<8x256xf32> to vector<8x256xbf16>
      %c0_26 = arith.constant 0 : index
      %c0_27 = arith.constant 0 : index
      %35 = vector.load %arg9[%c0_26, %c0_27] : memref<256x128xbf16, #tpu.memory_space<vmem>>, vector<256x128xbf16>
      %cst_28 = arith.constant dense<0.000000e+00> : vector<8x128xf32>
      %36 = tpu.matmul %34, %35, %cst_28 {dimension_numbers = #tpu.dot_dimension_numbers<[1], [0], [0], [1], [0, 0, 1, 1], [], []>} : vector<8x256xbf16>, vector<256x128xbf16>, vector<8x128xf32> -> vector<8x128xf32>
      %c0_29 = arith.constant 0 : index
      %c0_30 = arith.constant 0 : index
      %37 = vector.load %arg10[%c0_29, %c0_30] : memref<1x128xf32, #tpu.memory_space<vmem>>, vector<1x128xf32>
      %38 = vector.broadcast %37 : vector<1x128xf32> to vector<8x128xf32>
      %39 = arith.addf %36, %38 : vector<8x128xf32>
      %c0_31 = arith.constant 0 : index
      %c0_32 = arith.constant 0 : index
      %40 = vector.load %arg11[%c0_31, %c0_32] : memref<8x128xf32, #tpu.memory_space<vmem>>, vector<8x128xf32>
      tpu.vector_store %arg11[%c0_31, %c0_32], %39 {strides = array<i32>} : memref<8x128xf32, #tpu.memory_space<vmem>>, vector<8x128xf32>,
    } else {
    }
    return
  }
  func.func @transform_0(%arg0: i32, %arg1: i32) -> (i32, i32) {
    %c0_i32 = arith.constant 0 : i32
    return %arg0, %arg1 : i32, i32
  }
  func.func @transform_1(%arg0: i32, %arg1: i32) -> (i32, i32) {
    %c0_i32 = arith.constant 0 : i32
    %c0_i32_0 = arith.constant 0 : i32
    return %arg1, %c0_i32 : i32, i32
  }
  func.func @transform_2(%arg0: i32, %arg1: i32) -> (i32, i32) {
    %c0_i32 = arith.constant 0 : i32
    %c0_i32_0 = arith.constant 0 : i32
    %c0_i32_1 = arith.constant 0 : i32
    return %c0_i32, %c0_i32_0 : i32, i32
  }
  func.func @transform_3(%arg0: i32, %arg1: i32) -> (i32, i32) {
    %c0_i32 = arith.constant 0 : i32
    %c0_i32_0 = arith.constant 0 : i32
    %c0_i32_1 = arith.constant 0 : i32
    return %c0_i32, %c0_i32_0 : i32, i32
  }
  func.func @transform_4(%arg0: i32, %arg1: i32) -> (i32, i32) {
    %c0_i32 = arith.constant 0 : i32
    %c0_i32_0 = arith.constant 0 : i32
    %c0_i32_1 = arith.constant 0 : i32
    return %c0_i32, %c0_i32_0 : i32, i32
  }
  func.func @transform_5(%arg0: i32, %arg1: i32) -> (i32, i32) {
    %c0_i32 = arith.constant 0 : i32
    %c0_i32_0 = arith.constant 0 : i32
    %c0_i32_1 = arith.constant 0 : i32
    return %c0_i32, %c0_i32_0 : i32, i32
  }
  func.func @transform_6(%arg0: i32, %arg1: i32) -> (i32, i32) {
    %c0_i32 = arith.constant 0 : i32
    %c0_i32_0 = arith.constant 0 : i32
    %c0_i32_1 = arith.constant 0 : i32
    return %c0_i32, %c0_i32_0 : i32, i32
  }
  func.func @transform_7(%arg0: i32, %arg1: i32) -> (i32, i32) {
    %c0_i32 = arith.constant 0 : i32
    %c0_i32_0 = arith.constant 0 : i32
    %c0_i32_1 = arith.constant 0 : i32
    return %c0_i32, %c0_i32_0 : i32, i32
  }
  func.func @transform_8(%arg0: i32, %arg1: i32) -> (i32, i32) {
    %c0_i32 = arith.constant 0 : i32
    %c0_i32_0 = arith.constant 0 : i32
    %c0_i32_1 = arith.constant 0 : i32
    return %c0_i32, %c0_i32_0 : i32, i32
  }
  func.func @transform_9(%arg0: i32, %arg1: i32) -> (i32, i32) {
    %c0_i32 = arith.constant 0 : i32
    %c0_i32_0 = arith.constant 0 : i32
    return %arg0, %c0_i32 : i32, i32
  }
}

</mosaic_0001>

<bundles_post_ra>
// kernel: sound_classifier_mark2_forward.1
= control target key start
LH: loop header
LB: loop body
LE: loop exit
PB: predicated region body
PF: predicated region fallthrough
CT: control target
= control target key end

     0   :  { %s7822_s0 = inlined_call_operand.vmem [shape: bf16[16,1024], index: 0, kind: input, shape index: {}]   ;;  %s7823_s1 = inlined_call_operand.hbm [shape: bf16[1024,1024], index: 1, kind: input, shape index: {}]   ;;  %s7824_s2 = inlined_call_operand.hbm [shape: f32[1,1024], index: 2, kind: input, shape index: {}]   ;;  %s7825_s3 = inlined_call_operand.hbm [shape: bf16[1024,512], index: 3, kind: input, shape index: {}]   ;;  %s7826_s4 = inlined_call_operand.hbm [shape: f32[1,512], index: 4, kind: input, shape index: {}]   ;;  %s7827_s5 = inlined_call_operand.hbm [shape: bf16[512,256], index: 5, kind: input, shape index: {}]   ;;  %s7828_s6 = inlined_call_operand.hbm [shape: f32[1,256], index: 6, kind: input, shape index: {}]   ;;  %s7829_s7 = inlined_call_operand.hbm [shape: bf16[256,128], index: 7, kind: input, shape index: {}]   ;;  %s7830_s8 = inlined_call_operand.hbm [shape: f32[1,128], index: 8, kind: input, shape index: {}]   ;;  %s7831_s9 = inlined_call_operand.hbm [shape: f32[16,128], index: 9, kind: output, shape index: {}]  }
   0x1   :  { %7842 = sst [smem:[#allocation27_spill]] %s7822_s0 }
   0x2   :  { %7843 = sst [smem:[#allocation28_spill]] %s7823_s1 }
   0x3   :  { %7844 = sst [smem:[#allocation29_spill]] %s7824_s2 }
   0x4   :  { %7845 = sst [smem:[#allocation30_spill]] %s7825_s3 }
   0x5   :  { %7846 = sst [smem:[#allocation31_spill]] %s7826_s4 }
   0x6   :  { %7847 = sst [smem:[#allocation32_spill]] %s7827_s5 }
   0x7   :  { %7848 = sst [smem:[#allocation33_spill]] %s7828_s6 }
   0x8   :  { %7849 = sst [smem:[#allocation34_spill]] %s7829_s7 }
   0x9   :  { %7850 = sst [smem:[#allocation35_spill]] %s7830_s8 }
   0xa   :  { %7851 = sst [smem:[#allocation36_spill]] %s7831_s9 }
   0xb   :  { %14 = vsyncpa [#allocation4], 0 }
   0xc   :  { %16 = vsyncpa [#allocation4 + $0x1], 0 }
   0xd   :  { %17 = vsyncpa [#allocation7], 0 }
   0xe   :  { %18 = vsyncpa [#allocation10], 0 }
   0xf   :  { %19 = vsyncpa [#allocation13], 0 }
  0x10   :  { %20 = vsyncpa [#allocation16], 0 }
  0x11   :  { %21 = vsyncpa [#allocation5], 0 }
  0x12   :  { %23 = vsyncpa [#allocation5 + $0x1], 0  ;;  %s7025_s30 = smov 0   ;;  %s7027_s10 = smov 0  }
  0x13   :  { %s7029_s11 = smov 0   ;;  %s7031_s12 = smov 0  }
  0x14   :  { %s7033_s13 = smov 0   ;;  %s7035_s14 = smov 0  }
  0x15   :  { %s7037_s15 = smov 0   ;;  %s7039_s16 = smov 0  }
  0x16   :  { %s7041_s17 = smov 0   ;;  %s7043_s18 = smov 0  }
  0x17   :  { %s7045_s19 = smov 0  }
  0x18 LB: > { %7852 = sst [smem:[#allocation24_spill]] %s6939_s15  ;;  %s7832_s20 = sadd.s32 4294967295, %s6955_s19   ;;  %s6955_s19 = sphi %s7045_s19, %s29_s19   ;;  %s6951_s18 = sphi %s7043_s18, %s7895_s18   ;;  %s6947_s17 = sphi %s7041_s17, %s7894_s17   ;;  %s6943_s16 = sphi %s7039_s16, %s7893_s16   ;;  %s6939_s15 = sphi %s7037_s15, %s7892_s15   ;;  %s6935_s14 = sphi %s7035_s14, %s7891_s14   ;;  %s6931_s13 = sphi %s7033_s13, %s7890_s13   ;;  %s6927_s12 = sphi %s7031_s12, %s7889_s12   ;;  %s6923_s11 = sphi %s7029_s11, %s7888_s11   ;;  %s6919_s10 = sphi %s7027_s10, %s7887_s10   ;;  %s6915_s30 = sphi %s7025_s30, %s7886_s30  }
  0x19   : > { %7853 = sst [smem:[#allocation25_spill]] %s6943_s16  ;;  %p5224_p0 = scmp.ge.s32.totalorder %s6955_s19, 1 }
  0x1a   : > { %p7084_p1 = scmp.eq.s32.totalorder %s7832_s20, 0  ;;  %p273_p2 = scmp.lt.s32.totalorder %s6955_s19, 5 }
  0x1b   : > { %s6957_s23 = smov [#allocation6]   ;;  %s6958_s25 = smov [#allocation9]  }
  0x1c   : > { %s7854_s21 = scalar_select %p7084_p1, 1, 0 }
  0x1d   : > { %p7089_p3 = pnand %p5224_p0, %p273_p2  ;;  %s286_s24 = sshll.u32 %s6957_s23, 4  ;;  %s287_s24 = int_to_ptr.vmem [resolvable:$true] %s286_s24 }
  0x1e   : > { %s310_s26 = sshll.u32 %s6958_s25, 4  ;;  %s6959_s28 = smov [#allocation12]   ;;  %s7101_s26 = int_to_ptr.vmem [resolvable:$true] %s310_s26 }
  0x1f   : > { %s7855_s22 = scalar_select %p7089_p3, 1, 0 }
  0x20   : > { %p5941_p4 = pneg %p7089_p3  ;;  %s334_s29 = sshll.u32 %s6959_s28, 4  ;;  %s7103_s29 = int_to_ptr.vmem [resolvable:$true] %s334_s29 }
  0x21   : > { %7856 = sst [smem:[#allocation26_spill]] %s7855_s22  ;;  %s7858_s2 = sld [smem:[#allocation29_spill]] }
  0x22   : > { %p7097_p5 = pnand %p5941_p4, %p7084_p1 }
  0x24   : > { %p7113_p7 = pneg %p7097_p5 }
  0x27   : > { %s6591_s23 = scalar_lea.hbm %s7858_s2, 128 }
  0x28   : > { %p6592_p6 = scmp.ne.s32.totalorder %s7858_s2, %s6591_s23  ;;  %p6598_p10 = scmp.lt.u32.totalorder %s6591_s23, %s7858_s2 }
  0x2a   : > { %p6594_p8 = pnand %p7113_p7, %p6592_p6 }
  0x2c   : > { %p6595_p9 = pneg %p6594_p8 }
  0x2e   : > { %p6600_p11 = pnand %p6598_p10, %p6595_p9 }
  0x30   : > { %6603 = shalt.err (!%p6600_p11)
}
  0x31   : > { %s6604_s9 = scalar_lea.vmem %s287_s24, 128  ;;  %p6612_p2 = scmp.lt.s32.totalorder %s287_s24, %s287_s24 }
  0x32   : > { %p6605_p12 = scmp.ne.s32.totalorder %s287_s24, %s6604_s9  ;;  %p6613_p4 = scmp.lt.s32.totalorder %s6604_s9, %s6604_s9 }
  0x34   : > { %p6607_p13 = pnand %p6605_p12, %p7113_p7  ;;  %p6614_p3 = por %p6613_p4, %p6612_p2 }
  0x36   : > { %p6608_p0 = pneg %p6607_p13 }
  0x38   : > { %p6615_p1 = pnand %p6614_p3, %p6608_p0 }
  0x3a   : > { %6618 = shalt.err (!%p6615_p1)
}
  0x3b   : > { %5944 = dma.hbm_to_vmem [thread:$0]  (!%p7097_p5), %s7858_s2, 128, %s287_s24, [#allocation7]  }
  0x3c   : > { %s7860_s4 = sld [smem:[#allocation31_spill]] }
  0x42   : > { %s6619_s23 = scalar_lea.hbm %s7860_s4, 64 }
  0x43   : > { %p6620_p6 = scmp.ne.s32.totalorder %s7860_s4, %s6619_s23  ;;  %p6626_p1 = scmp.lt.u32.totalorder %s6619_s23, %s7860_s4 }
  0x45   : > { %p6622_p8 = pnand %p6620_p6, %p7113_p7 }
  0x47   : > { %p6623_p9 = pneg %p6622_p8 }
  0x49   : > { %p6628_p3 = pnand %p6626_p1, %p6623_p9 }
  0x4b   : > { %6631 = shalt.err (!%p6628_p3)
}
  0x4c   : > { %s6632_s24 = scalar_lea.vmem %s7101_s26, 64  ;;  %p6640_p13 = scmp.lt.s32.totalorder %s7101_s26, %s7101_s26 }
  0x4d   : > { %p6633_p10 = scmp.ne.s32.totalorder %s7101_s26, %s6632_s24  ;;  %p6641_p0 = scmp.lt.s32.totalorder %s6632_s24, %s6632_s24 }
  0x4f   : > { %p6635_p11 = pnand %p6633_p10, %p7113_p7  ;;  %p6642_p2 = por %p6641_p0, %p6640_p13 }
  0x51   : > { %p6636_p12 = pneg %p6635_p11 }
  0x53   : > { %p6643_p4 = pnand %p6642_p2, %p6636_p12 }
  0x55   : > { %6646 = shalt.err (!%p6643_p4)
}
  0x56   : > { %5950 = dma.hbm_to_vmem [thread:$0]  (!%p7097_p5), %s7860_s4, 64, %s7101_s26, [#allocation10]  }
  0x57   : > { %s7861_s6 = sld [smem:[#allocation33_spill]] }
  0x5d   : > { %s6647_s15 = scalar_lea.hbm %s7861_s6, 32 }
  0x5e   : > { %p6648_p6 = scmp.ne.s32.totalorder %s7861_s6, %s6647_s15  ;;  %p6654_p1 = scmp.lt.u32.totalorder %s6647_s15, %s7861_s6 }
  0x60   : > { %p6650_p8 = pnand %p6648_p6, %p7113_p7 }
  0x62   : > { %p6651_p9 = pneg %p6650_p8 }
  0x64   : > { %p6656_p3 = pnand %p6654_p1, %p6651_p9 }
  0x66   : > { %6659 = shalt.err (!%p6656_p3)
}
  0x67   : > { %s6660_s26 = scalar_lea.vmem %s7103_s29, 32  ;;  %p6668_p13 = scmp.lt.s32.totalorder %s7103_s29, %s7103_s29 }
  0x68   : > { %p6661_p10 = scmp.ne.s32.totalorder %s7103_s29, %s6660_s26  ;;  %p6669_p0 = scmp.lt.s32.totalorder %s6660_s26, %s6660_s26 }
  0x6a   : > { %p6663_p11 = pnand %p6661_p10, %p7113_p7  ;;  %p6670_p2 = por %p6669_p0, %p6668_p13 }
  0x6c   : > { %p6664_p12 = pneg %p6663_p11 }
  0x6e   : > { %p6671_p4 = pnand %p6670_p2, %p6664_p12 }
  0x70   : > { %6674 = shalt.err (!%p6671_p4)
}
  0x71   : > { %5956 = dma.hbm_to_vmem [thread:$0]  (!%p7097_p5), %s7861_s6, 32, %s7103_s29, [#allocation13]  }
  0x72   : > { %s6960_s22 = smov [#allocation8]   ;;  %s7862_s3 = sld [smem:[#allocation30_spill]] }
  0x73   : > { %s296_s0 = sshll.u32 %s6960_s22, 4  ;;  %s297_s0 = int_to_ptr.vmem [resolvable:$true] %s296_s0 }
  0x78   : > { %s6675_s20 = scalar_lea.hbm %s7862_s3, 32768 }
  0x79   : > { %p6676_p6 = scmp.ne.s32.totalorder %s7862_s3, %s6675_s20  ;;  %p6682_p1 = scmp.lt.u32.totalorder %s6675_s20, %s7862_s3 }
  0x7b   : > { %p6678_p8 = pnand %p6676_p6, %p7113_p7 }
  0x7d   : > { %p6679_p9 = pneg %p6678_p8 }
  0x7f   : > { %p6684_p3 = pnand %p6682_p1, %p6679_p9 }
  0x81   : > { %6687 = shalt.err (!%p6684_p3)
}
  0x82   : > { %s6688_s29 = scalar_lea.vmem %s297_s0, 32768  ;;  %p6696_p13 = scmp.lt.s32.totalorder %s297_s0, %s297_s0 }
  0x83   : > { %p6689_p10 = scmp.ne.s32.totalorder %s297_s0, %s6688_s29  ;;  %p6697_p0 = scmp.lt.s32.totalorder %s6688_s29, %s6688_s29 }
  0x85   : > { %p6691_p11 = pnand %p6689_p10, %p7113_p7  ;;  %p6698_p2 = por %p6697_p0, %p6696_p13 }
  0x87   : > { %p6692_p12 = pneg %p6691_p11 }
  0x89   : > { %p6699_p4 = pnand %p6698_p2, %p6692_p12 }
  0x8b   : > { %6702 = shalt.err (!%p6699_p4)
}
  0x8c   : > { %s6961_s24 = smov 256   ;;  %s6962_s1 = smov 16  }
  0x8d   : > { %5947 = dma.hbm_to_vmem [thread:$0]  (!%p7097_p5), %s7862_s3, 32768, %s297_s0, [#allocation7], %s6961_s24, %s6961_s24, %s6962_s1  }
  0x8e   : > { %s6963_s15 = smov [#allocation11]   ;;  %s7863_s5 = sld [smem:[#allocation32_spill]] }
  0x8f   : > { %s320_s20 = sshll.u32 %s6963_s15, 4  ;;  %s321_s20 = int_to_ptr.vmem [resolvable:$true] %s320_s20 }
  0x94   : > { %s6703_s9 = scalar_lea.hbm %s7863_s5, 8192 }
  0x95   : > { %p6704_p6 = scmp.ne.s32.totalorder %s7863_s5, %s6703_s9  ;;  %p6710_p1 = scmp.lt.u32.totalorder %s6703_s9, %s7863_s5 }
  0x97   : > { %p6706_p8 = pnand %p6704_p6, %p7113_p7 }
  0x99   : > { %p6707_p9 = pneg %p6706_p8 }
  0x9b   : > { %p6712_p3 = pnand %p6710_p1, %p6707_p9 }
  0x9d   : > { %6715 = shalt.err (!%p6712_p3)
}
  0x9e   : > { %s6716_s0 = scalar_lea.vmem %s321_s20, 8192  ;;  %p6724_p13 = scmp.lt.s32.totalorder %s321_s20, %s321_s20 }
  0x9f   : > { %p6717_p10 = scmp.ne.s32.totalorder %s321_s20, %s6716_s0  ;;  %p6725_p0 = scmp.lt.s32.totalorder %s6716_s0, %s6716_s0 }
  0xa1   : > { %p6719_p11 = pnand %p6717_p10, %p7113_p7  ;;  %p6726_p2 = por %p6725_p0, %p6724_p13 }
  0xa3   : > { %p6720_p12 = pneg %p6719_p11 }
  0xa5   : > { %p6727_p4 = pnand %p6726_p2, %p6720_p12 }
  0xa7   : > { %6730 = shalt.err (!%p6727_p4)
}
  0xa8   : > { %s6964_s24 = smov 128   ;;  %s6965_s1 = smov 8  }
  0xa9   : > { %5953 = dma.hbm_to_vmem [thread:$0]  (!%p7097_p5), %s7863_s5, 8192, %s321_s20, [#allocation10], %s6964_s24, %s6964_s24, %s6965_s1  }
  0xaa   : > { %s6966_s22 = smov [#allocation14]   ;;  %s7864_s7 = sld [smem:[#allocation34_spill]] }
  0xab   : > { %s344_s16 = sshll.u32 %s6966_s22, 4  ;;  %s345_s16 = int_to_ptr.vmem [resolvable:$true] %s344_s16 }
  0xb0   : > { %s6731_s28 = scalar_lea.hbm %s7864_s7, 2048 }
  0xb1   : > { %p6732_p6 = scmp.ne.s32.totalorder %s7864_s7, %s6731_s28  ;;  %p6738_p1 = scmp.lt.u32.totalorder %s6731_s28, %s7864_s7 }
  0xb3   : > { %p6734_p8 = pnand %p6732_p6, %p7113_p7 }
  0xb5   : > { %p6735_p9 = pneg %p6734_p8 }
  0xb7   : > { %p6740_p3 = pnand %p6738_p1, %p6735_p9 }
  0xb9   : > { %6743 = shalt.err (!%p6740_p3)
}
  0xba   : > { %s6744_s20 = scalar_lea.vmem %s345_s16, 2048  ;;  %p6752_p13 = scmp.lt.s32.totalorder %s345_s16, %s345_s16 }
  0xbb   : > { %p6745_p10 = scmp.ne.s32.totalorder %s345_s16, %s6744_s20  ;;  %p6753_p0 = scmp.lt.s32.totalorder %s6744_s20, %s6744_s20 }
  0xbd   : > { %p6747_p11 = pnand %p6745_p10, %p7113_p7  ;;  %p6754_p2 = por %p6753_p0, %p6752_p13 }
  0xbf   : > { %p6748_p12 = pneg %p6747_p11 }
  0xc1   : > { %p6755_p4 = pnand %p6754_p2, %p6748_p12 }
  0xc3   : > { %6758 = shalt.err (!%p6755_p4)
}
  0xc4   : > { %s6967_s24 = smov 64   ;;  %s6968_s1 = smov 4  }
  0xc5   : > { %5959 = dma.hbm_to_vmem [thread:$0]  (!%p7097_p5), %s7864_s7, 2048, %s345_s16, [#allocation13], %s6967_s24, %s6967_s24, %s6968_s1  }
  0xc6   : > { %s6969_s22 = smov [#allocation15]   ;;  %s7865_s8 = sld [smem:[#allocation35_spill]] }
  0xc7   : > { %s358_s15 = sshll.u32 %s6969_s22, 4  ;;  %s359_s15 = int_to_ptr.vmem [resolvable:$true] %s358_s15 }
  0xcc   : > { %s6759_s9 = scalar_lea.hbm %s7865_s8, 16 }
  0xcd   : > { %p6760_p6 = scmp.ne.s32.totalorder %s7865_s8, %s6759_s9  ;;  %p6766_p1 = scmp.lt.u32.totalorder %s6759_s9, %s7865_s8 }
  0xcf   : > { %p6762_p8 = pnand %p6760_p6, %p7113_p7 }
  0xd1   : > { %p6763_p9 = pneg %p6762_p8 }
  0xd3   : > { %p6768_p3 = pnand %p6766_p1, %p6763_p9 }
  0xd5   : > { %6771 = shalt.err (!%p6768_p3)
}
  0xd6   : > { %s6772_s16 = scalar_lea.vmem %s359_s15, 16  ;;  %s6779_s24 = scalar_lea.vmem %s359_s15, 32 }
  0xd7   : > { %p6773_p10 = scmp.ne.s32.totalorder %s359_s15, %s6772_s16  ;;  %p6780_p13 = scmp.lt.s32.totalorder %s359_s15, %s359_s15 }
  0xd8   : > { %p6781_p0 = scmp.lt.s32.totalorder %s6779_s24, %s6772_s16 }
  0xd9   : > { %p6775_p11 = pnand %p6773_p10, %p7113_p7 }
  0xda   : > { %p6782_p2 = por %p6781_p0, %p6780_p13 }
  0xdb   : > { %p6776_p12 = pneg %p6775_p11 }
  0xdd   : > { %p6783_p4 = pnand %p6782_p2, %p6776_p12 }
  0xdf   : > { %6786 = shalt.err (!%p6783_p4)
}
  0xe0   : > { %5962 = dma.hbm_to_vmem [thread:$0]  (!%p7097_p5), %s7865_s8, 16, %s359_s15, [#allocation16]  }
  0xe1   : > { %s5223_s25 = sadd.s32 4294967294, %s6955_s19   ;;  %s38_s4 = sadd.s32 1, %s6947_s17 }
  0xe2   : > { %s41_s27 = sadd.s32 1, %s6951_s18  ;;  %p39_p7 = scmp.ge.s32.totalorder %s38_s4, 2 }
  0xe3   : > { %s76_s22 = sadd.s32 1, %s6935_s14  ;;  %p83_p6 = scmp.ne.s32.totalorder %s6935_s14, %s6931_s13 }
  0xe4   : > { %p84_p8 = scmp.eq.s32.totalorder %s6955_s19, 0  ;;  %s7897_s4 = smov (%p39_p7, %s38_s4), 0 }
  0xe5   : > { %s7899_s27 = smov (!%p39_p7, %s41_s27), %s6951_s18  ;;  %s73_s15 = ssub.s32 %s6947_s17, %s7897_s4 }
  0xe6   : > { %p7259_p5 = por %p84_p8, %p83_p6  ;;  %p43_p9 = scmp.ge.s32.totalorder %s7899_s27, 2 }
  0xe7   : > { %p74_p1 = scmp.eq.s32.totalorder %s73_s15, 0  ;;  %p89_p3 = scmp.ne.s32.totalorder %s6931_s13, %s6927_s12 }
  0xe8   : > { %s249_s28 = sadd.s32 1, %s6923_s11  ;;  %s7901_s27 = smov (%p43_p9, %s7899_s27), 0 }
  0xe9   : > { %s7269_s9 = scalar_select %p74_p1, %s6935_s14, %s76_s22  }
  0xea   : > { %p7867_p10 = scmp.ne.s32.totalorder %s7854_s21, 0  ;;  %s246_s29 = ssub.s32 %s6951_s18, %s7901_s27 }
  0xeb   : > { %p247_p12 = scmp.eq.s32.totalorder %s246_s29, 0  ;;  %p259_p13 = scmp.ne.s32.totalorder %s6923_s11, %s6919_s10 }
  0xec   : > { %p7273_p11 = por %p7867_p10, %p89_p3  ;;  %s7869_s0 = sadd.s32 4294967295, %s6955_s19  }
  0xed   : > { %p260_p0 = scmp.eq.s32.totalorder %s7869_s0, 3  ;;  %p265_p2 = scmp.ne.s32.totalorder %s6919_s10, %s6915_s30 }
  0xee   : > { %s7286_s12 = scalar_select %p247_p12, %s6923_s11, %s249_s28  }
  0xef   : > { %p7288_p4 = por %p260_p0, %p259_p13  ;;  %p266_p7 = scmp.eq.s32.totalorder %s5223_s25, 3 }
  0xf0   : > { %p5978_p6 = scmp.lt.s32.totalorder %s6955_s19, 4  ;;  %s382_s16 = sand.u32 1, %s6935_s14  }
  0xf1   : > { %s7870_s20 = scalar_select %p7288_p4, 1, 0 }
  0xf2   : > { %p7294_p8 = por %p266_p7, %p265_p2  ;;  %s5233_s1 = sshll.u32 %s382_s16, 11 }
  0xf3   : > { %s5854_s2 = sshll.u32 %s6947_s17, 15  ;;  %s7872_s29 = sld [smem:[#allocation28_spill]] }
  0xf4   : > { %s7871_s24 = scalar_select %p7294_p8, 1, 0 }
  0xf5   : > { %s386_s28 = scalar_lea.vmem [#allocation3], %s5233_s1  ;;  %p7306_p9 = pnand %p5978_p6, %p7259_p5 }
  0xf6   : > { %s394_s3 = sshll.u32 %s386_s28, 4  ;;  %s7312_s5 = scalar_lea.sflag [#allocation4], %s382_s16  ;;  %s7310_s3 = int_to_ptr.vmem [resolvable:$true] %s394_s3 }
  0xf7   : > { %p6789_p3 = pneg %p7306_p9 }
  0xf9   : > { %s7302_s0 = scalar_lea.hbm %s7872_s29, %s5854_s2  ;;  %s6792_s2 = scalar_lea.hbm %s7872_s29, 65536 }
  0xfa   : > { %s6787_s22 = scalar_lea.hbm %s7302_s0, 32768  ;;  %p6793_p5 = scmp.lt.u32.totalorder %s7302_s0, %s7872_s29 }
  0xfb   : > { %p6788_p1 = scmp.ne.s32.totalorder %s7302_s0, %s6787_s22  ;;  %p6794_p13 = scmp.lt.u32.totalorder %s6792_s2, %s6787_s22 }
  0xfc   : > { %p6796_p2 = scmp.lt.u32.totalorder %s6787_s22, %s7302_s0 }
  0xfd   : > { %p6790_p10 = pnand %p6789_p3, %p6788_p1  ;;  %p6795_p0 = por %p6794_p13, %p6793_p5 }
  0xff   : > { %p6791_p12 = pneg %p6790_p10  ;;  %p6797_p7 = por %p6796_p2, %p6795_p0 }
 0x101   : > { %p6798_p6 = pnand %p6797_p7, %p6791_p12 }
 0x103   : > { %6801 = shalt.err (!%p6798_p6)
}
 0x104   : > { %s6802_s16 = scalar_lea.vmem %s7310_s3, 32768  ;;  %s6970_s1 = smov [#allocation3]  }
 0x105   : > { %p6803_p1 = scmp.ne.s32.totalorder %s7310_s3, %s6802_s16  ;;  %s6807_s23 = sshll.u32 %s6970_s1, 4  ;;  %s6808_s23 = int_to_ptr.vmem [resolvable:$false] %s6807_s23 }
 0x106   : > { %s6809_s15 = scalar_lea.vmem %s6808_s23, 65536  ;;  %p6810_p4 = scmp.lt.s32.totalorder %s7310_s3, %s6808_s23 }
 0x107   : > { %p6805_p10 = pnand %p6803_p1, %p6789_p3  ;;  %p6811_p5 = scmp.lt.s32.totalorder %s6809_s15, %s6802_s16 }
 0x109   : > { %p6806_p8 = pneg %p6805_p10  ;;  %p6812_p13 = por %p6811_p5, %p6810_p4 }
 0x10b   : > { %p6813_p0 = pnand %p6812_p13, %p6806_p8 }
 0x10d   : > { %6816 = shalt.err (!%p6813_p0)
}
 0x10e   : > { %s6971_s22 = smov 512   ;;  %s6972_s2 = smov 32  }
 0x10f   : > { %5966 = dma.hbm_to_vmem [thread:$0]  (!%p7306_p9), %s7302_s0, 32768, %s7310_s3, %s7312_s5, %s6971_s22, %s6971_s22, %s6972_s2  }
 0x110   : > { %s7874_s28 = sld [smem:[#allocation26_spill]] }
 0x116   : > { %p7875_p3 = scmp.ne.s32.totalorder %s7874_s28, 0 }
 0x117   : > { %s408_s1 = sand.u32 (!%p7875_p3), 1, %s6931_s13  }
 0x118   : > { %406 = sbr.rel (%p7875_p3) target bundleno = 1753 (0x6d9), region = 56  ;;  %s5238_s6 = sshll.u32 (!%p7875_p3), %s408_s1, 11 }
 0x119   : > { %s409_s23 = scalar_lea.sflag (!%p7875_p3), [#allocation4], %s408_s1  ;;  %s7343_s16 = scalar_lea.vmem (!%p7875_p3), [#allocation3], %s5238_s6 }
 0x11f   : > { %6890 = dma.done.wait (%p7273_p11), %s409_s23, 32768  }
 0x120   : > { %6892 = vsyncadd (%p7273_p11), %s409_s23, 4294934528  ;;  %p7876_p4 = scmp.ne.s32.totalorder %s7854_s21, 0 }
 0x122   : > { %6894 = dma.done.wait (%p7876_p4), [#allocation7], 32896  }
 0x123   : > { %6896 = vsyncadd (%p7876_p4), [#allocation7], 4294934400 }
 0x124   : > { %6898 = dma.done.wait (%p7876_p4), [#allocation10], 8256  }
 0x125   : > { %6900 = vsyncadd (%p7876_p4), [#allocation10], 4294959040 }
 0x126   : > { %6902 = dma.done.wait (%p7876_p4), [#allocation13], 2080  }
 0x127   : > { %6904 = vsyncadd (%p7876_p4), [#allocation13], 4294965216 }
 0x128   : > { %6906 = dma.done.wait (%p7876_p4), [#allocation16], 16  }
 0x129   : > { %6908 = vsyncadd (%p7876_p4), [#allocation16], 4294967280  ;;  %s7877_s3 = sld [smem:[#allocation24_spill]]  ;;  %s7878_s5 = sld [smem:[#allocation25_spill]] }
 0x12a   : > { %s481_s6 = sand.u32 1, %s6919_s10   ;;  %s7879_s28 = sld [smem:[#allocation27_spill]] }
 0x12b   : > { %s7369_s0 = sshll.u32 %s481_s6, 3 }
 0x12c   : > { %s483_s23 = scalar_lea.vmem [#allocation17], %s7369_s0 }
 0x12f   : > { %s5247_s26 = sshll.u32 %s7877_s3, 2  ;;  %p485_p11 = scmp.lt.s32.totalorder %s7878_s5, 1 }
 0x130   : > { %p487_p8 = scmp.lt.s32.totalorder %s5247_s26, 7  ;;  %p5250_p9 = scmp.ne.s32.totalorder %s7877_s3, 0 }
 0x131   : > { %s7903_s5 = smov (!%p485_p11, %s7878_s5), 1  ;;  %v6973_v0 = vmov (!%p5250_p9), 0.0  }
 0x132   : > { %s7905_s26 = smov (!%p487_p8, %s5247_s26), 7  ;;  %s5248_s25 = sshll.u32 %s7903_s5, 3  ;;  %500 = vst [vmem:[#allocation2] sm:$0xff] (!%p5250_p9), %v6973_v0  ;;  %501 = vst [vmem:[#allocation2 + $0x8] sm:$0xff] (!%p5250_p9), %v6973_v0 }
 0x133   : > { %s490_s15 = sadd.s32 %s5248_s25, %s7905_s26  ;;  %499 = sbr.rel (%p5250_p9) target bundleno = 314 (0x13a), region = 92  ;;  %502 = vst [vmem:[#allocation2 + $0x10] sm:$0xff] (!%p5250_p9), %v6973_v0  ;;  %503 = vst [vmem:[#allocation2 + $0x18] sm:$0xff] (!%p5250_p9), %v6973_v0 }
 0x134   : > { %s5249_s22 = sshll.u32 %s490_s15, 2  ;;  %504 = vst [vmem:[#allocation2 + $0x20] sm:$0xff] (!%p5250_p9), %v6973_v0  ;;  %505 = vst [vmem:[#allocation2 + $0x28] sm:$0xff] (!%p5250_p9), %v6973_v0 }
 0x135   : > { %s7376_s1 = scalar_lea.vmem %s7879_s28, %s5249_s22  ;;  %506 = vst [vmem:[#allocation2 + $0x30] sm:$0xff] (!%p5250_p9), %v6973_v0  ;;  %507 = vst [vmem:[#allocation2 + $0x38] sm:$0xff] (!%p5250_p9), %v6973_v0 }
 0x13a PF: > { %v518_v1 = vld [vmem:[%s7343_s16] sm:$0xff]  ;;  %v7412_v55 = vld [vmem:[%s7376_s1 + $0x8] sm:$0xff] }
 0x13b   : > { %v522_v2 = vld [vmem:[%s7343_s16 + $0x20] sm:$0xff]  ;;  %v7422_v60 = vcombine.high %v7412_v55, %v7412_v55 }
 0x13c   : > { %v646_v3 = vld [vmem:[%s7343_s16 + $0x400] sm:$0xff]  ;;  %v5256_v4 = vcombine.high %v518_v1, %v522_v2  ;;  %v5255_v6 = vcombine.low %v518_v1, %v522_v2 }
 0x13d   : > { %v650_v5 = vld [vmem:[%s7343_s16 + $0x420] sm:$0xff]  ;;  %2141 = vmatprep.mubr.bf16.mxu1 %v7422_v60 }
 0x13e   : > { %v526_v7 = vld [vmem:[%s7343_s16 + $0x40] sm:$0xff]  ;;  %v5384_v9 = vcombine.high %v646_v3, %v650_v5  ;;  %v5383_v10 = vcombine.low %v646_v3, %v650_v5  ;;  %2068 = vmatprep.subr.bf16.mxu0 %v5256_v4 }
 0x13f   : > { %v530_v8 = vld [vmem:[%s7343_s16 + $0x60] sm:$0xff]  ;;  %2069 = vmatpush1.bf16.msra.mxu0 %v5255_v6 }
 0x140   : > { %v5264_v11 = vcombine.high %v526_v7, %v530_v8  ;;  %v654_v12 = vld [vmem:[%s7343_s16 + $0x440] sm:$0xff]  ;;  %2109 = vmatprep.subr.bf16.mxu1 %v5384_v9  ;;  %v5263_v19 = vcombine.low %v526_v7, %v530_v8 }
 0x141   : > { %v658_v13 = vld [vmem:[%s7343_s16 + $0x460] sm:$0xff]  ;;  %2110 = vmatpush1.bf16.msra.mxu1 %v5383_v10 }
 0x142   : > { %v534_v14 = vld [vmem:[%s7343_s16 + $0x80] sm:$0xff]  ;;  %v5392_v15 = vcombine.high %v654_v12, %v658_v13  ;;  %2070 = vmatprep.subr.bf16.mxu0 %v5264_v11  ;;  %v5391_v20 = vcombine.low %v654_v12, %v658_v13 }
 0x143   : > { %v538_v16 = vld [vmem:[%s7343_s16 + $0xa0] sm:$0xff]  ;;  %2071 = vmatpush1.bf16.msra.mxu0 %v5263_v19 }
 0x144   : > { %v662_v17 = vld [vmem:[%s7343_s16 + $0x480] sm:$0xff]  ;;  %v5272_v21 = vcombine.high %v534_v14, %v538_v16  ;;  %2111 = vmatprep.subr.bf16.mxu1 %v5392_v15  ;;  %v5271_v27 = vcombine.low %v534_v14, %v538_v16 }
 0x145   : > { %v666_v18 = vld [vmem:[%s7343_s16 + $0x4a0] sm:$0xff]  ;;  %2112 = vmatpush1.bf16.msra.mxu1 %v5391_v20 }
 0x146   : > { %v5400_v22 = vcombine.high %v662_v17, %v666_v18  ;;  %v542_v23 = vld [vmem:[%s7343_s16 + $0xc0] sm:$0xff]  ;;  %2072 = vmatprep.subr.bf16.mxu0 %v5272_v21  ;;  %v5399_v28 = vcombine.low %v662_v17, %v666_v18 }
 0x147   : > { %v546_v24 = vld [vmem:[%s7343_s16 + $0xe0] sm:$0xff]  ;;  %2073 = vmatpush1.bf16.msra.mxu0 %v5271_v27 }
 0x148   : > { %v670_v25 = vld [vmem:[%s7343_s16 + $0x4c0] sm:$0xff]  ;;  %v5280_v29 = vcombine.high %v542_v23, %v546_v24  ;;  %2113 = vmatprep.subr.bf16.mxu1 %v5400_v22  ;;  %v5279_v35 = vcombine.low %v542_v23, %v546_v24 }
 0x149   : > { %v674_v26 = vld [vmem:[%s7343_s16 + $0x4e0] sm:$0xff]  ;;  %2114 = vmatpush1.bf16.msra.mxu1 %v5399_v28 }
 0x14a   : > { %v5408_v30 = vcombine.high %v670_v25, %v674_v26  ;;  %v550_v31 = vld [vmem:[%s7343_s16 + $0x100] sm:$0xff]  ;;  %2074 = vmatprep.subr.bf16.mxu0 %v5280_v29  ;;  %v5407_v36 = vcombine.low %v670_v25, %v674_v26 }
 0x14b   : > { %v554_v32 = vld [vmem:[%s7343_s16 + $0x120] sm:$0xff]  ;;  %2075 = vmatpush1.bf16.msra.mxu0 %v5279_v35 }
 0x14c   : > { %v678_v33 = vld [vmem:[%s7343_s16 + $0x500] sm:$0xff]  ;;  %v5288_v37 = vcombine.high %v550_v31, %v554_v32  ;;  %2115 = vmatprep.subr.bf16.mxu1 %v5408_v30  ;;  %v5287_v43 = vcombine.low %v550_v31, %v554_v32 }
 0x14d   : > { %v682_v34 = vld [vmem:[%s7343_s16 + $0x520] sm:$0xff]  ;;  %2116 = vmatpush1.bf16.msra.mxu1 %v5407_v36 }
 0x14e   : > { %v5416_v38 = vcombine.high %v678_v33, %v682_v34  ;;  %v558_v39 = vld [vmem:[%s7343_s16 + $0x140] sm:$0xff]  ;;  %2076 = vmatprep.subr.bf16.mxu0 %v5288_v37  ;;  %v5415_v44 = vcombine.low %v678_v33, %v682_v34 }
 0x14f   : > { %v562_v40 = vld [vmem:[%s7343_s16 + $0x160] sm:$0xff]  ;;  %2077 = vmatpush1.bf16.msra.mxu0 %v5287_v43 }
 0x150   : > { %v686_v41 = vld [vmem:[%s7343_s16 + $0x540] sm:$0xff]  ;;  %v5296_v45 = vcombine.high %v558_v39, %v562_v40  ;;  %2117 = vmatprep.subr.bf16.mxu1 %v5416_v38  ;;  %v5295_v51 = vcombine.low %v558_v39, %v562_v40 }
 0x151   : > { %v690_v42 = vld [vmem:[%s7343_s16 + $0x560] sm:$0xff]  ;;  %2118 = vmatpush1.bf16.msra.mxu1 %v5415_v44 }
 0x152   : > { %v5424_v46 = vcombine.high %v686_v41, %v690_v42  ;;  %v566_v47 = vld [vmem:[%s7343_s16 + $0x180] sm:$0xff]  ;;  %2078 = vmatprep.subr.bf16.mxu0 %v5296_v45  ;;  %v5423_v52 = vcombine.low %v686_v41, %v690_v42 }
 0x153   : > { %v570_v48 = vld [vmem:[%s7343_s16 + $0x1a0] sm:$0xff]  ;;  %2079 = vmatpush1.bf16.msra.mxu0 %v5295_v51 }
 0x154   : > { %v694_v49 = vld [vmem:[%s7343_s16 + $0x580] sm:$0xff]  ;;  %v5304_v53 = vcombine.high %v566_v47, %v570_v48  ;;  %2119 = vmatprep.subr.bf16.mxu1 %v5424_v46  ;;  %v5303_v63 = vcombine.low %v566_v47, %v570_v48 }
 0x155   : > { %v698_v50 = vld [vmem:[%s7343_s16 + $0x5a0] sm:$0xff]  ;;  %2120 = vmatpush1.bf16.msra.mxu1 %v5423_v52 }
 0x156   : > { %v7409_v54 = vld [vmem:[%s7376_s1] sm:$0xff]  ;;  %v5432_v56 = vcombine.high %v694_v49, %v698_v50  ;;  %2080 = vmatprep.subr.bf16.mxu0 %v5304_v53  ;;  %v5431_v0 = vcombine.low %v694_v49, %v698_v50 }
 0x157   : > { %v574_v57 = vld [vmem:[%s7343_s16 + $0x1c0] sm:$0xff]  ;;  %v7418_v59 = vcombine.high %v7409_v54, %v7409_v54  ;;  %2081 = vmatpush1.bf16.msra.mxu0 %v5303_v63 }
 0x158   : > { %v578_v58 = vld [vmem:[%s7343_s16 + $0x1e0] sm:$0xff]  ;;  %2121 = vmatprep.subr.bf16.mxu1 %v5432_v56 }
 0x159   : > { %v702_v61 = vld [vmem:[%s7343_s16 + $0x5c0] sm:$0xff]  ;;  %2100 = vmatprep.mubr.bf16.mxu0 %v7418_v59  ;;  %v5312_v1 = vcombine.high %v574_v57, %v578_v58  ;;  %v5311_v7 = vcombine.low %v574_v57, %v578_v58  ;;  %2122 = vmatpush1.bf16.msra.mxu1 %v5431_v0 }
 0x15a   : > { %v706_v62 = vld [vmem:[%s7343_s16 + $0x5e0] sm:$0xff] }
 0x15b   : > { %v5440_v2 = vcombine.high %v702_v61, %v706_v62  ;;  %v582_v3 = vld [vmem:[%s7343_s16 + $0x200] sm:$0xff]  ;;  %2082 = vmatprep.subr.bf16.mxu0 %v5312_v1  ;;  %v5439_v8 = vcombine.low %v702_v61, %v706_v62 }
 0x15c   : > { %v586_v4 = vld [vmem:[%s7343_s16 + $0x220] sm:$0xff]  ;;  %2083 = vmatpush1.bf16.msra.mxu0 %v5311_v7  ;;  %v519_v7 = vld [vmem:[%s7343_s16 + $0x8] sm:$0xff] }
 0x15d   : > { %v710_v5 = vld [vmem:[%s7343_s16 + $0x600] sm:$0xff]  ;;  %v5320_v9 = vcombine.high %v582_v3, %v586_v4  ;;  %2123 = vmatprep.subr.bf16.mxu1 %v5440_v2  ;;  %v5319_v15 = vcombine.low %v582_v3, %v586_v4 }
 0x15e   : > { %v714_v6 = vld [vmem:[%s7343_s16 + $0x620] sm:$0xff]  ;;  %2124 = vmatpush1.bf16.msra.mxu1 %v5439_v8  ;;  %v523_v8 = vld [vmem:[%s7343_s16 + $0x28] sm:$0xff] }
 0x15f   : > { %v5448_v10 = vcombine.high %v710_v5, %v714_v6  ;;  %v590_v11 = vld [vmem:[%s7343_s16 + $0x240] sm:$0xff]  ;;  %2084 = vmatprep.subr.bf16.mxu0 %v5320_v9  ;;  %v5447_v16 = vcombine.low %v710_v5, %v714_v6  ;;  %v647_v9 = vld [vmem:[%s7343_s16 + $0x408] sm:$0xff] }
 0x160   : > { %v594_v12 = vld [vmem:[%s7343_s16 + $0x260] sm:$0xff]  ;;  %2085 = vmatpush1.bf16.msra.mxu0 %v5319_v15  ;;  %v527_v15 = vld [vmem:[%s7343_s16 + $0x48] sm:$0xff] }
 0x161   : > { %v718_v13 = vld [vmem:[%s7343_s16 + $0x640] sm:$0xff]  ;;  %v5328_v17 = vcombine.high %v590_v11, %v594_v12  ;;  %2125 = vmatprep.subr.bf16.mxu1 %v5448_v10  ;;  %v5327_v23 = vcombine.low %v590_v11, %v594_v12  ;;  %v651_v10 = vld [vmem:[%s7343_s16 + $0x428] sm:$0xff] }
 0x162   : > { %v722_v14 = vld [vmem:[%s7343_s16 + $0x660] sm:$0xff]  ;;  %2126 = vmatpush1.bf16.msra.mxu1 %v5447_v16  ;;  %v531_v16 = vld [vmem:[%s7343_s16 + $0x68] sm:$0xff] }
 0x163   : > { %v5456_v18 = vcombine.high %v718_v13, %v722_v14  ;;  %v598_v19 = vld [vmem:[%s7343_s16 + $0x280] sm:$0xff]  ;;  %2086 = vmatprep.subr.bf16.mxu0 %v5328_v17  ;;  %v5455_v24 = vcombine.low %v718_v13, %v722_v14  ;;  %v5258_v13 = vcombine.high %v519_v7, %v523_v8  ;;  %v5386_v14 = vcombine.high %v647_v9, %v651_v10 }
 0x164   : > { %v602_v20 = vld [vmem:[%s7343_s16 + $0x2a0] sm:$0xff]  ;;  %2087 = vmatpush1.bf16.msra.mxu0 %v5327_v23  ;;  %v7468_v17 = vcombine.low %v7409_v54, %v7409_v54  ;;  %v5266_v23 = vcombine.high %v527_v15, %v531_v16  ;;  %v539_v54 = vld [vmem:[%s7343_s16 + $0xa8] sm:$0xff] }
 0x165   : > { %v726_v21 = vld [vmem:[%s7343_s16 + $0x680] sm:$0xff]  ;;  %v5336_v25 = vcombine.high %v598_v19, %v602_v20  ;;  %2127 = vmatprep.subr.bf16.mxu1 %v5456_v18  ;;  %v5335_v31 = vcombine.low %v598_v19, %v602_v20  ;;  %v655_v18 = vld [vmem:[%s7343_s16 + $0x448] sm:$0xff]  ;;  %v7474_v20 = vcombine.low %v7412_v55, %v7412_v55  ;;  %v5265_v55 = vcombine.low %v527_v15, %v531_v16 }
 0x166   : > { %v730_v22 = vld [vmem:[%s7343_s16 + $0x6a0] sm:$0xff]  ;;  %2128 = vmatpush1.bf16.msra.mxu1 %v5455_v24  ;;  %v659_v19 = vld [vmem:[%s7343_s16 + $0x468] sm:$0xff] }
 0x167   : > { %v5464_v26 = vcombine.high %v726_v21, %v730_v22  ;;  %v606_v27 = vld [vmem:[%s7343_s16 + $0x2c0] sm:$0xff]  ;;  %2088 = vmatprep.subr.bf16.mxu0 %v5336_v25  ;;  %v5463_v32 = vcombine.low %v726_v21, %v730_v22  ;;  %v5257_v21 = vcombine.low %v519_v7, %v523_v8  ;;  %v5385_v22 = vcombine.low %v647_v9, %v651_v10  ;;  %v535_v25 = vld [vmem:[%s7343_s16 + $0x88] sm:$0xff] }
 0x168   : > { %v610_v28 = vld [vmem:[%s7343_s16 + $0x2e0] sm:$0xff]  ;;  %2089 = vmatpush1.bf16.msra.mxu0 %v5335_v31  ;;  %v5394_v24 = vcombine.high %v655_v18, %v659_v19  ;;  %v543_v31 = vld [vmem:[%s7343_s16 + $0xc8] sm:$0xff] }
 0x169   : > { %v734_v29 = vld [vmem:[%s7343_s16 + $0x6c0] sm:$0xff]  ;;  %v5344_v33 = vcombine.high %v606_v27, %v610_v28  ;;  %2129 = vmatprep.subr.bf16.mxu1 %v5464_v26  ;;  %v5343_v39 = vcombine.low %v606_v27, %v610_v28  ;;  %v663_v26 = vld [vmem:[%s7343_s16 + $0x488] sm:$0xff]  ;;  %v5393_v28 = vcombine.low %v655_v18, %v659_v19 }
 0x16a   : > { %v738_v30 = vld [vmem:[%s7343_s16 + $0x6e0] sm:$0xff]  ;;  %2130 = vmatpush1.bf16.msra.mxu1 %v5463_v32  ;;  %v667_v27 = vld [vmem:[%s7343_s16 + $0x4a8] sm:$0xff] }
 0x16b   : > { %v5472_v34 = vcombine.high %v734_v29, %v738_v30  ;;  %v614_v35 = vld [vmem:[%s7343_s16 + $0x300] sm:$0xff]  ;;  %2090 = vmatprep.subr.bf16.mxu0 %v5344_v33  ;;  %v5471_v40 = vcombine.low %v734_v29, %v738_v30  ;;  %v5274_v29 = vcombine.high %v535_v25, %v539_v54  ;;  %v5402_v30 = vcombine.high %v663_v26, %v667_v27  ;;  %v547_v32 = vld [vmem:[%s7343_s16 + $0xe8] sm:$0xff] }
 0x16c   : > { %v618_v36 = vld [vmem:[%s7343_s16 + $0x320] sm:$0xff]  ;;  %2091 = vmatpush1.bf16.msra.mxu0 %v5343_v39  ;;  %v671_v33 = vld [vmem:[%s7343_s16 + $0x4c8] sm:$0xff] }
 0x16d   : > { %v742_v37 = vld [vmem:[%s7343_s16 + $0x700] sm:$0xff]  ;;  %v5352_v41 = vcombine.high %v614_v35, %v618_v36  ;;  %2131 = vmatprep.subr.bf16.mxu1 %v5472_v34  ;;  %v5351_v47 = vcombine.low %v614_v35, %v618_v36  ;;  %v675_v34 = vld [vmem:[%s7343_s16 + $0x4e8] sm:$0xff]  ;;  %v5273_v35 = vcombine.low %v535_v25, %v539_v54  ;;  %v5401_v36 = vcombine.low %v663_v26, %v667_v27 }
 0x16e   : > { %v746_v38 = vld [vmem:[%s7343_s16 + $0x720] sm:$0xff]  ;;  %2132 = vmatpush1.bf16.msra.mxu1 %v5471_v40  ;;  %v551_v39 = vld [vmem:[%s7343_s16 + $0x108] sm:$0xff] }
 0x16f   : > { %v5480_v42 = vcombine.high %v742_v37, %v746_v38  ;;  %v622_v43 = vld [vmem:[%s7343_s16 + $0x340] sm:$0xff]  ;;  %2092 = vmatprep.subr.bf16.mxu0 %v5352_v41  ;;  %v5479_v48 = vcombine.low %v742_v37, %v746_v38  ;;  %v5282_v37 = vcombine.high %v543_v31, %v547_v32  ;;  %v5410_v38 = vcombine.high %v671_v33, %v675_v34  ;;  %v555_v40 = vld [vmem:[%s7343_s16 + $0x128] sm:$0xff] }
 0x170   : > { %v626_v44 = vld [vmem:[%s7343_s16 + $0x360] sm:$0xff]  ;;  %2093 = vmatpush1.bf16.msra.mxu0 %v5351_v47  ;;  %v679_v41 = vld [vmem:[%s7343_s16 + $0x508] sm:$0xff] }
 0x171   : > { %v750_v45 = vld [vmem:[%s7343_s16 + $0x740] sm:$0xff]  ;;  %v5360_v49 = vcombine.high %v622_v43, %v626_v44  ;;  %2133 = vmatprep.subr.bf16.mxu1 %v5480_v42  ;;  %v5359_v57 = vcombine.low %v622_v43, %v626_v44  ;;  %v683_v42 = vld [vmem:[%s7343_s16 + $0x528] sm:$0xff]  ;;  %v5281_v43 = vcombine.low %v543_v31, %v547_v32  ;;  %v5409_v44 = vcombine.low %v671_v33, %v675_v34 }
 0x172   : > { %v754_v46 = vld [vmem:[%s7343_s16 + $0x760] sm:$0xff]  ;;  %2134 = vmatpush1.bf16.msra.mxu1 %v5479_v48  ;;  %v559_v47 = vld [vmem:[%s7343_s16 + $0x148] sm:$0xff] }
 0x173   : > { %v5488_v50 = vcombine.high %v750_v45, %v754_v46  ;;  %v630_v51 = vld [vmem:[%s7343_s16 + $0x380] sm:$0xff]  ;;  %2094 = vmatprep.subr.bf16.mxu0 %v5360_v49  ;;  %v5487_v58 = vcombine.low %v750_v45, %v754_v46  ;;  %v5290_v45 = vcombine.high %v551_v39, %v555_v40  ;;  %v5418_v46 = vcombine.high %v679_v41, %v683_v42  ;;  %v563_v48 = vld [vmem:[%s7343_s16 + $0x168] sm:$0xff] }
 0x174   : > { %v634_v52 = vld [vmem:[%s7343_s16 + $0x3a0] sm:$0xff]  ;;  %2095 = vmatpush1.bf16.msra.mxu0 %v5359_v57  ;;  %v687_v49 = vld [vmem:[%s7343_s16 + $0x548] sm:$0xff] }
 0x175   : > { %v758_v53 = vld [vmem:[%s7343_s16 + $0x780] sm:$0xff]  ;;  %v5368_v61 = vcombine.high %v630_v51, %v634_v52  ;;  %2135 = vmatprep.subr.bf16.mxu1 %v5488_v50  ;;  %v5367_v3 = vcombine.low %v630_v51, %v634_v52  ;;  %v691_v50 = vld [vmem:[%s7343_s16 + $0x568] sm:$0xff]  ;;  %v5289_v51 = vcombine.low %v551_v39, %v555_v40  ;;  %v5417_v52 = vcombine.low %v679_v41, %v683_v42 }
 0x176   : > { %v762_v56 = vld [vmem:[%s7343_s16 + $0x7a0] sm:$0xff]  ;;  %2136 = vmatpush1.bf16.msra.mxu1 %v5487_v58  ;;  %v567_v57 = vld [vmem:[%s7343_s16 + $0x188] sm:$0xff] }
 0x177   : > { %v5496_v62 = vcombine.high %v758_v53, %v762_v56  ;;  %v638_v63 = vld [vmem:[%s7343_s16 + $0x3c0] sm:$0xff]  ;;  %2096 = vmatprep.subr.bf16.mxu0 %v5368_v61  ;;  %v5495_v4 = vcombine.low %v758_v53, %v762_v56  ;;  %v5298_v53 = vcombine.high %v559_v47, %v563_v48  ;;  %v5426_v56 = vcombine.high %v687_v49, %v691_v50  ;;  %v571_v58 = vld [vmem:[%s7343_s16 + $0x1a8] sm:$0xff] }
 0x178   : > { %v642_v0 = vld [vmem:[%s7343_s16 + $0x3e0] sm:$0xff]  ;;  %2097 = vmatpush1.bf16.msra.mxu0 %v5367_v3  ;;  %v695_v61 = vld [vmem:[%s7343_s16 + $0x588] sm:$0xff]  ;;  %v5305_v7 = vcombine.low %v567_v57, %v571_v58 }
 0x179   : > { %v766_v1 = vld [vmem:[%s7343_s16 + $0x7c0] sm:$0xff]  ;;  %v5376_v5 = vcombine.high %v638_v63, %v642_v0  ;;  %2137 = vmatprep.subr.bf16.mxu1 %v5496_v62  ;;  %v5375_v11 = vcombine.low %v638_v63, %v642_v0  ;;  %v699_v62 = vld [vmem:[%s7343_s16 + $0x5a8] sm:$0xff]  ;;  %v5297_v63 = vcombine.low %v559_v47, %v563_v48  ;;  %v5425_v0 = vcombine.low %v687_v49, %v691_v50 }
 0x17a   : > { %v770_v2 = vld [vmem:[%s7343_s16 + $0x7e0] sm:$0xff]  ;;  %2138 = vmatpush1.bf16.msra.mxu1 %v5495_v4  ;;  %v575_v3 = vld [vmem:[%s7343_s16 + $0x1c8] sm:$0xff]  ;;  %v5433_v8 = vcombine.low %v695_v61, %v699_v62 }
 0x17b   : > { %v5504_v6 = vcombine.high %v766_v1, %v770_v2  ;;  %2098 = vmatprep.subr.bf16.mxu0 %v5376_v5  ;;  %v5503_v12 = vcombine.low %v766_v1, %v770_v2  ;;  %v5306_v1 = vcombine.high %v567_v57, %v571_v58  ;;  %v5434_v2 = vcombine.high %v695_v61, %v699_v62  ;;  %v579_v4 = vld [vmem:[%s7343_s16 + $0x1e8] sm:$0xff] }
 0x17c   : > { %2099 = vmatpush1.bf16.msra.mxu0 %v5375_v11  ;;  %v703_v5 = vld [vmem:[%s7343_s16 + $0x5c8] sm:$0xff]  ;;  %v5314_v9 = vcombine.high %v575_v3, %v579_v4  ;;  %v5313_v15 = vcombine.low %v575_v3, %v579_v4 }
 0x17d   : > { %2139 = vmatprep.subr.bf16.mxu1 %v5504_v6  ;;  %2150 = vmatprep.subr.bf16.mxu0 %v5258_v13  ;;  %v707_v6 = vld [vmem:[%s7343_s16 + $0x5e8] sm:$0xff] }
 0x17e   : > { %2140 = vmatpush1.bf16.msra.mxu1 %v5503_v12  ;;  %v5442_v10 = vcombine.high %v703_v5, %v707_v6  ;;  %v583_v11 = vld [vmem:[%s7343_s16 + $0x208] sm:$0xff]  ;;  %v5441_v16 = vcombine.low %v703_v5, %v707_v6 }
 0x17f   : > { %2191 = vmatprep.subr.bf16.mxu1 %v5386_v14  ;;  %2101 = vmatmul.mubr.bf16.vlgmr.msra.gmra.mrb[0].mxu0 %v7468_v17  ;;  %v587_v12 = vld [vmem:[%s7343_s16 + $0x228] sm:$0xff] }
 0x180   : > { %2151 = vmatpush1.bf16.msra.mxu0 %v5257_v21  ;;  %2182 = vmatprep.mubr.bf16.mxu0 %v7418_v59  ;;  %v711_v13 = vld [vmem:[%s7343_s16 + $0x608] sm:$0xff]  ;;  %v5322_v18 = vcombine.high %v583_v11, %v587_v12  ;;  %v5321_v25 = vcombine.low %v583_v11, %v587_v12 }
 0x181   : > { %2142 = vmatmul.mubr.bf16.vlgmr.msra.gmra.mrb[0].mxu1 %v7474_v20  ;;  %2152 = vmatprep.subr.bf16.mxu0 %v5266_v23  ;;  %v715_v14 = vld [vmem:[%s7343_s16 + $0x628] sm:$0xff] }
 0x182   : > { %2192 = vmatpush1.bf16.msra.mxu1 %v5385_v22  ;;  %2223 = vmatprep.mubr.bf16.mxu1 %v7422_v60  ;;  %v5450_v19 = vcombine.high %v711_v13, %v715_v14  ;;  %v591_v21 = vld [vmem:[%s7343_s16 + $0x248] sm:$0xff]  ;;  %v5449_v54 = vcombine.low %v711_v13, %v715_v14 }
 0x183   : > { %2193 = vmatprep.subr.bf16.mxu1 %v5394_v24  ;;  %v595_v22 = vld [vmem:[%s7343_s16 + $0x268] sm:$0xff] }
 0x184   : > { %2153 = vmatpush1.bf16.msra.mxu0 %v5265_v55  ;;  %v719_v23 = vld [vmem:[%s7343_s16 + $0x648] sm:$0xff]  ;;  %v5330_v26 = vcombine.high %v591_v21, %v595_v22  ;;  %v5329_v31 = vcombine.low %v591_v21, %v595_v22 }
 0x185   : > { %2154 = vmatprep.subr.bf16.mxu0 %v5274_v29  ;;  %v723_v24 = vld [vmem:[%s7343_s16 + $0x668] sm:$0xff] }
 0x186   : > { %2194 = vmatpush1.bf16.msra.mxu1 %v5393_v28  ;;  %v5458_v27 = vcombine.high %v719_v23, %v723_v24  ;;  %v599_v55 = vld [vmem:[%s7343_s16 + $0x288] sm:$0xff]  ;;  %v5457_v32 = vcombine.low %v719_v23, %v723_v24 }
 0x187   : > { %2195 = vmatprep.subr.bf16.mxu1 %v5402_v30  ;;  %v603_v28 = vld [vmem:[%s7343_s16 + $0x2a8] sm:$0xff] }
 0x188   : > { %2155 = vmatpush1.bf16.msra.mxu0 %v5273_v35  ;;  %v727_v29 = vld [vmem:[%s7343_s16 + $0x688] sm:$0xff]  ;;  %v5338_v33 = vcombine.high %v599_v55, %v603_v28  ;;  %v5337_v39 = vcombine.low %v599_v55, %v603_v28 }
 0x189   : > { %2156 = vmatprep.subr.bf16.mxu0 %v5282_v37  ;;  %v731_v30 = vld [vmem:[%s7343_s16 + $0x6a8] sm:$0xff] }
 0x18a   : > { %2196 = vmatpush1.bf16.msra.mxu1 %v5401_v36  ;;  %v5466_v34 = vcombine.high %v727_v29, %v731_v30  ;;  %v607_v35 = vld [vmem:[%s7343_s16 + $0x2c8] sm:$0xff]  ;;  %v5465_v40 = vcombine.low %v727_v29, %v731_v30 }
 0x18b   : > { %2197 = vmatprep.subr.bf16.mxu1 %v5410_v38  ;;  %v611_v36 = vld [vmem:[%s7343_s16 + $0x2e8] sm:$0xff] }
 0x18c   : > { %2157 = vmatpush1.bf16.msra.mxu0 %v5281_v43  ;;  %v735_v37 = vld [vmem:[%s7343_s16 + $0x6c8] sm:$0xff]  ;;  %v5346_v41 = vcombine.high %v607_v35, %v611_v36  ;;  %v5345_v47 = vcombine.low %v607_v35, %v611_v36 }
 0x18d   : > { %2158 = vmatprep.subr.bf16.mxu0 %v5290_v45  ;;  %v739_v38 = vld [vmem:[%s7343_s16 + $0x6e8] sm:$0xff] }
 0x18e   : > { %2198 = vmatpush1.bf16.msra.mxu1 %v5409_v44  ;;  %v5474_v42 = vcombine.high %v735_v37, %v739_v38  ;;  %v615_v43 = vld [vmem:[%s7343_s16 + $0x308] sm:$0xff]  ;;  %v5473_v48 = vcombine.low %v735_v37, %v739_v38 }
 0x18f   : > { %2199 = vmatprep.subr.bf16.mxu1 %v5418_v46  ;;  %v619_v44 = vld [vmem:[%s7343_s16 + $0x328] sm:$0xff] }
 0x190   : > { %2159 = vmatpush1.bf16.msra.mxu0 %v5289_v51  ;;  %v743_v45 = vld [vmem:[%s7343_s16 + $0x708] sm:$0xff]  ;;  %v5354_v49 = vcombine.high %v615_v43, %v619_v44  ;;  %v5353_v57 = vcombine.low %v615_v43, %v619_v44 }
 0x191   : > { %2160 = vmatprep.subr.bf16.mxu0 %v5298_v53  ;;  %v747_v46 = vld [vmem:[%s7343_s16 + $0x728] sm:$0xff] }
 0x192   : > { %2200 = vmatpush1.bf16.msra.mxu1 %v5417_v52  ;;  %v5482_v50 = vcombine.high %v743_v45, %v747_v46  ;;  %v623_v51 = vld [vmem:[%s7343_s16 + $0x348] sm:$0xff]  ;;  %v5481_v58 = vcombine.low %v743_v45, %v747_v46 }
 0x193   : > { %2201 = vmatprep.subr.bf16.mxu1 %v5426_v56  ;;  %v627_v52 = vld [vmem:[%s7343_s16 + $0x368] sm:$0xff] }
 0x194   : > { %2161 = vmatpush1.bf16.msra.mxu0 %v5297_v63  ;;  %v751_v53 = vld [vmem:[%s7343_s16 + $0x748] sm:$0xff]  ;;  %v5362_v61 = vcombine.high %v623_v51, %v627_v52  ;;  %v5361_v3 = vcombine.low %v623_v51, %v627_v52 }
 0x195   : > { %2162 = vmatprep.subr.bf16.mxu0 %v5306_v1  ;;  %v755_v56 = vld [vmem:[%s7343_s16 + $0x768] sm:$0xff] }
 0x196   : > { %2202 = vmatpush1.bf16.msra.mxu1 %v5425_v0  ;;  %v5490_v62 = vcombine.high %v751_v53, %v755_v56  ;;  %v631_v63 = vld [vmem:[%s7343_s16 + $0x388] sm:$0xff]  ;;  %v5489_v4 = vcombine.low %v751_v53, %v755_v56 }
 0x197   : > { %2203 = vmatprep.subr.bf16.mxu1 %v5434_v2  ;;  %v635_v0 = vld [vmem:[%s7343_s16 + $0x3a8] sm:$0xff] }
 0x198   : > { %2163 = vmatpush1.bf16.msra.mxu0 %v5305_v7  ;;  %v759_v1 = vld [vmem:[%s7343_s16 + $0x788] sm:$0xff]  ;;  %v5370_v5 = vcombine.high %v631_v63, %v635_v0  ;;  %v5369_v11 = vcombine.low %v631_v63, %v635_v0 }
 0x199   : > { %2164 = vmatprep.subr.bf16.mxu0 %v5314_v9  ;;  %v763_v2 = vld [vmem:[%s7343_s16 + $0x7a8] sm:$0xff] }
 0x19a   : > { %2204 = vmatpush1.bf16.msra.mxu1 %v5433_v8  ;;  %v5498_v6 = vcombine.high %v759_v1, %v763_v2  ;;  %v639_v7 = vld [vmem:[%s7343_s16 + $0x3c8] sm:$0xff]  ;;  %v5497_v12 = vcombine.low %v759_v1, %v763_v2 }
 0x19b   : > { %2205 = vmatprep.subr.bf16.mxu1 %v5442_v10  ;;  %v643_v8 = vld [vmem:[%s7343_s16 + $0x3e8] sm:$0xff] }
 0x19c   : > { %2165 = vmatpush1.bf16.msra.mxu0 %v5313_v15  ;;  %v767_v9 = vld [vmem:[%s7343_s16 + $0x7c8] sm:$0xff]  ;;  %v5378_v13 = vcombine.high %v639_v7, %v643_v8  ;;  %v520_v15 = vld [vmem:[%s7343_s16 + $0x10] sm:$0xff]  ;;  %v5377_v21 = vcombine.low %v639_v7, %v643_v8 }
 0x19d   : > { %2166 = vmatprep.subr.bf16.mxu0 %v5322_v18  ;;  %v771_v10 = vld [vmem:[%s7343_s16 + $0x7e8] sm:$0xff]  ;;  %v648_v18 = vld [vmem:[%s7343_s16 + $0x410] sm:$0xff] }
 0x19e   : > { %2206 = vmatpush1.bf16.msra.mxu1 %v5441_v16  ;;  %v5506_v14 = vcombine.high %v767_v9, %v771_v10  ;;  %v524_v16 = vld [vmem:[%s7343_s16 + $0x30] sm:$0xff]  ;;  %v5505_v22 = vcombine.low %v767_v9, %v771_v10 }
 0x19f   : > { %2207 = vmatprep.subr.bf16.mxu1 %v5450_v19  ;;  %v652_v19 = vld [vmem:[%s7343_s16 + $0x430] sm:$0xff]  ;;  %v5260_v23 = vcombine.high %v520_v15, %v524_v16  ;;  %v5259_v55 = vcombine.low %v520_v15, %v524_v16 }
 0x1a0   : > { %2167 = vmatpush1.bf16.msra.mxu0 %v5321_v25  ;;  %v5388_v24 = vcombine.high %v648_v18, %v652_v19  ;;  %v528_v25 = vld [vmem:[%s7343_s16 + $0x50] sm:$0xff]  ;;  %v5387_v28 = vcombine.low %v648_v18, %v652_v19 }
 0x1a1   : > { %2168 = vmatprep.subr.bf16.mxu0 %v5330_v26  ;;  %v656_v26 = vld [vmem:[%s7343_s16 + $0x450] sm:$0xff] }
 0x1a2   : > { %2208 = vmatpush1.bf16.msra.mxu1 %v5449_v54  ;;  %v532_v54 = vld [vmem:[%s7343_s16 + $0x70] sm:$0xff] }
 0x1a3   : > { %2209 = vmatprep.subr.bf16.mxu1 %v5458_v27  ;;  %v660_v27 = vld [vmem:[%s7343_s16 + $0x470] sm:$0xff]  ;;  %v5268_v29 = vcombine.high %v528_v25, %v532_v54  ;;  %v5267_v35 = vcombine.low %v528_v25, %v532_v54 }
 0x1a4   : > { %2169 = vmatpush1.bf16.msra.mxu0 %v5329_v31  ;;  %v5396_v30 = vcombine.high %v656_v26, %v660_v27  ;;  %v536_v31 = vld [vmem:[%s7343_s16 + $0x90] sm:$0xff]  ;;  %v5395_v36 = vcombine.low %v656_v26, %v660_v27 }
 0x1a5   : > { %2170 = vmatprep.subr.bf16.mxu0 %v5338_v33  ;;  %v664_v33 = vld [vmem:[%s7343_s16 + $0x490] sm:$0xff] }
 0x1a6   : > { %2210 = vmatpush1.bf16.msra.mxu1 %v5457_v32  ;;  %v540_v32 = vld [vmem:[%s7343_s16 + $0xb0] sm:$0xff] }
 0x1a7   : > { %2211 = vmatprep.subr.bf16.mxu1 %v5466_v34  ;;  %v668_v34 = vld [vmem:[%s7343_s16 + $0x4b0] sm:$0xff]  ;;  %v5276_v37 = vcombine.high %v536_v31, %v540_v32  ;;  %v5275_v43 = vcombine.low %v536_v31, %v540_v32 }
 0x1a8   : > { %2171 = vmatpush1.bf16.msra.mxu0 %v5337_v39  ;;  %v5404_v38 = vcombine.high %v664_v33, %v668_v34  ;;  %v544_v39 = vld [vmem:[%s7343_s16 + $0xd0] sm:$0xff]  ;;  %v5403_v44 = vcombine.low %v664_v33, %v668_v34 }
 0x1a9   : > { %2172 = vmatprep.subr.bf16.mxu0 %v5346_v41  ;;  %v672_v41 = vld [vmem:[%s7343_s16 + $0x4d0] sm:$0xff] }
 0x1aa   : > { %2212 = vmatpush1.bf16.msra.mxu1 %v5465_v40  ;;  %v548_v40 = vld [vmem:[%s7343_s16 + $0xf0] sm:$0xff] }
 0x1ab   : > { %2213 = vmatprep.subr.bf16.mxu1 %v5474_v42  ;;  %v676_v42 = vld [vmem:[%s7343_s16 + $0x4f0] sm:$0xff]  ;;  %v5284_v45 = vcombine.high %v544_v39, %v548_v40  ;;  %v5283_v51 = vcombine.low %v544_v39, %v548_v40 }
 0x1ac   : > { %2173 = vmatpush1.bf16.msra.mxu0 %v5345_v47  ;;  %v5412_v46 = vcombine.high %v672_v41, %v676_v42  ;;  %v552_v47 = vld [vmem:[%s7343_s16 + $0x110] sm:$0xff]  ;;  %v5411_v52 = vcombine.low %v672_v41, %v676_v42 }
 0x1ad   : > { %2174 = vmatprep.subr.bf16.mxu0 %v5354_v49  ;;  %v680_v49 = vld [vmem:[%s7343_s16 + $0x510] sm:$0xff] }
 0x1ae   : > { %2214 = vmatpush1.bf16.msra.mxu1 %v5473_v48  ;;  %v556_v48 = vld [vmem:[%s7343_s16 + $0x130] sm:$0xff] }
 0x1af   : > { %2215 = vmatprep.subr.bf16.mxu1 %v5482_v50  ;;  %v684_v50 = vld [vmem:[%s7343_s16 + $0x530] sm:$0xff]  ;;  %v5292_v53 = vcombine.high %v552_v47, %v556_v48  ;;  %v5291_v63 = vcombine.low %v552_v47, %v556_v48 }
 0x1b0   : > { %2175 = vmatpush1.bf16.msra.mxu0 %v5353_v57  ;;  %v5420_v56 = vcombine.high %v680_v49, %v684_v50  ;;  %v560_v57 = vld [vmem:[%s7343_s16 + $0x150] sm:$0xff]  ;;  %v5419_v0 = vcombine.low %v680_v49, %v684_v50 }
 0x1b1   : > { %2176 = vmatprep.subr.bf16.mxu0 %v5362_v61  ;;  %v688_v61 = vld [vmem:[%s7343_s16 + $0x550] sm:$0xff] }
 0x1b2   : > { %2216 = vmatpush1.bf16.msra.mxu1 %v5481_v58  ;;  %v564_v58 = vld [vmem:[%s7343_s16 + $0x170] sm:$0xff] }
 0x1b3   : > { %2217 = vmatprep.subr.bf16.mxu1 %v5490_v62  ;;  %v692_v62 = vld [vmem:[%s7343_s16 + $0x570] sm:$0xff]  ;;  %v5300_v1 = vcombine.high %v560_v57, %v564_v58  ;;  %v5299_v7 = vcombine.low %v560_v57, %v564_v58 }
 0x1b4   : > { %2177 = vmatpush1.bf16.msra.mxu0 %v5361_v3  ;;  %v5428_v2 = vcombine.high %v688_v61, %v692_v62  ;;  %v568_v3 = vld [vmem:[%s7343_s16 + $0x190] sm:$0xff]  ;;  %v5427_v8 = vcombine.low %v688_v61, %v692_v62 }
 0x1b5   : > { %2178 = vmatprep.subr.bf16.mxu0 %v5370_v5  ;;  %v696_v5 = vld [vmem:[%s7343_s16 + $0x590] sm:$0xff] }
 0x1b6   : > { %2218 = vmatpush1.bf16.msra.mxu1 %v5489_v4  ;;  %v572_v4 = vld [vmem:[%s7343_s16 + $0x1b0] sm:$0xff] }
 0x1b7   : > { %2219 = vmatprep.subr.bf16.mxu1 %v5498_v6  ;;  %v700_v6 = vld [vmem:[%s7343_s16 + $0x5b0] sm:$0xff]  ;;  %v5308_v9 = vcombine.high %v568_v3, %v572_v4  ;;  %v5307_v15 = vcombine.low %v568_v3, %v572_v4 }
 0x1b8   : > { %2179 = vmatpush1.bf16.msra.mxu0 %v5369_v11  ;;  %v5436_v10 = vcombine.high %v696_v5, %v700_v6  ;;  %v576_v11 = vld [vmem:[%s7343_s16 + $0x1d0] sm:$0xff]  ;;  %v5435_v16 = vcombine.low %v696_v5, %v700_v6 }
 0x1b9   : > { %2180 = vmatprep.subr.bf16.mxu0 %v5378_v13  ;;  %v704_v13 = vld [vmem:[%s7343_s16 + $0x5d0] sm:$0xff] }
 0x1ba   : > { %2220 = vmatpush1.bf16.msra.mxu1 %v5497_v12  ;;  %v580_v12 = vld [vmem:[%s7343_s16 + $0x1f0] sm:$0xff] }
 0x1bb   : > { %2221 = vmatprep.subr.bf16.mxu1 %v5506_v14  ;;  %v708_v14 = vld [vmem:[%s7343_s16 + $0x5f0] sm:$0xff]  ;;  %v5316_v18 = vcombine.high %v576_v11, %v580_v12  ;;  %v5315_v25 = vcombine.low %v576_v11, %v580_v12 }
 0x1bc   : > { %2181 = vmatpush1.bf16.msra.mxu0 %v5377_v21  ;;  %v5444_v19 = vcombine.high %v704_v13, %v708_v14  ;;  %v584_v21 = vld [vmem:[%s7343_s16 + $0x210] sm:$0xff]  ;;  %v5443_v54 = vcombine.low %v704_v13, %v708_v14 }
 0x1bd   : > { %2232 = vmatprep.subr.bf16.mxu0 %v5260_v23  ;;  %v712_v23 = vld [vmem:[%s7343_s16 + $0x610] sm:$0xff] }
 0x1be   : > { %2222 = vmatpush1.bf16.msra.mxu1 %v5505_v22  ;;  %v588_v22 = vld [vmem:[%s7343_s16 + $0x230] sm:$0xff] }
 0x1bf   : > { %2273 = vmatprep.subr.bf16.mxu1 %v5388_v24  ;;  %2183 = vmatmul.mubr.bf16.vlgmr.msra.gmra.mrb[4].mxu0 %v7468_v17  ;;  %v716_v24 = vld [vmem:[%s7343_s16 + $0x630] sm:$0xff]  ;;  %v5324_v26 = vcombine.high %v584_v21, %v588_v22  ;;  %v5323_v31 = vcombine.low %v584_v21, %v588_v22 }
 0x1c0   : > { %2233 = vmatpush1.bf16.msra.mxu0 %v5259_v55  ;;  %2264 = vmatprep.mubr.bf16.mxu0 %v7418_v59  ;;  %v5452_v27 = vcombine.high %v712_v23, %v716_v24  ;;  %v592_v55 = vld [vmem:[%s7343_s16 + $0x250] sm:$0xff]  ;;  %v5451_v32 = vcombine.low %v712_v23, %v716_v24 }
 0x1c1   : > { %2224 = vmatmul.mubr.bf16.vlgmr.msra.gmra.mrb[4].mxu1 %v7474_v20  ;;  %2234 = vmatprep.subr.bf16.mxu0 %v5268_v29  ;;  %v720_v29 = vld [vmem:[%s7343_s16 + $0x650] sm:$0xff] }
 0x1c2   : > { %2274 = vmatpush1.bf16.msra.mxu1 %v5387_v28  ;;  %2305 = vmatprep.mubr.bf16.mxu1 %v7422_v60  ;;  %v596_v28 = vld [vmem:[%s7343_s16 + $0x270] sm:$0xff] }
 0x1c3   : > { %2275 = vmatprep.subr.bf16.mxu1 %v5396_v30  ;;  %v724_v30 = vld [vmem:[%s7343_s16 + $0x670] sm:$0xff]  ;;  %v5332_v33 = vcombine.high %v592_v55, %v596_v28  ;;  %v5331_v39 = vcombine.low %v592_v55, %v596_v28 }
 0x1c4   : > { %2235 = vmatpush1.bf16.msra.mxu0 %v5267_v35  ;;  %v5460_v34 = vcombine.high %v720_v29, %v724_v30  ;;  %v600_v35 = vld [vmem:[%s7343_s16 + $0x290] sm:$0xff]  ;;  %v5459_v40 = vcombine.low %v720_v29, %v724_v30 }
 0x1c5   : > { %2236 = vmatprep.subr.bf16.mxu0 %v5276_v37  ;;  %v728_v37 = vld [vmem:[%s7343_s16 + $0x690] sm:$0xff] }
 0x1c6   : > { %2276 = vmatpush1.bf16.msra.mxu1 %v5395_v36  ;;  %v604_v36 = vld [vmem:[%s7343_s16 + $0x2b0] sm:$0xff] }
 0x1c7   : > { %2277 = vmatprep.subr.bf16.mxu1 %v5404_v38  ;;  %v732_v38 = vld [vmem:[%s7343_s16 + $0x6b0] sm:$0xff]  ;;  %v5340_v41 = vcombine.high %v600_v35, %v604_v36  ;;  %v5339_v47 = vcombine.low %v600_v35, %v604_v36 }
 0x1c8   : > { %2237 = vmatpush1.bf16.msra.mxu0 %v5275_v43  ;;  %v5468_v42 = vcombine.high %v728_v37, %v732_v38  ;;  %v608_v43 = vld [vmem:[%s7343_s16 + $0x2d0] sm:$0xff]  ;;  %v5467_v48 = vcombine.low %v728_v37, %v732_v38 }
 0x1c9   : > { %2238 = vmatprep.subr.bf16.mxu0 %v5284_v45  ;;  %v736_v45 = vld [vmem:[%s7343_s16 + $0x6d0] sm:$0xff] }
 0x1ca   : > { %2278 = vmatpush1.bf16.msra.mxu1 %v5403_v44  ;;  %v612_v44 = vld [vmem:[%s7343_s16 + $0x2f0] sm:$0xff] }
 0x1cb   : > { %2279 = vmatprep.subr.bf16.mxu1 %v5412_v46  ;;  %v740_v46 = vld [vmem:[%s7343_s16 + $0x6f0] sm:$0xff]  ;;  %v5348_v49 = vcombine.high %v608_v43, %v612_v44  ;;  %v5347_v57 = vcombine.low %v608_v43, %v612_v44 }
 0x1cc   : > { %2239 = vmatpush1.bf16.msra.mxu0 %v5283_v51  ;;  %v5476_v50 = vcombine.high %v736_v45, %v740_v46  ;;  %v616_v51 = vld [vmem:[%s7343_s16 + $0x310] sm:$0xff]  ;;  %v5475_v58 = vcombine.low %v736_v45, %v740_v46 }
 0x1cd   : > { %2240 = vmatprep.subr.bf16.mxu0 %v5292_v53  ;;  %v744_v53 = vld [vmem:[%s7343_s16 + $0x710] sm:$0xff] }
 0x1ce   : > { %2280 = vmatpush1.bf16.msra.mxu1 %v5411_v52  ;;  %v620_v52 = vld [vmem:[%s7343_s16 + $0x330] sm:$0xff] }
 0x1cf   : > { %2281 = vmatprep.subr.bf16.mxu1 %v5420_v56  ;;  %v748_v56 = vld [vmem:[%s7343_s16 + $0x730] sm:$0xff]  ;;  %v5356_v61 = vcombine.high %v616_v51, %v620_v52  ;;  %v5355_v3 = vcombine.low %v616_v51, %v620_v52 }
 0x1d0   : > { %2241 = vmatpush1.bf16.msra.mxu0 %v5291_v63  ;;  %v5484_v62 = vcombine.high %v744_v53, %v748_v56  ;;  %v624_v63 = vld [vmem:[%s7343_s16 + $0x350] sm:$0xff]  ;;  %v5483_v4 = vcombine.low %v744_v53, %v748_v56 }
 0x1d1   : > { %2242 = vmatprep.subr.bf16.mxu0 %v5300_v1  ;;  %v752_v1 = vld [vmem:[%s7343_s16 + $0x750] sm:$0xff] }
 0x1d2   : > { %2282 = vmatpush1.bf16.msra.mxu1 %v5419_v0  ;;  %v628_v0 = vld [vmem:[%s7343_s16 + $0x370] sm:$0xff] }
 0x1d3   : > { %2283 = vmatprep.subr.bf16.mxu1 %v5428_v2  ;;  %v756_v2 = vld [vmem:[%s7343_s16 + $0x770] sm:$0xff]  ;;  %v5364_v5 = vcombine.high %v624_v63, %v628_v0  ;;  %v5363_v11 = vcombine.low %v624_v63, %v628_v0 }
 0x1d4   : > { %2243 = vmatpush1.bf16.msra.mxu0 %v5299_v7  ;;  %v5492_v6 = vcombine.high %v752_v1, %v756_v2  ;;  %v632_v7 = vld [vmem:[%s7343_s16 + $0x390] sm:$0xff]  ;;  %v5491_v12 = vcombine.low %v752_v1, %v756_v2  ;;  %v561_v1 = vld [vmem:[%s7343_s16 + $0x158] sm:$0xff] }
 0x1d5   : > { %2244 = vmatprep.subr.bf16.mxu0 %v5308_v9  ;;  %v760_v9 = vld [vmem:[%s7343_s16 + $0x790] sm:$0xff]  ;;  %v565_v2 = vld [vmem:[%s7343_s16 + $0x178] sm:$0xff] }
 0x1d6   : > { %2284 = vmatpush1.bf16.msra.mxu1 %v5427_v8  ;;  %v636_v8 = vld [vmem:[%s7343_s16 + $0x3b0] sm:$0xff] }
 0x1d7   : > { %2285 = vmatprep.subr.bf16.mxu1 %v5436_v10  ;;  %v764_v10 = vld [vmem:[%s7343_s16 + $0x7b0] sm:$0xff]  ;;  %v5372_v13 = vcombine.high %v632_v7, %v636_v8  ;;  %v5371_v21 = vcombine.low %v632_v7, %v636_v8  ;;  %v5302_v7 = vcombine.high %v561_v1, %v565_v2 }
 0x1d8   : > { %2245 = vmatpush1.bf16.msra.mxu0 %v5307_v15  ;;  %v5500_v14 = vcombine.high %v760_v9, %v764_v10  ;;  %v640_v15 = vld [vmem:[%s7343_s16 + $0x3d0] sm:$0xff]  ;;  %v5499_v22 = vcombine.low %v760_v9, %v764_v10  ;;  %v569_v9 = vld [vmem:[%s7343_s16 + $0x198] sm:$0xff] }
 0x1d9   : > { %2246 = vmatprep.subr.bf16.mxu0 %v5316_v18  ;;  %v768_v18 = vld [vmem:[%s7343_s16 + $0x7d0] sm:$0xff]  ;;  %v573_v10 = vld [vmem:[%s7343_s16 + $0x1b8] sm:$0xff] }
 0x1da   : > { %2286 = vmatpush1.bf16.msra.mxu1 %v5435_v16  ;;  %v644_v16 = vld [vmem:[%s7343_s16 + $0x3f0] sm:$0xff] }
 0x1db   : > { %2287 = vmatprep.subr.bf16.mxu1 %v5444_v19  ;;  %v772_v19 = vld [vmem:[%s7343_s16 + $0x7f0] sm:$0xff]  ;;  %v5380_v23 = vcombine.high %v640_v15, %v644_v16  ;;  %v5379_v55 = vcombine.low %v640_v15, %v644_v16  ;;  %v5310_v15 = vcombine.high %v569_v9, %v573_v10 }
 0x1dc   : > { %2247 = vmatpush1.bf16.msra.mxu0 %v5315_v25  ;;  %v5508_v24 = vcombine.high %v768_v18, %v772_v19  ;;  %v521_v25 = vld [vmem:[%s7343_s16 + $0x18] sm:$0xff]  ;;  %v5507_v28 = vcombine.low %v768_v18, %v772_v19 }
 0x1dd   : > { %2248 = vmatprep.subr.bf16.mxu0 %v5324_v26  ;;  %v649_v26 = vld [vmem:[%s7343_s16 + $0x418] sm:$0xff] }
 0x1de   : > { %2288 = vmatpush1.bf16.msra.mxu1 %v5443_v54  ;;  %v525_v54 = vld [vmem:[%s7343_s16 + $0x38] sm:$0xff] }
 0x1df   : > { %2289 = vmatprep.subr.bf16.mxu1 %v5452_v27  ;;  %v653_v27 = vld [vmem:[%s7343_s16 + $0x438] sm:$0xff]  ;;  %v5262_v29 = vcombine.high %v521_v25, %v525_v54  ;;  %v5261_v35 = vcombine.low %v521_v25, %v525_v54 }
 0x1e0   : > { %2249 = vmatpush1.bf16.msra.mxu0 %v5323_v31  ;;  %v5390_v30 = vcombine.high %v649_v26, %v653_v27  ;;  %v529_v31 = vld [vmem:[%s7343_s16 + $0x58] sm:$0xff]  ;;  %v5389_v36 = vcombine.low %v649_v26, %v653_v27 }
 0x1e1   : > { %2250 = vmatprep.subr.bf16.mxu0 %v5332_v33  ;;  %v657_v33 = vld [vmem:[%s7343_s16 + $0x458] sm:$0xff] }
 0x1e2   : > { %2290 = vmatpush1.bf16.msra.mxu1 %v5451_v32  ;;  %v533_v32 = vld [vmem:[%s7343_s16 + $0x78] sm:$0xff] }
 0x1e3   : > { %2291 = vmatprep.subr.bf16.mxu1 %v5460_v34  ;;  %v661_v34 = vld [vmem:[%s7343_s16 + $0x478] sm:$0xff]  ;;  %v5270_v37 = vcombine.high %v529_v31, %v533_v32  ;;  %v5269_v43 = vcombine.low %v529_v31, %v533_v32 }
 0x1e4   : > { %2251 = vmatpush1.bf16.msra.mxu0 %v5331_v39  ;;  %v5398_v38 = vcombine.high %v657_v33, %v661_v34  ;;  %v537_v39 = vld [vmem:[%s7343_s16 + $0x98] sm:$0xff]  ;;  %v5397_v44 = vcombine.low %v657_v33, %v661_v34 }
 0x1e5   : > { %2252 = vmatprep.subr.bf16.mxu0 %v5340_v41  ;;  %v665_v41 = vld [vmem:[%s7343_s16 + $0x498] sm:$0xff] }
 0x1e6   : > { %2292 = vmatpush1.bf16.msra.mxu1 %v5459_v40  ;;  %v541_v40 = vld [vmem:[%s7343_s16 + $0xb8] sm:$0xff] }
 0x1e7   : > { %2293 = vmatprep.subr.bf16.mxu1 %v5468_v42  ;;  %v669_v42 = vld [vmem:[%s7343_s16 + $0x4b8] sm:$0xff]  ;;  %v5278_v45 = vcombine.high %v537_v39, %v541_v40  ;;  %v5277_v51 = vcombine.low %v537_v39, %v541_v40 }
 0x1e8   : > { %2253 = vmatpush1.bf16.msra.mxu0 %v5339_v47  ;;  %v5406_v46 = vcombine.high %v665_v41, %v669_v42  ;;  %v545_v47 = vld [vmem:[%s7343_s16 + $0xd8] sm:$0xff]  ;;  %v5405_v52 = vcombine.low %v665_v41, %v669_v42 }
 0x1e9   : > { %2254 = vmatprep.subr.bf16.mxu0 %v5348_v49  ;;  %v673_v49 = vld [vmem:[%s7343_s16 + $0x4d8] sm:$0xff] }
 0x1ea   : > { %2294 = vmatpush1.bf16.msra.mxu1 %v5467_v48  ;;  %v549_v48 = vld [vmem:[%s7343_s16 + $0xf8] sm:$0xff] }
 0x1eb   : > { %2295 = vmatprep.subr.bf16.mxu1 %v5476_v50  ;;  %v677_v50 = vld [vmem:[%s7343_s16 + $0x4f8] sm:$0xff]  ;;  %v5286_v53 = vcombine.high %v545_v47, %v549_v48 }
 0x1ec   : > { %2255 = vmatpush1.bf16.msra.mxu0 %v5347_v57  ;;  %v5414_v56 = vcombine.high %v673_v49, %v677_v50  ;;  %v553_v57 = vld [vmem:[%s7343_s16 + $0x118] sm:$0xff] }
 0x1ed   : > { %2256 = vmatprep.subr.bf16.mxu0 %v5356_v61  ;;  %v681_v61 = vld [vmem:[%s7343_s16 + $0x518] sm:$0xff] }
 0x1ee   : > { %2296 = vmatpush1.bf16.msra.mxu1 %v5475_v58  ;;  %v557_v58 = vld [vmem:[%s7343_s16 + $0x138] sm:$0xff] }
 0x1ef   : > { %2297 = vmatprep.subr.bf16.mxu1 %v5484_v62  ;;  %v5285_v62 = vcombine.low %v545_v47, %v549_v48  ;;  %v5294_v63 = vcombine.high %v553_v57, %v557_v58  ;;  %v577_v18 = vld [vmem:[%s7343_s16 + $0x1d8] sm:$0xff] }
 0x1f0   : > { %2257 = vmatpush1.bf16.msra.mxu0 %v5355_v3  ;;  %v689_v3 = vld [vmem:[%s7343_s16 + $0x558] sm:$0xff] }
 0x1f1   : > { %2258 = vmatprep.subr.bf16.mxu0 %v5364_v5  ;;  %v5293_v5 = vcombine.low %v553_v57, %v557_v58  ;;  %v581_v19 = vld [vmem:[%s7343_s16 + $0x1f8] sm:$0xff] }
 0x1f2   : > { %2298 = vmatpush1.bf16.msra.mxu1 %v5483_v4  ;;  %v693_v4 = vld [vmem:[%s7343_s16 + $0x578] sm:$0xff]  ;;  %v5318_v25 = vcombine.high %v577_v18, %v581_v19 }
 0x1f3   : > { %2299 = vmatprep.subr.bf16.mxu1 %v5492_v6  ;;  %v5430_v8 = vcombine.high %v689_v3, %v693_v4  ;;  %v585_v26 = vld [vmem:[%s7343_s16 + $0x218] sm:$0xff] }
 0x1f4   : > { %2259 = vmatpush1.bf16.msra.mxu0 %v5363_v11  ;;  %v697_v11 = vld [vmem:[%s7343_s16 + $0x598] sm:$0xff] }
 0x1f5   : > { %2260 = vmatprep.subr.bf16.mxu0 %v5372_v13  ;;  %v5301_v13 = vcombine.low %v561_v1, %v565_v2  ;;  %v589_v27 = vld [vmem:[%s7343_s16 + $0x238] sm:$0xff] }
 0x1f6   : > { %2300 = vmatpush1.bf16.msra.mxu1 %v5491_v12  ;;  %v701_v12 = vld [vmem:[%s7343_s16 + $0x5b8] sm:$0xff]  ;;  %v5326_v31 = vcombine.high %v585_v26, %v589_v27 }
 0x1f7   : > { %2301 = vmatprep.subr.bf16.mxu1 %v5500_v14  ;;  %v5429_v14 = vcombine.low %v689_v3, %v693_v4  ;;  %v5438_v16 = vcombine.high %v697_v11, %v701_v12  ;;  %v593_v33 = vld [vmem:[%s7343_s16 + $0x258] sm:$0xff] }
 0x1f8   : > { %2261 = vmatpush1.bf16.msra.mxu0 %v5371_v21  ;;  %v705_v21 = vld [vmem:[%s7343_s16 + $0x5d8] sm:$0xff] }
 0x1f9   : > { %2262 = vmatprep.subr.bf16.mxu0 %v5380_v23  ;;  %v5309_v23 = vcombine.low %v569_v9, %v573_v10  ;;  %v597_v34 = vld [vmem:[%s7343_s16 + $0x278] sm:$0xff] }
 0x1fa   : > { %2302 = vmatpush1.bf16.msra.mxu1 %v5499_v22  ;;  %v709_v22 = vld [vmem:[%s7343_s16 + $0x5f8] sm:$0xff]  ;;  %v5334_v39 = vcombine.high %v593_v33, %v597_v34 }
 0x1fb   : > { %2303 = vmatprep.subr.bf16.mxu1 %v5508_v24  ;;  %v5437_v24 = vcombine.low %v697_v11, %v701_v12  ;;  %v5446_v54 = vcombine.high %v705_v21, %v709_v22  ;;  %v601_v41 = vld [vmem:[%s7343_s16 + $0x298] sm:$0xff] }
 0x1fc   : > { %2263 = vmatpush1.bf16.msra.mxu0 %v5379_v55  ;;  %v713_v55 = vld [vmem:[%s7343_s16 + $0x618] sm:$0xff] }
 0x1fd   : > { %2314 = vmatprep.subr.bf16.mxu0 %v5262_v29  ;;  %v5317_v29 = vcombine.low %v577_v18, %v581_v19  ;;  %v605_v42 = vld [vmem:[%s7343_s16 + $0x2b8] sm:$0xff] }
 0x1fe   : > { %2304 = vmatpush1.bf16.msra.mxu1 %v5507_v28  ;;  %v717_v28 = vld [vmem:[%s7343_s16 + $0x638] sm:$0xff]  ;;  %v5342_v47 = vcombine.high %v601_v41, %v605_v42 }
 0x1ff   : > { %2355 = vmatprep.subr.bf16.mxu1 %v5390_v30  ;;  %2265 = vmatmul.mubr.bf16.vlgmr.msra.gmra.mrb[8].mxu0 %v7468_v17  ;;  %v5445_v30 = vcombine.low %v705_v21, %v709_v22  ;;  %v5454_v32 = vcombine.high %v713_v55, %v717_v28  ;;  %v625_v3 = vld [vmem:[%s7343_s16 + $0x358] sm:$0xff] }
 0x200   : > { %2315 = vmatpush1.bf16.msra.mxu0 %v5261_v35  ;;  %2346 = vmatprep.mubr.bf16.mxu0 %v7418_v59  ;;  %v685_v59 = vld [vmem:[%s7343_s16 + $0x538] sm:$0xff] }
 0x201   : > { %2306 = vmatmul.mubr.bf16.vlgmr.msra.gmra.mrb[8].mxu1 %v7474_v20  ;;  %2316 = vmatprep.subr.bf16.mxu0 %v5270_v37  ;;  %v5422_v0 = vcombine.high %v681_v61, %v685_v59  ;;  %v5421_v6 = vcombine.low %v681_v61, %v685_v59  ;;  %v721_v35 = vld [vmem:[%s7343_s16 + $0x658] sm:$0xff]  ;;  %v5325_v37 = vcombine.low %v585_v26, %v589_v27 }
 0x202   : > { %2356 = vmatpush1.bf16.msra.mxu1 %v5389_v36  ;;  %2387 = vmatprep.mubr.bf16.mxu1 %v7422_v60  ;;  %v5413_v60 = vcombine.low %v673_v49, %v677_v50  ;;  %v725_v36 = vld [vmem:[%s7343_s16 + $0x678] sm:$0xff] }
 0x203   : > { %2357 = vmatprep.subr.bf16.mxu1 %v5398_v38  ;;  %v5453_v38 = vcombine.low %v713_v55, %v717_v28  ;;  %v5462_v40 = vcombine.high %v721_v35, %v725_v36  ;;  %v609_v49 = vld [vmem:[%s7343_s16 + $0x2d8] sm:$0xff] }
 0x204   : > { %2317 = vmatpush1.bf16.msra.mxu0 %v5269_v43  ;;  %v729_v43 = vld [vmem:[%s7343_s16 + $0x698] sm:$0xff] }
 0x205   : > { %2318 = vmatprep.subr.bf16.mxu0 %v5278_v45  ;;  %v5333_v45 = vcombine.low %v593_v33, %v597_v34  ;;  %v613_v50 = vld [vmem:[%s7343_s16 + $0x2f8] sm:$0xff]  ;;  %v509_v34 = vld [vmem:[#allocation2 + $0x8] sm:$0xff] }
 0x206   : > { %2358 = vmatpush1.bf16.msra.mxu1 %v5397_v44  ;;  %v733_v44 = vld [vmem:[%s7343_s16 + $0x6b8] sm:$0xff]  ;;  %v5350_v57 = vcombine.high %v609_v49, %v613_v50 }
 0x207   : > { %2359 = vmatprep.subr.bf16.mxu1 %v5406_v46  ;;  %v5461_v46 = vcombine.low %v721_v35, %v725_v36  ;;  %v5470_v48 = vcombine.high %v729_v43, %v733_v44  ;;  %v617_v61 = vld [vmem:[%s7343_s16 + $0x318] sm:$0xff] }
 0x208   : > { %2319 = vmatpush1.bf16.msra.mxu0 %v5277_v51  ;;  %v737_v51 = vld [vmem:[%s7343_s16 + $0x6d8] sm:$0xff] }
 0x209   : > { %2320 = vmatprep.subr.bf16.mxu0 %v5286_v53  ;;  %v5341_v53 = vcombine.low %v601_v41, %v605_v42  ;;  %v621_v59 = vld [vmem:[%s7343_s16 + $0x338] sm:$0xff] }
 0x20a   : > { %2360 = vmatpush1.bf16.msra.mxu1 %v5405_v52  ;;  %v741_v52 = vld [vmem:[%s7343_s16 + $0x6f8] sm:$0xff]  ;;  %v5358_v1 = vcombine.high %v617_v61, %v621_v59 }
 0x20b   : > { %2361 = vmatprep.subr.bf16.mxu1 %v5414_v56  ;;  %v5469_v56 = vcombine.low %v729_v43, %v733_v44  ;;  %v5478_v58 = vcombine.high %v737_v51, %v741_v52  ;;  %v629_v4 = vld [vmem:[%s7343_s16 + $0x378] sm:$0xff] }
 0x20c   : > { %2321 = vmatpush1.bf16.msra.mxu0 %v5285_v62  ;;  %v745_v62 = vld [vmem:[%s7343_s16 + $0x718] sm:$0xff]  ;;  %v5366_v9 = vcombine.high %v625_v3, %v629_v4 }
 0x20d   : > { %2322 = vmatprep.subr.bf16.mxu0 %v5294_v63  ;;  %v5349_v63 = vcombine.low %v609_v49, %v613_v50  ;;  %v633_v11 = vld [vmem:[%s7343_s16 + $0x398] sm:$0xff] }
 0x20e   : > { %2362 = vmatpush1.bf16.msra.mxu1 %v5413_v60  ;;  %v749_v60 = vld [vmem:[%s7343_s16 + $0x738] sm:$0xff] }
 0x20f   : > { %2363 = vmatprep.subr.bf16.mxu1 %v5422_v0  ;;  %v5477_v0 = vcombine.low %v737_v51, %v741_v52  ;;  %v5486_v2 = vcombine.high %v745_v62, %v749_v60  ;;  %v637_v12 = vld [vmem:[%s7343_s16 + $0x3b8] sm:$0xff] }
 0x210   : > { %2323 = vmatpush1.bf16.msra.mxu0 %v5293_v5  ;;  %v753_v5 = vld [vmem:[%s7343_s16 + $0x758] sm:$0xff]  ;;  %v5374_v18 = vcombine.high %v633_v11, %v637_v12 }
 0x211   : > { %2324 = vmatprep.subr.bf16.mxu0 %v5302_v7  ;;  %v5357_v7 = vcombine.low %v617_v61, %v621_v59  ;;  %v641_v21 = vld [vmem:[%s7343_s16 + $0x3d8] sm:$0xff] }
 0x212   : > { %2364 = vmatpush1.bf16.msra.mxu1 %v5421_v6  ;;  %v757_v6 = vld [vmem:[%s7343_s16 + $0x778] sm:$0xff] }
 0x213   : > { %2365 = vmatprep.subr.bf16.mxu1 %v5430_v8  ;;  %v5485_v8 = vcombine.low %v745_v62, %v749_v60  ;;  %v5494_v10 = vcombine.high %v753_v5, %v757_v6  ;;  %v645_v22 = vld [vmem:[%s7343_s16 + $0x3f8] sm:$0xff]  ;;  %v513_v60 = vld [vmem:[#allocation2 + $0x28] sm:$0xff] }
 0x214   : > { %2325 = vmatpush1.bf16.msra.mxu0 %v5301_v13  ;;  %v761_v13 = vld [vmem:[%s7343_s16 + $0x798] sm:$0xff]  ;;  %v5382_v26 = vcombine.high %v641_v21, %v645_v22  ;;  %v5381_v55 = vcombine.low %v641_v21, %v645_v22 }
 0x215   : > { %2326 = vmatprep.subr.bf16.mxu0 %v5310_v15  ;;  %v5365_v15 = vcombine.low %v625_v3, %v629_v4 }
 0x216   : > { %2366 = vmatpush1.bf16.msra.mxu1 %v5429_v14  ;;  %v765_v14 = vld [vmem:[%s7343_s16 + $0x7b8] sm:$0xff] }
 0x217   : > { %2367 = vmatprep.subr.bf16.mxu1 %v5438_v16  ;;  %v5493_v16 = vcombine.low %v753_v5, %v757_v6  ;;  %v5502_v19 = vcombine.high %v761_v13, %v765_v14 }
 0x218   : > { %2327 = vmatpush1.bf16.msra.mxu0 %v5309_v23  ;;  %v769_v23 = vld [vmem:[%s7343_s16 + $0x7d8] sm:$0xff] }
 0x219   : > { %2328 = vmatprep.subr.bf16.mxu0 %v5318_v25  ;;  %v5373_v25 = vcombine.low %v633_v11, %v637_v12  ;;  %v515_v12 = vld [vmem:[#allocation2 + $0x38] sm:$0xff] }
 0x21a   : > { %2368 = vmatpush1.bf16.msra.mxu1 %v5437_v24  ;;  %v773_v24 = vld [vmem:[%s7343_s16 + $0x7f8] sm:$0xff]  ;;  %s7880_s16 = sld [smem:[#allocation24_spill]] }
 0x21b   : > { %2369 = vmatprep.subr.bf16.mxu1 %v5446_v54  ;;  %v5501_v54 = vcombine.low %v761_v13, %v765_v14  ;;  %v5510_v27 = vcombine.high %v769_v23, %v773_v24  ;;  %v5509_v28 = vcombine.low %v769_v23, %v773_v24 }
 0x21c   : > { %2329 = vmatpush1.bf16.msra.mxu0 %v5317_v29 }
 0x21d   : > { %2330 = vmatprep.subr.bf16.mxu0 %v5326_v31 }
 0x21e   : > { %2370 = vmatpush1.bf16.msra.mxu1 %v5445_v30  ;;  %v508_v30 = vld [vmem:[#allocation2] sm:$0xff] }
 0x21f   : > { %2371 = vmatprep.subr.bf16.mxu1 %v5454_v32 }
 0x220   : > { %2331 = vmatpush1.bf16.msra.mxu0 %v5325_v37  ;;  %p5511_p12 = scmp.ne.s32.totalorder %s7880_s16, 1 }
 0x221   : > { %2332 = vmatprep.subr.bf16.mxu0 %v5334_v39  ;;  %v6095_v23 = vld [vmem:[#allocation8 + $0x4] ss:$16 sps:$4 sm:$0xff] (!%p5511_p12)  }
 0x222   : > { %2372 = vmatpush1.bf16.msra.mxu1 %v5453_v38  ;;  %v6097_v24 = vld [vmem:[#allocation8 + $0x204] ss:$16 sps:$4 sm:$0xff] (!%p5511_p12)  }
 0x223   : > { %2373 = vmatprep.subr.bf16.mxu1 %v5462_v40 }
 0x224   : > { %2333 = vmatpush1.bf16.msra.mxu0 %v5333_v45 }
 0x225   : > { %2334 = vmatprep.subr.bf16.mxu0 %v5342_v47 }
 0x226   : > { %2374 = vmatpush1.bf16.msra.mxu1 %v5461_v46  ;;  %v511_v46 = vld [vmem:[#allocation2 + $0x18] sm:$0xff] }
 0x227   : > { %2375 = vmatprep.subr.bf16.mxu1 %v5470_v48 }
 0x228   : > { %2335 = vmatpush1.bf16.msra.mxu0 %v5341_v53 }
 0x229   : > { %2336 = vmatprep.subr.bf16.mxu0 %v5350_v57 }
 0x22a   : > { %2376 = vmatpush1.bf16.msra.mxu1 %v5469_v56 }
 0x22b   : > { %2377 = vmatprep.subr.bf16.mxu1 %v5478_v58  ;;  %v512_v58 = vld [vmem:[#allocation2 + $0x20] sm:$0xff] }
 0x22c   : > { %2337 = vmatpush1.bf16.msra.mxu0 %v5349_v63 }
 0x22d   : > { %2338 = vmatprep.subr.bf16.mxu0 %v5358_v1 }
 0x22e   : > { %2378 = vmatpush1.bf16.msra.mxu1 %v5477_v0 }
 0x22f   : > { %2379 = vmatprep.subr.bf16.mxu1 %v5486_v2 }
 0x230   : > { %2339 = vmatpush1.bf16.msra.mxu0 %v5357_v7 }
 0x231   : > { %2340 = vmatprep.subr.bf16.mxu0 %v5366_v9 }
 0x232   : > { %2380 = vmatpush1.bf16.msra.mxu1 %v5485_v8  ;;  %v514_v8 = vld [vmem:[#allocation2 + $0x30] sm:$0xff] }
 0x233   : > { %2381 = vmatprep.subr.bf16.mxu1 %v5494_v10 }
 0x234   : > { %2341 = vmatpush1.bf16.msra.mxu0 %v5365_v15 }
 0x235   : > { %2342 = vmatprep.subr.bf16.mxu0 %v5374_v18 }
 0x236   : > { %2382 = vmatpush1.bf16.msra.mxu1 %v5493_v16 }
 0x237   : > { %2383 = vmatprep.subr.bf16.mxu1 %v5502_v19 }
 0x238   : > { %2343 = vmatpush1.bf16.msra.mxu0 %v5373_v25  ;;  %v6099_v25 = vld [vmem:[#allocation8] ss:$16 sps:$4 sm:$0xff] (!%p5511_p12)  }
 0x239   : > { %2344 = vmatprep.subr.bf16.mxu0 %v5382_v26  ;;  %v6101_v26 = vld [vmem:[#allocation8 + $0x24] ss:$16 sps:$4 sm:$0xff] (!%p5511_p12)  }
 0x23a   : > { %2384 = vmatpush1.bf16.msra.mxu1 %v5501_v54  ;;  %v6100_v54 = vld [vmem:[#allocation8 + $0x200] ss:$16 sps:$4 sm:$0xff] (!%p5511_p12)  }
 0x23b   : > { %2385 = vmatprep.subr.bf16.mxu1 %v5510_v27  ;;  %v6103_v27 = vld [vmem:[#allocation8 + $0x224] ss:$16 sps:$4 sm:$0xff] (!%p5511_p12)  }
 0x23c   : > { %2345 = vmatpush1.bf16.msra.mxu0 %v5381_v55  ;;  %v6105_v55 = vld [vmem:[#allocation8 + $0x20] ss:$16 sps:$4 sm:$0xff] (!%p5511_p12)  }
 0x23d   : > { %4089 = vmatprep.subr.bf16.mxu0 (!%p5511_p12), %v6097_v24 }
 0x23e   : > { %2386 = vmatpush1.bf16.msra.mxu1 %v5509_v28  ;;  %v6106_v28 = vld [vmem:[#allocation8 + $0x220] ss:$16 sps:$4 sm:$0xff] (!%p5511_p12)  }
 0x23f   : > { %2347 = vmatmul.mubr.bf16.vlgmr.msra.gmra.mrb[12].mxu0 %v7468_v17  ;;  %v510_v17 = vld [vmem:[#allocation2 + $0x10] sm:$0xff]  ;;  %4048 = vmatprep.subr.bf16.mxu1 (!%p5511_p12), %v6095_v23 }
 0x240   : > { %4090 = vmatpush1.bf16.msra.mxu0 (!%p5511_p12), %v6100_v54 }
 0x241   : > { %2388 = vmatmul.mubr.bf16.vlgmr.msra.gmra.mrb[12].mxu1 %v7474_v20  ;;  %4091 = vmatprep.subr.bf16.mxu0 (!%p5511_p12), %v6103_v27  ;;  %v6173_v27 = vld [vmem:[#allocation8 + $0x1a4] ss:$16 sps:$4 sm:$0xff] (!%p5511_p12)  }
 0x242   : > { %4049 = vmatpush1.bf16.msra.mxu1 (!%p5511_p12), %v6099_v25  ;;  %v6172_v25 = vld [vmem:[#allocation8 + $0x380] ss:$16 sps:$4 sm:$0xff] (!%p5511_p12)  }
 0x243   : > { %4050 = vmatprep.subr.bf16.mxu1 (!%p5511_p12), %v6101_v26 }
 0x244   : > { %4092 = vmatpush1.bf16.msra.mxu0 (!%p5511_p12), %v6106_v28  ;;  %v6177_v28 = vld [vmem:[#allocation8 + $0x1a0] ss:$16 sps:$4 sm:$0xff] (!%p5511_p12)  }
 0x246   : > { %4051 = vmatpush1.bf16.msra.mxu1 (!%p5511_p12), %v6105_v55  ;;  %v6175_v55 = vld [vmem:[#allocation8 + $0x3a4] ss:$16 sps:$4 sm:$0xff] (!%p5511_p12)  }
 0x252   : > { %v2102_v29 = vpop.f32.mrb[0].mxu0 }
 0x253   : > { %v2104_v32 = vpop.f32.mrb[1].mxu0 }
 0x254   : > { %v2143_v31 = vpop.f32.mrb[0].mxu1  ;;  %v2106_v36 = vpop.f32.mrb[2].mxu0 }
 0x255   : > { %v2144_v33 = vadd.f32 %v2143_v31, %v2102_v29  ;;  %v2145_v35 = vpop.f32.mrb[1].mxu1  ;;  %v2107_v39 = vpop.f32.mrb[3].mxu0  ;;  %v6107_v29 = vld [vmem:[#allocation8 + $0x44] ss:$16 sps:$4 sm:$0xff] (!%p5511_p12)   ;;  %v6111_v31 = vld [vmem:[#allocation8 + $0x40] ss:$16 sps:$4 sm:$0xff] (!%p5511_p12)  }
 0x256   : > { %v2146_v37 = vadd.f32 %v2145_v35, %v2104_v32  ;;  %v2147_v38 = vpop.f32.mrb[2].mxu1  ;;  %v6112_v32 = vld [vmem:[#allocation8 + $0x240] ss:$16 sps:$4 sm:$0xff] (!%p5511_p12)   ;;  %4052 = vmatprep.subr.bf16.mxu1 (!%p5511_p12), %v6107_v29 }
 0x257   : > { %v2396_v40 = vadd.f32 %v2144_v33, %v508_v30  ;;  %v2148_v41 = vpop.f32.mrb[3].mxu1  ;;  %v6109_v30 = vld [vmem:[#allocation8 + $0x244] ss:$16 sps:$4 sm:$0xff] (!%p5511_p12)   ;;  %v6117_v35 = vld [vmem:[#allocation8 + $0x60] ss:$16 sps:$4 sm:$0xff] (!%p5511_p12)   ;;  %4053 = vmatpush1.bf16.msra.mxu1 (!%p5511_p12), %v6111_v31 }
 0x258   : > { %v2397_v42 = vadd.f32 %v2146_v37, %v509_v34  ;;  %v6113_v33 = vld [vmem:[#allocation8 + $0x64] ss:$16 sps:$4 sm:$0xff] (!%p5511_p12)   ;;  %4093 = vmatprep.subr.bf16.mxu0 (!%p5511_p12), %v6109_v30  ;;  %v6118_v36 = vld [vmem:[#allocation8 + $0x260] ss:$16 sps:$4 sm:$0xff] (!%p5511_p12)  }
 0x259   : > { %2404 = vst [vmem:[#allocation2] sm:$0xff] %v2396_v40  ;;  %v6115_v34 = vld [vmem:[#allocation8 + $0x264] ss:$16 sps:$4 sm:$0xff] (!%p5511_p12)   ;;  %4094 = vmatpush1.bf16.msra.mxu0 (!%p5511_p12), %v6112_v32  ;;  %4054 = vmatprep.subr.bf16.mxu1 (!%p5511_p12), %v6113_v33  ;;  %v6123_v39 = vld [vmem:[#allocation8 + $0x80] ss:$16 sps:$4 sm:$0xff] (!%p5511_p12)  }
 0x25a   : > { %2405 = vst [vmem:[#allocation2 + $0x8] sm:$0xff] %v2397_v42  ;;  %v6119_v37 = vld [vmem:[#allocation8 + $0x84] ss:$16 sps:$4 sm:$0xff] (!%p5511_p12)   ;;  %4095 = vmatprep.subr.bf16.mxu0 (!%p5511_p12), %v6115_v34  ;;  %v6124_v40 = vld [vmem:[#allocation8 + $0x280] ss:$16 sps:$4 sm:$0xff] (!%p5511_p12)  }
 0x25b   : > { %v6121_v38 = vld [vmem:[#allocation8 + $0x284] ss:$16 sps:$4 sm:$0xff] (!%p5511_p12)   ;;  %4055 = vmatpush1.bf16.msra.mxu1 (!%p5511_p12), %v6117_v35  ;;  %v6178_v31 = vld [vmem:[#allocation8 + $0x3a0] ss:$16 sps:$4 sm:$0xff] (!%p5511_p12)  }
 0x25c   : > { %v6125_v41 = vld [vmem:[#allocation8 + $0xa4] ss:$16 sps:$4 sm:$0xff] (!%p5511_p12)   ;;  %4056 = vmatprep.subr.bf16.mxu1 (!%p5511_p12), %v6119_v37 }
 0x25d   : > { %4096 = vmatpush1.bf16.msra.mxu0 (!%p5511_p12), %v6118_v36  ;;  %v6127_v42 = vld [vmem:[#allocation8 + $0x2a4] ss:$16 sps:$4 sm:$0xff] (!%p5511_p12)  }
 0x25e   : > { %4097 = vmatprep.subr.bf16.mxu0 (!%p5511_p12), %v6121_v38  ;;  %v6179_v36 = vld [vmem:[#allocation8 + $0x1c4] ss:$16 sps:$4 sm:$0xff] (!%p5511_p12)  }
 0x25f   : > { %4057 = vmatpush1.bf16.msra.mxu1 (!%p5511_p12), %v6123_v39  ;;  %v6181_v37 = vld [vmem:[#allocation8 + $0x3c4] ss:$16 sps:$4 sm:$0xff] (!%p5511_p12)  }
 0x260   : > { %4058 = vmatprep.subr.bf16.mxu1 (!%p5511_p12), %v6125_v41  ;;  %v2416_v34 = vld [vmem:[#allocation2] sm:$0xff] (!%p5511_p12)  ;;  %v6184_v41 = vld [vmem:[#allocation8 + $0x3c0] ss:$16 sps:$4 sm:$0xff] (!%p5511_p12)  }
 0x261   : > { %4098 = vmatpush1.bf16.msra.mxu0 (!%p5511_p12), %v6124_v40  ;;  %v6183_v40 = vld [vmem:[#allocation8 + $0x1c0] ss:$16 sps:$4 sm:$0xff] (!%p5511_p12)  }
 0x262   : > { %4099 = vmatprep.subr.bf16.mxu0 (!%p5511_p12), %v6127_v42 }
 0x292   : > { %v2184_v43 = vpop.f32.mrb[4].mxu0 }
 0x293   : > { %v2186_v20 = vpop.f32.mrb[5].mxu0 }
 0x294   : > { %v2225_v44 = vpop.f32.mrb[4].mxu1  ;;  %v2188_v48 = vpop.f32.mrb[6].mxu0 }
 0x295   : > { %v2226_v45 = vadd.f32 %v2225_v44, %v2184_v43  ;;  %v2227_v47 = vpop.f32.mrb[5].mxu1  ;;  %v2189_v51 = vpop.f32.mrb[7].mxu0  ;;  %v6129_v43 = vld [vmem:[#allocation8 + $0xa0] ss:$16 sps:$4 sm:$0xff] (!%p5511_p12)   ;;  %v6131_v44 = vld [vmem:[#allocation8 + $0xc4] ss:$16 sps:$4 sm:$0xff] (!%p5511_p12)  }
 0x296   : > { %v2228_v49 = vadd.f32 %v2227_v47, %v2186_v20  ;;  %v2229_v50 = vpop.f32.mrb[6].mxu1  ;;  %v6133_v20 = vld [vmem:[#allocation8 + $0x2c4] ss:$16 sps:$4 sm:$0xff] (!%p5511_p12)   ;;  %4059 = vmatpush1.bf16.msra.mxu1 (!%p5511_p12), %v6129_v43 }
 0x297   : > { %v2398_v52 = vadd.f32 %v2226_v45, %v510_v17  ;;  %v2230_v53 = vpop.f32.mrb[7].mxu1  ;;  %v6130_v17 = vld [vmem:[#allocation8 + $0x2a0] ss:$16 sps:$4 sm:$0xff] (!%p5511_p12)   ;;  %v6137_v47 = vld [vmem:[#allocation8 + $0xe4] ss:$16 sps:$4 sm:$0xff] (!%p5511_p12)   ;;  %4060 = vmatprep.subr.bf16.mxu1 (!%p5511_p12), %v6131_v44 }
 0x298   : > { %v2399_v56 = vadd.f32 %v2228_v49, %v511_v46  ;;  %v6135_v45 = vld [vmem:[#allocation8 + $0xc0] ss:$16 sps:$4 sm:$0xff] (!%p5511_p12)   ;;  %4100 = vmatpush1.bf16.msra.mxu0 (!%p5511_p12), %v6130_v17  ;;  %v6139_v48 = vld [vmem:[#allocation8 + $0x2e4] ss:$16 sps:$4 sm:$0xff] (!%p5511_p12)  }
 0x299   : > { %2406 = vst [vmem:[#allocation2 + $0x10] sm:$0xff] %v2398_v52  ;;  %v6136_v46 = vld [vmem:[#allocation8 + $0x2c0] ss:$16 sps:$4 sm:$0xff] (!%p5511_p12)   ;;  %4101 = vmatprep.subr.bf16.mxu0 (!%p5511_p12), %v6133_v20  ;;  %v6143_v51 = vld [vmem:[#allocation8 + $0x104] ss:$16 sps:$4 sm:$0xff] (!%p5511_p12)  }
 0x29a   : > { %2407 = vst [vmem:[#allocation2 + $0x18] sm:$0xff] %v2399_v56  ;;  %v6141_v49 = vld [vmem:[#allocation8 + $0xe0] ss:$16 sps:$4 sm:$0xff] (!%p5511_p12)   ;;  %4061 = vmatpush1.bf16.msra.mxu1 (!%p5511_p12), %v6135_v45  ;;  %v6145_v52 = vld [vmem:[#allocation8 + $0x304] ss:$16 sps:$4 sm:$0xff] (!%p5511_p12)  }
 0x29b   : > { %v6142_v50 = vld [vmem:[#allocation8 + $0x2e0] ss:$16 sps:$4 sm:$0xff] (!%p5511_p12)   ;;  %4062 = vmatprep.subr.bf16.mxu1 (!%p5511_p12), %v6137_v47  ;;  %v6185_v43 = vld [vmem:[#allocation8 + $0x1e4] ss:$16 sps:$4 sm:$0xff] (!%p5511_p12)  }
 0x29c   : > { %4102 = vmatpush1.bf16.msra.mxu0 (!%p5511_p12), %v6136_v46  ;;  %v6147_v53 = vld [vmem:[#allocation8 + $0x100] ss:$16 sps:$4 sm:$0xff] (!%p5511_p12)   ;;  %v6187_v17 = vld [vmem:[#allocation8 + $0x3e4] ss:$16 sps:$4 sm:$0xff] (!%p5511_p12)  }
 0x29d   : > { %4103 = vmatprep.subr.bf16.mxu0 (!%p5511_p12), %v6139_v48  ;;  %v6148_v56 = vld [vmem:[#allocation8 + $0x300] ss:$16 sps:$4 sm:$0xff] (!%p5511_p12)  }
 0x29e   : > { %4063 = vmatpush1.bf16.msra.mxu1 (!%p5511_p12), %v6141_v49  ;;  %v6189_v48 = vld [vmem:[#allocation8 + $0x1e0] ss:$16 sps:$4 sm:$0xff] (!%p5511_p12)  }
 0x29f   : > { %4064 = vmatprep.subr.bf16.mxu1 (!%p5511_p12), %v6143_v51  ;;  %v6190_v49 = vld [vmem:[#allocation8 + $0x3e0] ss:$16 sps:$4 sm:$0xff] (!%p5511_p12)   ;;  %v6196_v51 = vld [vmem:[#allocation8 + $0xc] ss:$16 sps:$4 sm:$0xff] (!%p5511_p12)  }
 0x2a0   : > { %4104 = vmatpush1.bf16.msra.mxu0 (!%p5511_p12), %v6142_v50  ;;  %v2418_v35 = vld [vmem:[#allocation2 + $0x10] sm:$0xff] (!%p5511_p12)  ;;  %v6193_v50 = vld [vmem:[#allocation8 + $0x404] ss:$16 sps:$4 sm:$0xff] (!%p5511_p12)  }
 0x2a1   : > { %4105 = vmatprep.subr.bf16.mxu0 (!%p5511_p12), %v6145_v52 }
 0x2a2   : > { %4065 = vmatpush1.bf16.msra.mxu1 (!%p5511_p12), %v6147_v53 }
 0x2a4   : > { %4106 = vmatpush1.bf16.msra.mxu0 (!%p5511_p12), %v6148_v56  ;;  %v6191_v56 = vld [vmem:[#allocation8 + $0x400] ss:$16 sps:$4 sm:$0xff] (!%p5511_p12)  }
 0x2d2   : > { %v2266_v57 = vpop.f32.mrb[8].mxu0 }
 0x2d3   : > { %v2268_v59 = vpop.f32.mrb[9].mxu0 }
 0x2d4   : > { %v2307_v61 = vpop.f32.mrb[8].mxu1  ;;  %v2270_v0 = vpop.f32.mrb[10].mxu0 }
 0x2d5   : > { %v2308_v62 = vadd.f32 %v2307_v61, %v2266_v57  ;;  %v2309_v63 = vpop.f32.mrb[9].mxu1  ;;  %v2271_v3 = vpop.f32.mrb[11].mxu0  ;;  %v6149_v57 = vld [vmem:[#allocation8 + $0x124] ss:$16 sps:$4 sm:$0xff] (!%p5511_p12)  }
 0x2d6   : > { %v2310_v1 = vadd.f32 %v2309_v63, %v2268_v59  ;;  %v2311_v2 = vpop.f32.mrb[10].mxu1  ;;  %v6151_v61 = vld [vmem:[#allocation8 + $0x324] ss:$16 sps:$4 sm:$0xff] (!%p5511_p12)   ;;  %v6153_v59 = vld [vmem:[#allocation8 + $0x120] ss:$16 sps:$4 sm:$0xff] (!%p5511_p12)   ;;  %4066 = vmatprep.subr.bf16.mxu1 (!%p5511_p12), %v6149_v57 }
 0x2d7   : > { %v2400_v4 = vadd.f32 %v2308_v62, %v512_v58  ;;  %v2312_v5 = vpop.f32.mrb[11].mxu1  ;;  %v2426_v58 = vlaneseq (!%p5511_p12)  ;;  %v6154_v62 = vld [vmem:[#allocation8 + $0x320] ss:$16 sps:$4 sm:$0xff] (!%p5511_p12)   ;;  %4107 = vmatprep.subr.bf16.mxu0 (!%p5511_p12), %v6151_v61  ;;  %v6157_v0 = vld [vmem:[#allocation8 + $0x344] ss:$16 sps:$4 sm:$0xff] (!%p5511_p12)   ;;  %4067 = vmatpush1.bf16.msra.mxu1 (!%p5511_p12), %v6153_v59 }
 0x2d8   : > { %v2401_v6 = vadd.f32 %v2310_v1, %v513_v60  ;;  %v6155_v60 = vld [vmem:[#allocation8 + $0x144] ss:$16 sps:$4 sm:$0xff] (!%p5511_p12)   ;;  %v6159_v1 = vld [vmem:[#allocation8 + $0x140] ss:$16 sps:$4 sm:$0xff] (!%p5511_p12)   ;;  %4108 = vmatpush1.bf16.msra.mxu0 (!%p5511_p12), %v6154_v62  ;;  %v6194_v57 = vld [vmem:[#allocation8 + $0x8] ss:$16 sps:$4 sm:$0xff] (!%p5511_p12)  }
 0x2d9   : > { %2408 = vst [vmem:[#allocation2 + $0x20] sm:$0xff] %v2400_v4  ;;  %v7675_v63 = vshrl.u32 (!%p5511_p12), %v2426_v58, 7  ;;  %v6160_v2 = vld [vmem:[#allocation8 + $0x340] ss:$16 sps:$4 sm:$0xff] (!%p5511_p12)   ;;  %v6161_v3 = vld [vmem:[#allocation8 + $0x164] ss:$16 sps:$4 sm:$0xff] (!%p5511_p12)   ;;  %4068 = vmatprep.subr.bf16.mxu1 (!%p5511_p12), %v6155_v60  ;;  %4109 = vmatprep.subr.bf16.mxu0 (!%p5511_p12), %v6157_v0 }
 0x2da   : > { %2409 = vst [vmem:[#allocation2 + $0x28] sm:$0xff] %v2401_v6  ;;  %v6163_v6 = vld [vmem:[#allocation8 + $0x364] ss:$16 sps:$4 sm:$0xff] (!%p5511_p12)   ;;  %v6202_v61 = vld [vmem:[#allocation8 + $0x2c] ss:$16 sps:$4 sm:$0xff] (!%p5511_p12)  }
 0x2db   : > { %v7678_v4 = vsub.s32 (!%p5511_p12), 1, %v7675_v63  ;;  %v2440_v5 = vsub.s32 (!%p5511_p12), 3, %v7675_v63  ;;  %4069 = vmatpush1.bf16.msra.mxu1 (!%p5511_p12), %v6159_v1  ;;  %v7693_v23 = vsub.s32 (!%p5511_p12), 0, %v7675_v63  ;;  %v2436_v24 = vsub.s32 (!%p5511_p12), 2, %v7675_v63  ;;  %v6199_v58 = vld [vmem:[#allocation8 + $0x424] ss:$16 sps:$4 sm:$0xff] (!%p5511_p12)  }
 0x2dc   : > { %4110 = vmatpush1.bf16.msra.mxu0 (!%p5511_p12), %v6160_v2  ;;  %4070 = vmatprep.subr.bf16.mxu1 (!%p5511_p12), %v6161_v3  ;;  %v2456_v42 = vsub.s32 (!%p5511_p12), 7, %v7675_v63  ;;  %v2452_v44 = vsub.s32 (!%p5511_p12), 6, %v7675_v63  ;;  %v6197_v59 = vld [vmem:[#allocation8 + $0x420] ss:$16 sps:$4 sm:$0xff] (!%p5511_p12)   ;;  %v6200_v62 = vld [vmem:[#allocation8 + $0x28] ss:$16 sps:$4 sm:$0xff] (!%p5511_p12)  }
 0x2dd   : > { %4111 = vmatprep.subr.bf16.mxu0 (!%p5511_p12), %v6163_v6  ;;  %v6205_v60 = vld [vmem:[#allocation8 + $0x444] ss:$16 sps:$4 sm:$0xff] (!%p5511_p12)   ;;  %v6208_v0 = vld [vmem:[#allocation8 + $0x4c] ss:$16 sps:$4 sm:$0xff] (!%p5511_p12)   ;;  %v6203_v1 = vld [vmem:[#allocation8 + $0x440] ss:$16 sps:$4 sm:$0xff] (!%p5511_p12)  }
 0x2de   : > { %v6206_v2 = vld [vmem:[#allocation8 + $0x48] ss:$16 sps:$4 sm:$0xff] (!%p5511_p12)   ;;  %v6211_v3 = vld [vmem:[#allocation8 + $0x464] ss:$16 sps:$4 sm:$0xff] (!%p5511_p12)   ;;  %v6214_v6 = vld [vmem:[#allocation8 + $0x6c] ss:$16 sps:$4 sm:$0xff] (!%p5511_p12)  }
 0x312   : > { %v2348_v7 = vpop.f32.mrb[12].mxu0 }
 0x313   : > { %v2350_v10 = vpop.f32.mrb[13].mxu0 }
 0x314   : > { %v2389_v9 = vpop.f32.mrb[12].mxu1  ;;  %v2352_v14 = vpop.f32.mrb[14].mxu0  ;;  %2415 = sbr.rel (%p5511_p12) target bundleno = 1726 (0x6be), region = 96 }
 0x315   : > { %v2390_v11 = vadd.f32 %v2389_v9, %v2348_v7  ;;  %v2391_v13 = vpop.f32.mrb[13].mxu1  ;;  %v2353_v18 = vpop.f32.mrb[15].mxu0  ;;  %v2444_v7 = vsub.s32 (!%p5511_p12), 4, %v7675_v63  ;;  %v6166_v9 = vld [vmem:[#allocation8 + $0x360] ss:$16 sps:$4 sm:$0xff] (!%p5511_p12)  }
 0x316   : > { %v2392_v15 = vadd.f32 %v2391_v13, %v2350_v10  ;;  %v2393_v16 = vpop.f32.mrb[14].mxu1  ;;  %v2417_v10 = vld [vmem:[#allocation2 + $0x8] sm:$0xff] (!%p5511_p12)  ;;  %4112 = vmatpush1.bf16.msra.mxu0 (!%p5511_p12), %v6166_v9 }
 0x317   : > { %v2402_v19 = vadd.f32 %v2390_v11, %v514_v8  ;;  %v2394_v21 = vpop.f32.mrb[15].mxu1  ;;  %v6165_v8 = vld [vmem:[#allocation8 + $0x160] ss:$16 sps:$4 sm:$0xff] (!%p5511_p12)   ;;  %v7682_v11 = vld [vmem:[#allocation6] sm:$0xff] (!%p5511_p12)  ;;  %v6167_v13 = vld [vmem:[#allocation8 + $0x184] ss:$16 sps:$4 sm:$0xff] (!%p5511_p12)  }
 0x318   : > { %v2403_v22 = vadd.f32 %v2392_v15, %v515_v12  ;;  %v2419_v12 = vld [vmem:[#allocation2 + $0x18] sm:$0xff] (!%p5511_p12)  ;;  %v2433_v14 = vrot.slane (!%p5511_p12), %v7682_v11, %v7678_v4  ;;  %v2441_v15 = vrot.slane (!%p5511_p12), %v7682_v11, %v2440_v5  ;;  %v7690_v18 = vrot.slane (!%p5511_p12), %v7682_v11, %v2444_v7  ;;  %4071 = vmatpush1.bf16.msra.mxu1 (!%p5511_p12), %v6165_v8  ;;  %v6212_v8 = vld [vmem:[#allocation8 + $0x68] ss:$16 sps:$4 sm:$0xff] (!%p5511_p12)  }
 0x319   : > { %2410 = vst [vmem:[#allocation2 + $0x30] sm:$0xff] %v2402_v19  ;;  %v6169_v16 = vld [vmem:[#allocation8 + $0x384] ss:$16 sps:$4 sm:$0xff] (!%p5511_p12)   ;;  %4072 = vmatprep.subr.bf16.mxu1 (!%p5511_p12), %v6167_v13  ;;  %v2429_v32 = vrot.slane (!%p5511_p12), %v7682_v11, %v7693_v23  ;;  %v2437_v33 = vrot.slane (!%p5511_p12), %v7682_v11, %v2436_v24  ;;  %v7707_v20 = vrot.slane (!%p5511_p12), %v7682_v11, %v2456_v42  ;;  %v6209_v7 = vld [vmem:[#allocation8 + $0x460] ss:$16 sps:$4 sm:$0xff] (!%p5511_p12)  }
 0x31a   : > { %2411 = vst [vmem:[#allocation2 + $0x38] sm:$0xff] %v2403_v22  ;;  %v2467_v19 = vadd.f32 (!%p5511_p12), %v2433_v14, %v2417_v10  ;;  %v2469_v21 = vadd.f32 (!%p5511_p12), %v2441_v15, %v2419_v12  ;;  %v6171_v22 = vld [vmem:[#allocation8 + $0x180] ss:$16 sps:$4 sm:$0xff] (!%p5511_p12)   ;;  %4113 = vmatprep.subr.bf16.mxu0 (!%p5511_p12), %v6169_v16  ;;  %v7710_v47 = vrot.slane (!%p5511_p12), %v7682_v11, %v2452_v44  ;;  %v6217_v9 = vld [vmem:[#allocation8 + $0x484] ss:$16 sps:$4 sm:$0xff] (!%p5511_p12)   ;;  %v2448_v14 = vsub.s32 (!%p5511_p12), 5, %v7675_v63 }
 0x31b   : > { %4114 = vmatpush1.bf16.msra.mxu0 %v6172_v25  ;;  %v2466_v38 = vadd.f32 %v2429_v32, %v2416_v34  ;;  %v2468_v39 = vadd.f32 %v2437_v33, %v2418_v35  ;;  %v6220_v10 = vld [vmem:[#allocation8 + $0x8c] ss:$16 sps:$4 sm:$0xff]   ;;  %v6215_v12 = vld [vmem:[#allocation8 + $0x480] ss:$16 sps:$4 sm:$0xff]   ;;  %v6218_v13 = vld [vmem:[#allocation8 + $0x88] ss:$16 sps:$4 sm:$0xff]  }
 0x31c   : > { %v2475_v54 = vmax.f32 %v2467_v19, 0.0  ;;  %v2477_v26 = vmax.f32 %v2469_v21, 0.0  ;;  %4073 = vmatpush1.bf16.msra.mxu1 %v6171_v22  ;;  %4115 = vmatprep.subr.bf16.mxu0 %v6175_v55  ;;  %v6223_v15 = vld [vmem:[#allocation8 + $0x4a4] ss:$16 sps:$4 sm:$0xff]   ;;  %v6226_v16 = vld [vmem:[#allocation8 + $0xac] ss:$16 sps:$4 sm:$0xff]   ;;  %v2449_v22 = vrot.slane %v7682_v11, %v2448_v14 }
 0x31d   : > { %4074 = vmatprep.subr.bf16.mxu1 %v6173_v27  ;;  %v2474_v45 = vmax.f32 %v2466_v38, 0.0  ;;  %v2476_v46 = vmax.f32 %v2468_v39, 0.0  ;;  %v6221_v19 = vld [vmem:[#allocation8 + $0x4a0] ss:$16 sps:$4 sm:$0xff]   ;;  %v6224_v21 = vld [vmem:[#allocation8 + $0xa8] ss:$16 sps:$4 sm:$0xff]  }
 0x31e   : > { %v2483_v29 = vpack.c.bf16 %v2475_v54, %v2475_v54  ;;  %v7696_v30 = vpack.c.bf16 %v2477_v26, %v2477_v26  ;;  %v6229_v25 = vld [vmem:[#allocation8 + $0x4c4] ss:$16 sps:$4 sm:$0xff]   ;;  %v6232_v54 = vld [vmem:[#allocation8 + $0xcc] ss:$16 sps:$4 sm:$0xff]   ;;  %v6227_v26 = vld [vmem:[#allocation8 + $0x4c0] ss:$16 sps:$4 sm:$0xff]  }
 0x31f   : > { %4116 = vmatpush1.bf16.msra.mxu0 %v6178_v31  ;;  %v7712_v52 = vpack.c.bf16 %v2474_v45, %v2474_v45  ;;  %v7714_v53 = vpack.c.bf16 %v2476_v46, %v2476_v46  ;;  %v2421_v27 = vld [vmem:[#allocation2 + $0x28] sm:$0xff]  ;;  %v6230_v55 = vld [vmem:[#allocation8 + $0xc8] ss:$16 sps:$4 sm:$0xff]   ;;  %v6238_v31 = vld [vmem:[#allocation8 + $0xec] ss:$16 sps:$4 sm:$0xff]  }
 0x320   : > { %4080 = vmatprep.mubr.bf16.mxu1 %v2483_v29  ;;  %4121 = vmatprep.mubr.bf16.mxu0 %v7696_v30  ;;  %v6233_v33 = vld [vmem:[#allocation8 + $0x4e0] ss:$16 sps:$4 sm:$0xff]   ;;  %v6236_v34 = vld [vmem:[#allocation8 + $0xe8] ss:$16 sps:$4 sm:$0xff]   ;;  %v6241_v11 = vld [vmem:[#allocation8 + $0x504] ss:$16 sps:$4 sm:$0xff]  }
 0x321   : > { %4075 = vmatpush1.bf16.msra.mxu1 %v6177_v28  ;;  %4117 = vmatprep.subr.bf16.mxu0 %v6181_v37  ;;  %v6235_v28 = vld [vmem:[#allocation8 + $0x4e4] ss:$16 sps:$4 sm:$0xff]   ;;  %v6239_v37 = vld [vmem:[#allocation8 + $0x500] ss:$16 sps:$4 sm:$0xff]   ;;  %v6242_v38 = vld [vmem:[#allocation8 + $0x108] ss:$16 sps:$4 sm:$0xff]  }
 0x322   : > { %4076 = vmatprep.subr.bf16.mxu1 %v6179_v36  ;;  %v6244_v36 = vld [vmem:[#allocation8 + $0x10c] ss:$16 sps:$4 sm:$0xff]   ;;  %v6247_v39 = vld [vmem:[#allocation8 + $0x524] ss:$16 sps:$4 sm:$0xff]   ;;  %v6248_v42 = vld [vmem:[#allocation8 + $0x128] ss:$16 sps:$4 sm:$0xff]  }
 0x323   : > { %4118 = vmatpush1.bf16.msra.mxu0 %v6184_v41  ;;  %v6245_v41 = vld [vmem:[#allocation8 + $0x520] ss:$16 sps:$4 sm:$0xff]   ;;  %v6254_v45 = vld [vmem:[#allocation8 + $0x148] ss:$16 sps:$4 sm:$0xff]   ;;  %v6259_v46 = vld [vmem:[#allocation8 + $0x564] ss:$16 sps:$4 sm:$0xff]  }
 0x324   : > { %4119 = vmatprep.subr.bf16.mxu0 %v6187_v17  ;;  %v6256_v17 = vld [vmem:[#allocation8 + $0x14c] ss:$16 sps:$4 sm:$0xff]   ;;  %v6251_v44 = vld [vmem:[#allocation8 + $0x540] ss:$16 sps:$4 sm:$0xff]   ;;  %v6289_v14 = vld [vmem:[#allocation8 + $0x604] ss:$16 sps:$4 sm:$0xff]  }
 0x325   : > { %4077 = vmatpush1.bf16.msra.mxu1 %v6183_v40  ;;  %v6250_v40 = vld [vmem:[#allocation8 + $0x12c] ss:$16 sps:$4 sm:$0xff]  }
 0x326   : > { %4078 = vmatprep.subr.bf16.mxu1 %v6185_v43  ;;  %v6253_v43 = vld [vmem:[#allocation8 + $0x544] ss:$16 sps:$4 sm:$0xff]  }
 0x327   : > { %4120 = vmatpush1.bf16.msra.mxu0 %v6190_v49  ;;  %v6257_v49 = vld [vmem:[#allocation8 + $0x560] ss:$16 sps:$4 sm:$0xff]  }
 0x328   : > { %4130 = vmatprep.subr.bf16.mxu0 %v6193_v50  ;;  %v6260_v50 = vld [vmem:[#allocation8 + $0x168] ss:$16 sps:$4 sm:$0xff]   ;;  %v6590_v63 = vld [vmem:[#allocation14 + $0x38] sm:$0xff]  }
 0x329   : > { %4079 = vmatpush1.bf16.msra.mxu1 %v6189_v48  ;;  %v6262_v48 = vld [vmem:[#allocation8 + $0x16c] ss:$16 sps:$4 sm:$0xff]  }
 0x32a   : > { %4212 = vmatprep.subr.bf16.mxu1 %v6196_v51  ;;  %4122 = vmatmul.mubr.bf16.vlgmr.msra.gmra.mrb[0].mxu0 %v7714_v53  ;;  %v6265_v51 = vld [vmem:[#allocation8 + $0x584] ss:$16 sps:$4 sm:$0xff]  }
 0x32b   : > { %4131 = vmatpush1.bf16.msra.mxu0 %v6191_v56  ;;  %v6268_v56 = vld [vmem:[#allocation8 + $0x18c] ss:$16 sps:$4 sm:$0xff]  }
 0x32c   : > { %4081 = vmatmul.mubr.bf16.vlgmr.msra.gmra.mrb[0].mxu1 %v7712_v52  ;;  %4132 = vmatprep.subr.bf16.mxu0 %v6199_v58  ;;  %v6266_v58 = vld [vmem:[#allocation8 + $0x188] ss:$16 sps:$4 sm:$0xff]  }
 0x32d   : > { %4213 = vmatpush1.bf16.msra.mxu1 %v6194_v57  ;;  %4244 = vmatprep.mubr.bf16.mxu1 %v2483_v29  ;;  %v2471_v29 = vadd.f32 %v2449_v22, %v2421_v27  ;;  %v6263_v57 = vld [vmem:[#allocation8 + $0x580] ss:$16 sps:$4 sm:$0xff]   ;;  %v6298_v22 = vld [vmem:[#allocation8 + $0x22c] ss:$16 sps:$4 sm:$0xff]   ;;  %v6296_v27 = vld [vmem:[#allocation8 + $0x228] ss:$16 sps:$4 sm:$0xff]  }
 0x32e   : > { %4214 = vmatprep.subr.bf16.mxu1 %v6202_v61  ;;  %v6271_v61 = vld [vmem:[#allocation8 + $0x5a4] ss:$16 sps:$4 sm:$0xff]  }
 0x32f   : > { %4133 = vmatpush1.bf16.msra.mxu0 %v6197_v59  ;;  %v2479_v32 = vmax.f32 %v2471_v29, 0.0  ;;  %v6274_v59 = vld [vmem:[#allocation8 + $0x1ac] ss:$16 sps:$4 sm:$0xff]  }
 0x330   : > { %4134 = vmatprep.subr.bf16.mxu0 %v6205_v60  ;;  %v6272_v60 = vld [vmem:[#allocation8 + $0x1a8] ss:$16 sps:$4 sm:$0xff]  }
 0x331   : > { %4215 = vmatpush1.bf16.msra.mxu1 %v6200_v62  ;;  %v7720_v35 = vpack.c.bf16 %v2479_v32, %v2479_v32  ;;  %v6269_v62 = vld [vmem:[#allocation8 + $0x5a0] ss:$16 sps:$4 sm:$0xff]  }
 0x332   : > { %4216 = vmatprep.subr.bf16.mxu1 %v6208_v0  ;;  %v6277_v0 = vld [vmem:[#allocation8 + $0x5c4] ss:$16 sps:$4 sm:$0xff]   ;;  %v6299_v32 = vld [vmem:[#allocation8 + $0x640] ss:$16 sps:$4 sm:$0xff]  }
 0x333   : > { %4135 = vmatpush1.bf16.msra.mxu0 %v6203_v1  ;;  %4162 = vmatprep.mubr.bf16.mxu0 %v7720_v35  ;;  %v2420_v1 = vld [vmem:[#allocation2 + $0x20] sm:$0xff] }
 0x334   : > { %4136 = vmatprep.subr.bf16.mxu0 %v6211_v3  ;;  %v6275_v3 = vld [vmem:[#allocation8 + $0x5c0] ss:$16 sps:$4 sm:$0xff]  }
 0x335   : > { %4217 = vmatpush1.bf16.msra.mxu1 %v6206_v2  ;;  %v6280_v2 = vld [vmem:[#allocation8 + $0x1cc] ss:$16 sps:$4 sm:$0xff]  }
 0x336   : > { %4218 = vmatprep.subr.bf16.mxu1 %v6214_v6  ;;  %v6278_v6 = vld [vmem:[#allocation8 + $0x1c8] ss:$16 sps:$4 sm:$0xff]  }
 0x337   : > { %4137 = vmatpush1.bf16.msra.mxu0 %v6209_v7  ;;  %v2470_v7 = vadd.f32 %v7690_v18, %v2420_v1  ;;  %v6295_v18 = vld [vmem:[#allocation8 + $0x624] ss:$16 sps:$4 sm:$0xff]   ;;  %v6352_v1 = vld [vmem:[#allocation8 + $0x34c] ss:$16 sps:$4 sm:$0xff]  }
 0x338   : > { %4138 = vmatprep.subr.bf16.mxu0 %v6217_v9  ;;  %v6286_v9 = vld [vmem:[#allocation8 + $0x1ec] ss:$16 sps:$4 sm:$0xff]  }
 0x339   : > { %4219 = vmatpush1.bf16.msra.mxu1 %v6212_v8  ;;  %v6283_v8 = vld [vmem:[#allocation8 + $0x5e4] ss:$16 sps:$4 sm:$0xff]  }
 0x33a   : > { %4220 = vmatprep.subr.bf16.mxu1 %v6220_v10  ;;  %v6281_v10 = vld [vmem:[#allocation8 + $0x5e0] ss:$16 sps:$4 sm:$0xff]  }
 0x33b   : > { %4139 = vmatpush1.bf16.msra.mxu0 %v6215_v12  ;;  %v6284_v12 = vld [vmem:[#allocation8 + $0x1e8] ss:$16 sps:$4 sm:$0xff]  }
 0x33c   : > { %4140 = vmatprep.subr.bf16.mxu0 %v6223_v15  ;;  %v6292_v15 = vld [vmem:[#allocation8 + $0x20c] ss:$16 sps:$4 sm:$0xff]  }
 0x33d   : > { %4221 = vmatpush1.bf16.msra.mxu1 %v6218_v13  ;;  %v2478_v13 = vmax.f32 %v2470_v7, 0.0  ;;  %v6358_v7 = vld [vmem:[#allocation8 + $0x36c] ss:$16 sps:$4 sm:$0xff]  }
 0x33e   : > { %4222 = vmatprep.subr.bf16.mxu1 %v6226_v16  ;;  %v6287_v16 = vld [vmem:[#allocation8 + $0x600] ss:$16 sps:$4 sm:$0xff]  }
 0x33f   : > { %4141 = vmatpush1.bf16.msra.mxu0 %v6221_v19  ;;  %v6290_v19 = vld [vmem:[#allocation8 + $0x208] ss:$16 sps:$4 sm:$0xff]  }
 0x340   : > { %4142 = vmatprep.subr.bf16.mxu0 %v6229_v25  ;;  %v2423_v25 = vld [vmem:[#allocation2 + $0x38] sm:$0xff] }
 0x341   : > { %4223 = vmatpush1.bf16.msra.mxu1 %v6224_v21  ;;  %v7724_v21 = vpack.c.bf16 %v2478_v13, %v2478_v13  ;;  %v6359_v13 = vld [vmem:[#allocation8 + $0x780] ss:$16 sps:$4 sm:$0xff]  }
 0x342   : > { %4224 = vmatprep.subr.bf16.mxu1 %v6232_v54  ;;  %v2473_v54 = vadd.f32 %v7707_v20, %v2423_v25  ;;  %v6307_v20 = vld [vmem:[#allocation8 + $0x664] ss:$16 sps:$4 sm:$0xff]   ;;  %v6376_v25 = vld [vmem:[#allocation8 + $0x3cc] ss:$16 sps:$4 sm:$0xff]  }
 0x343   : > { %4143 = vmatpush1.bf16.msra.mxu0 %v6227_v26  ;;  %v6293_v26 = vld [vmem:[#allocation8 + $0x620] ss:$16 sps:$4 sm:$0xff]  }
 0x344   : > { %4144 = vmatprep.subr.bf16.mxu0 %v6235_v28  ;;  %v6304_v28 = vld [vmem:[#allocation8 + $0x24c] ss:$16 sps:$4 sm:$0xff]   ;;  %v2481_v29 = vmax.f32 %v2473_v54, 0.0 }
 0x345   : > { %4225 = vmatpush1.bf16.msra.mxu1 %v6230_v55  ;;  %v6301_v55 = vld [vmem:[#allocation8 + $0x644] ss:$16 sps:$4 sm:$0xff]   ;;  %v2422_v54 = vld [vmem:[#allocation2 + $0x30] sm:$0xff] }
 0x346   : > { %4226 = vmatprep.subr.bf16.mxu1 %v6238_v31  ;;  %v7730_v31 = vpack.c.bf16 %v2481_v29, %v2481_v29  ;;  %v6382_v29 = vld [vmem:[#allocation8 + $0x3ec] ss:$16 sps:$4 sm:$0xff]  }
 0x347   : > { %4145 = vmatpush1.bf16.msra.mxu0 %v6233_v33  ;;  %v6302_v33 = vld [vmem:[#allocation8 + $0x248] ss:$16 sps:$4 sm:$0xff]  }
 0x348   : > { %4146 = vmatprep.subr.bf16.mxu0 %v6241_v11  ;;  %v6308_v11 = vld [vmem:[#allocation8 + $0x268] ss:$16 sps:$4 sm:$0xff]  }
 0x349   : > { %4227 = vmatpush1.bf16.msra.mxu1 %v6236_v34  ;;  %v6305_v34 = vld [vmem:[#allocation8 + $0x660] ss:$16 sps:$4 sm:$0xff]  }
 0x34a   : > { %4228 = vmatprep.subr.bf16.mxu1 %v6244_v36  ;;  %v6313_v36 = vld [vmem:[#allocation8 + $0x684] ss:$16 sps:$4 sm:$0xff]  }
 0x34b   : > { %4147 = vmatpush1.bf16.msra.mxu0 %v6239_v37  ;;  %v6311_v37 = vld [vmem:[#allocation8 + $0x680] ss:$16 sps:$4 sm:$0xff]  }
 0x34c   : > { %4148 = vmatprep.subr.bf16.mxu0 %v6247_v39  ;;  %v6319_v39 = vld [vmem:[#allocation8 + $0x6a4] ss:$16 sps:$4 sm:$0xff]  }
 0x34d   : > { %4229 = vmatpush1.bf16.msra.mxu1 %v6242_v38  ;;  %v6314_v38 = vld [vmem:[#allocation8 + $0x288] ss:$16 sps:$4 sm:$0xff]  }
 0x34e   : > { %4230 = vmatprep.subr.bf16.mxu1 %v6250_v40  ;;  %v6322_v40 = vld [vmem:[#allocation8 + $0x2ac] ss:$16 sps:$4 sm:$0xff]  }
 0x34f   : > { %4149 = vmatpush1.bf16.msra.mxu0 %v6245_v41  ;;  %v6317_v41 = vld [vmem:[#allocation8 + $0x6a0] ss:$16 sps:$4 sm:$0xff]  }
 0x350   : > { %4150 = vmatprep.subr.bf16.mxu0 %v6253_v43  ;;  %v6325_v43 = vld [vmem:[#allocation8 + $0x6c4] ss:$16 sps:$4 sm:$0xff]  }
 0x351   : > { %4231 = vmatpush1.bf16.msra.mxu1 %v6248_v42  ;;  %v6320_v42 = vld [vmem:[#allocation8 + $0x2a8] ss:$16 sps:$4 sm:$0xff]  }
 0x352   : > { %4232 = vmatprep.subr.bf16.mxu1 %v6256_v17  ;;  %v6328_v17 = vld [vmem:[#allocation8 + $0x2cc] ss:$16 sps:$4 sm:$0xff]  }
 0x353   : > { %4151 = vmatpush1.bf16.msra.mxu0 %v6251_v44  ;;  %v6323_v44 = vld [vmem:[#allocation8 + $0x6c0] ss:$16 sps:$4 sm:$0xff]  }
 0x354   : > { %4152 = vmatprep.subr.bf16.mxu0 %v6259_v46  ;;  %v6331_v46 = vld [vmem:[#allocation8 + $0x6e4] ss:$16 sps:$4 sm:$0xff]  }
 0x355   : > { %4233 = vmatpush1.bf16.msra.mxu1 %v6254_v45  ;;  %v6326_v45 = vld [vmem:[#allocation8 + $0x2c8] ss:$16 sps:$4 sm:$0xff]  }
 0x356   : > { %4234 = vmatprep.subr.bf16.mxu1 %v6262_v48  ;;  %v6334_v48 = vld [vmem:[#allocation8 + $0x2ec] ss:$16 sps:$4 sm:$0xff]  }
 0x357   : > { %4153 = vmatpush1.bf16.msra.mxu0 %v6257_v49  ;;  %v6329_v49 = vld [vmem:[#allocation8 + $0x6e0] ss:$16 sps:$4 sm:$0xff]  }
 0x358   : > { %4154 = vmatprep.subr.bf16.mxu0 %v6265_v51  ;;  %v6337_v51 = vld [vmem:[#allocation8 + $0x704] ss:$16 sps:$4 sm:$0xff]  }
 0x359   : > { %4235 = vmatpush1.bf16.msra.mxu1 %v6260_v50  ;;  %v6332_v50 = vld [vmem:[#allocation8 + $0x2e8] ss:$16 sps:$4 sm:$0xff]  }
 0x35a   : > { %4236 = vmatprep.subr.bf16.mxu1 %v6268_v56  ;;  %v6340_v56 = vld [vmem:[#allocation8 + $0x30c] ss:$16 sps:$4 sm:$0xff]  }
 0x35b   : > { %4155 = vmatpush1.bf16.msra.mxu0 %v6263_v57  ;;  %v6335_v57 = vld [vmem:[#allocation8 + $0x700] ss:$16 sps:$4 sm:$0xff]  }
 0x35c   : > { %4156 = vmatprep.subr.bf16.mxu0 %v6271_v61  ;;  %v6343_v61 = vld [vmem:[#allocation8 + $0x724] ss:$16 sps:$4 sm:$0xff]  }
 0x35d   : > { %4237 = vmatpush1.bf16.msra.mxu1 %v6266_v58  ;;  %v6338_v58 = vld [vmem:[#allocation8 + $0x308] ss:$16 sps:$4 sm:$0xff]  }
 0x35e   : > { %4238 = vmatprep.subr.bf16.mxu1 %v6274_v59  ;;  %v6346_v59 = vld [vmem:[#allocation8 + $0x32c] ss:$16 sps:$4 sm:$0xff]  }
 0x35f   : > { %4157 = vmatpush1.bf16.msra.mxu0 %v6269_v62  ;;  %v6341_v62 = vld [vmem:[#allocation8 + $0x720] ss:$16 sps:$4 sm:$0xff]  }
 0x360   : > { %4158 = vmatprep.subr.bf16.mxu0 %v6277_v0  ;;  %v6349_v0 = vld [vmem:[#allocation8 + $0x744] ss:$16 sps:$4 sm:$0xff]  }
 0x361   : > { %4239 = vmatpush1.bf16.msra.mxu1 %v6272_v60  ;;  %v6344_v60 = vld [vmem:[#allocation8 + $0x328] ss:$16 sps:$4 sm:$0xff]  }
 0x362   : > { %4240 = vmatprep.subr.bf16.mxu1 %v6280_v2  ;;  %v6347_v2 = vld [vmem:[#allocation8 + $0x740] ss:$16 sps:$4 sm:$0xff]  }
 0x363   : > { %4159 = vmatpush1.bf16.msra.mxu0 %v6275_v3  ;;  %v6350_v3 = vld [vmem:[#allocation8 + $0x348] ss:$16 sps:$4 sm:$0xff]  }
 0x364   : > { %4160 = vmatprep.subr.bf16.mxu0 %v6283_v8  ;;  %v6353_v8 = vld [vmem:[#allocation8 + $0x760] ss:$16 sps:$4 sm:$0xff]  }
 0x365   : > { %4241 = vmatpush1.bf16.msra.mxu1 %v6278_v6  ;;  %v6355_v6 = vld [vmem:[#allocation8 + $0x764] ss:$16 sps:$4 sm:$0xff]  }
 0x366   : > { %4242 = vmatprep.subr.bf16.mxu1 %v6286_v9  ;;  %v6356_v9 = vld [vmem:[#allocation8 + $0x368] ss:$16 sps:$4 sm:$0xff]  }
 0x367   : > { %4161 = vmatpush1.bf16.msra.mxu0 %v6281_v10  ;;  %v6361_v10 = vld [vmem:[#allocation8 + $0x784] ss:$16 sps:$4 sm:$0xff]  }
 0x368   : > { %4171 = vmatprep.subr.bf16.mxu0 %v6289_v14  ;;  %v6362_v14 = vld [vmem:[#allocation8 + $0x388] ss:$16 sps:$4 sm:$0xff]  }
 0x369   : > { %4243 = vmatpush1.bf16.msra.mxu1 %v6284_v12  ;;  %v6364_v12 = vld [vmem:[#allocation8 + $0x38c] ss:$16 sps:$4 sm:$0xff]  }
 0x36a   : > { %4253 = vmatprep.subr.bf16.mxu1 %v6292_v15  ;;  %4163 = vmatmul.mubr.bf16.vlgmr.msra.gmra.mrb[0].mxu0 %v7724_v21  ;;  %v6367_v15 = vld [vmem:[#allocation8 + $0x7a4] ss:$16 sps:$4 sm:$0xff]  }
 0x36b   : > { %4172 = vmatpush1.bf16.msra.mxu0 %v6287_v16  ;;  %4203 = vmatprep.mubr.bf16.mxu0 %v7730_v31  ;;  %v6370_v16 = vld [vmem:[#allocation8 + $0x3ac] ss:$16 sps:$4 sm:$0xff]  }
 0x36c   : > { %4245 = vmatmul.mubr.bf16.vlgmr.msra.gmra.mrb[4].mxu1 %v7712_v52  ;;  %4173 = vmatprep.subr.bf16.mxu0 %v6295_v18  ;;  %v6310_v52 = vld [vmem:[#allocation8 + $0x26c] ss:$16 sps:$4 sm:$0xff]   ;;  %v6368_v18 = vld [vmem:[#allocation8 + $0x3a8] ss:$16 sps:$4 sm:$0xff]  }
 0x36d   : > { %4254 = vmatpush1.bf16.msra.mxu1 %v6290_v19  ;;  %4285 = vmatprep.mubr.bf16.mxu1 %v7696_v30  ;;  %v6316_v30 = vld [vmem:[#allocation8 + $0x28c] ss:$16 sps:$4 sm:$0xff]   ;;  %v6365_v19 = vld [vmem:[#allocation8 + $0x7a0] ss:$16 sps:$4 sm:$0xff]  }
 0x36e   : > { %4255 = vmatprep.subr.bf16.mxu1 %v6298_v22  ;;  %v6373_v22 = vld [vmem:[#allocation8 + $0x7c4] ss:$16 sps:$4 sm:$0xff]  }
 0x36f   : > { %4174 = vmatpush1.bf16.msra.mxu0 %v6293_v26  ;;  %v6371_v26 = vld [vmem:[#allocation8 + $0x7c0] ss:$16 sps:$4 sm:$0xff]  }
 0x370   : > { %4175 = vmatprep.subr.bf16.mxu0 %v6301_v55  ;;  %v2472_v55 = vadd.f32 %v7710_v47, %v2422_v54  ;;  %v6479_v47 = vld [vmem:[#allocation11] ss:$8 sps:$4 sm:$0xff]  }
 0x371   : > { %4256 = vmatpush1.bf16.msra.mxu1 %v6296_v27  ;;  %v6374_v27 = vld [vmem:[#allocation8 + $0x3c8] ss:$16 sps:$4 sm:$0xff]   ;;  %v6421_v54 = vld [vmem:[#allocation8 + $0x58c] ss:$16 sps:$4 sm:$0xff]  }
 0x372   : > { %4257 = vmatprep.subr.bf16.mxu1 %v6304_v28  ;;  %v6379_v28 = vld [vmem:[#allocation8 + $0x7e4] ss:$16 sps:$4 sm:$0xff]  }
 0x373   : > { %4176 = vmatpush1.bf16.msra.mxu0 %v6299_v32  ;;  %v6377_v32 = vld [vmem:[#allocation8 + $0x7e0] ss:$16 sps:$4 sm:$0xff]  }
 0x374   : > { %4177 = vmatprep.subr.bf16.mxu0 %v6307_v20  ;;  %v6380_v20 = vld [vmem:[#allocation8 + $0x3e8] ss:$16 sps:$4 sm:$0xff]  }
 0x375   : > { %4258 = vmatpush1.bf16.msra.mxu1 %v6302_v33  ;;  %v2480_v33 = vmax.f32 %v2472_v55, 0.0  ;;  %v6419_v55 = vld [vmem:[#allocation8 + $0x588] ss:$16 sps:$4 sm:$0xff]  }
 0x376   : > { %4259 = vmatprep.subr.bf16.mxu1 %v6310_v52  ;;  %v6385_v52 = vld [vmem:[#allocation8 + $0x40c] ss:$16 sps:$4 sm:$0xff]  }
 0x377   : > { %4178 = vmatpush1.bf16.msra.mxu0 %v6305_v34  ;;  %v6383_v34 = vld [vmem:[#allocation8 + $0x408] ss:$16 sps:$4 sm:$0xff]  }
 0x378   : > { %4179 = vmatprep.subr.bf16.mxu0 %v6313_v36  ;;  %v6388_v36 = vld [vmem:[#allocation8 + $0x42c] ss:$16 sps:$4 sm:$0xff]  }
 0x379   : > { %4260 = vmatpush1.bf16.msra.mxu1 %v6308_v11  ;;  %v7734_v11 = vpack.c.bf16 %v2480_v33, %v2480_v33  ;;  %v6422_v33 = vld [vmem:[#allocation8 + $0x5a8] ss:$16 sps:$4 sm:$0xff]  }
 0x37a   : > { %4261 = vmatprep.subr.bf16.mxu1 %v6316_v30  ;;  %v6481_v30 = vld [vmem:[#allocation11 + $0x4] ss:$8 sps:$4 sm:$0xff]  }
 0x37b   : > { %4180 = vmatpush1.bf16.msra.mxu0 %v6311_v37  ;;  %v6386_v37 = vld [vmem:[#allocation8 + $0x428] ss:$16 sps:$4 sm:$0xff]  }
 0x37c   : > { %4181 = vmatprep.subr.bf16.mxu0 %v6319_v39  ;;  %v6391_v39 = vld [vmem:[#allocation8 + $0x44c] ss:$16 sps:$4 sm:$0xff]  }
 0x37d   : > { %4262 = vmatpush1.bf16.msra.mxu1 %v6314_v38  ;;  %v6484_v38 = vld [vmem:[#allocation11 + $0x14] ss:$8 sps:$4 sm:$0xff]  }
 0x37e   : > { %4263 = vmatprep.subr.bf16.mxu1 %v6322_v40  ;;  %v6482_v40 = vld [vmem:[#allocation11 + $0x10] ss:$8 sps:$4 sm:$0xff]  }
 0x37f   : > { %4182 = vmatpush1.bf16.msra.mxu0 %v6317_v41  ;;  %v6487_v41 = vld [vmem:[#allocation11 + $0x24] ss:$8 sps:$4 sm:$0xff]  }
 0x380   : > { %4183 = vmatprep.subr.bf16.mxu0 %v6325_v43  ;;  %v6394_v43 = vld [vmem:[#allocation8 + $0x46c] ss:$16 sps:$4 sm:$0xff]  }
 0x381   : > { %4264 = vmatpush1.bf16.msra.mxu1 %v6320_v42  ;;  %v6389_v42 = vld [vmem:[#allocation8 + $0x448] ss:$16 sps:$4 sm:$0xff]  }
 0x382   : > { %4265 = vmatprep.subr.bf16.mxu1 %v6328_v17  ;;  %v6392_v17 = vld [vmem:[#allocation8 + $0x468] ss:$16 sps:$4 sm:$0xff]  }
 0x383   : > { %4184 = vmatpush1.bf16.msra.mxu0 %v6323_v44  ;;  %v6397_v44 = vld [vmem:[#allocation8 + $0x48c] ss:$16 sps:$4 sm:$0xff]  }
 0x384   : > { %4185 = vmatprep.subr.bf16.mxu0 %v6331_v46  ;;  %v6493_v46 = vld [vmem:[#allocation11 + $0x44] ss:$8 sps:$4 sm:$0xff]  }
 0x385   : > { %4266 = vmatpush1.bf16.msra.mxu1 %v6326_v45  ;;  %v6490_v45 = vld [vmem:[#allocation11 + $0x34] ss:$8 sps:$4 sm:$0xff]  }
 0x386   : > { %4267 = vmatprep.subr.bf16.mxu1 %v6334_v48  ;;  %v6395_v48 = vld [vmem:[#allocation8 + $0x488] ss:$16 sps:$4 sm:$0xff]  }
 0x387   : > { %4186 = vmatpush1.bf16.msra.mxu0 %v6329_v49  ;;  %v6400_v49 = vld [vmem:[#allocation8 + $0x4ac] ss:$16 sps:$4 sm:$0xff]  }
 0x388   : > { %4187 = vmatprep.subr.bf16.mxu0 %v6337_v51  ;;  %v6496_v51 = vld [vmem:[#allocation11 + $0x54] ss:$8 sps:$4 sm:$0xff]  }
 0x389   : > { %4268 = vmatpush1.bf16.msra.mxu1 %v6332_v50  ;;  %v6491_v50 = vld [vmem:[#allocation11 + $0x40] ss:$8 sps:$4 sm:$0xff]  }
 0x38a   : > { %4269 = vmatprep.subr.bf16.mxu1 %v6340_v56  ;;  %v6398_v56 = vld [vmem:[#allocation8 + $0x4a8] ss:$16 sps:$4 sm:$0xff]  }
 0x38b   : > { %4188 = vmatpush1.bf16.msra.mxu0 %v6335_v57  ;;  %v6403_v57 = vld [vmem:[#allocation8 + $0x4cc] ss:$16 sps:$4 sm:$0xff]  }
 0x38c   : > { %4189 = vmatprep.subr.bf16.mxu0 %v6343_v61  ;;  %v6499_v61 = vld [vmem:[#allocation11 + $0x64] ss:$8 sps:$4 sm:$0xff]  }
 0x38d   : > { %4270 = vmatpush1.bf16.msra.mxu1 %v6338_v58  ;;  %v6494_v58 = vld [vmem:[#allocation11 + $0x50] ss:$8 sps:$4 sm:$0xff]  }
 0x38e   : > { %4271 = vmatprep.subr.bf16.mxu1 %v6346_v59  ;;  %v6401_v59 = vld [vmem:[#allocation8 + $0x4c8] ss:$16 sps:$4 sm:$0xff]  }
 0x38f   : > { %4190 = vmatpush1.bf16.msra.mxu0 %v6341_v62  ;;  %v6406_v62 = vld [vmem:[#allocation8 + $0x4ec] ss:$16 sps:$4 sm:$0xff]  }
 0x390   : > { %4191 = vmatprep.subr.bf16.mxu0 %v6349_v0  ;;  %v6502_v0 = vld [vmem:[#allocation11 + $0x74] ss:$8 sps:$4 sm:$0xff]  }
 0x391   : > { %4272 = vmatpush1.bf16.msra.mxu1 %v6344_v60  ;;  %v6497_v60 = vld [vmem:[#allocation11 + $0x60] ss:$8 sps:$4 sm:$0xff]  }
 0x392   : > { %4273 = vmatprep.subr.bf16.mxu1 %v6352_v1  ;;  %v6404_v1 = vld [vmem:[#allocation8 + $0x4e8] ss:$16 sps:$4 sm:$0xff]  }
 0x393   : > { %4192 = vmatpush1.bf16.msra.mxu0 %v6347_v2  ;;  %v6409_v2 = vld [vmem:[#allocation8 + $0x50c] ss:$16 sps:$4 sm:$0xff]  }
 0x394   : > { %4193 = vmatprep.subr.bf16.mxu0 %v6355_v6  ;;  %v6505_v6 = vld [vmem:[#allocation11 + $0x84] ss:$8 sps:$4 sm:$0xff]  }
 0x395   : > { %4274 = vmatpush1.bf16.msra.mxu1 %v6350_v3  ;;  %v6500_v3 = vld [vmem:[#allocation11 + $0x70] ss:$8 sps:$4 sm:$0xff]  }
 0x396   : > { %4275 = vmatprep.subr.bf16.mxu1 %v6358_v7  ;;  %v6407_v7 = vld [vmem:[#allocation8 + $0x508] ss:$16 sps:$4 sm:$0xff]  }
 0x397   : > { %4194 = vmatpush1.bf16.msra.mxu0 %v6353_v8  ;;  %v6412_v8 = vld [vmem:[#allocation8 + $0x52c] ss:$16 sps:$4 sm:$0xff]  }
 0x398   : > { %4195 = vmatprep.subr.bf16.mxu0 %v6361_v10  ;;  %v6508_v10 = vld [vmem:[#allocation11 + $0x94] ss:$8 sps:$4 sm:$0xff]  }
 0x399   : > { %4276 = vmatpush1.bf16.msra.mxu1 %v6356_v9  ;;  %v6503_v9 = vld [vmem:[#allocation11 + $0x80] ss:$8 sps:$4 sm:$0xff]  }
 0x39a   : > { %4277 = vmatprep.subr.bf16.mxu1 %v6364_v12  ;;  %v6410_v12 = vld [vmem:[#allocation8 + $0x528] ss:$16 sps:$4 sm:$0xff]  }
 0x39b   : > { %4196 = vmatpush1.bf16.msra.mxu0 %v6359_v13  ;;  %v6415_v13 = vld [vmem:[#allocation8 + $0x54c] ss:$16 sps:$4 sm:$0xff]  }
 0x39c   : > { %4197 = vmatprep.subr.bf16.mxu0 %v6367_v15  ;;  %v6511_v15 = vld [vmem:[#allocation11 + $0xa4] ss:$8 sps:$4 sm:$0xff]  }
 0x39d   : > { %4278 = vmatpush1.bf16.msra.mxu1 %v6362_v14  ;;  %v6506_v14 = vld [vmem:[#allocation11 + $0x90] ss:$8 sps:$4 sm:$0xff]  }
 0x39e   : > { %4279 = vmatprep.subr.bf16.mxu1 %v6370_v16  ;;  %v6413_v16 = vld [vmem:[#allocation8 + $0x548] ss:$16 sps:$4 sm:$0xff]  }
 0x39f   : > { %4198 = vmatpush1.bf16.msra.mxu0 %v6365_v19  ;;  %v6418_v19 = vld [vmem:[#allocation8 + $0x56c] ss:$16 sps:$4 sm:$0xff]  }
 0x3a0   : > { %4199 = vmatprep.subr.bf16.mxu0 %v6373_v22  ;;  %v6514_v22 = vld [vmem:[#allocation11 + $0xb4] ss:$8 sps:$4 sm:$0xff]  }
 0x3a1   : > { %4280 = vmatpush1.bf16.msra.mxu1 %v6368_v18  ;;  %v6509_v18 = vld [vmem:[#allocation11 + $0xa0] ss:$8 sps:$4 sm:$0xff]  }
 0x3a2   : > { %4281 = vmatprep.subr.bf16.mxu1 %v6376_v25  ;;  %v6416_v25 = vld [vmem:[#allocation8 + $0x568] ss:$16 sps:$4 sm:$0xff]  }
 0x3a3   : > { %4200 = vmatpush1.bf16.msra.mxu0 %v6371_v26  ;;  %v6512_v26 = vld [vmem:[#allocation11 + $0xb0] ss:$8 sps:$4 sm:$0xff]  }
 0x3a4   : > { %4201 = vmatprep.subr.bf16.mxu0 %v6379_v28  ;;  %v6424_v28 = vld [vmem:[#allocation8 + $0x5ac] ss:$16 sps:$4 sm:$0xff]  }
 0x3a5   : > { %4282 = vmatpush1.bf16.msra.mxu1 %v6374_v27  ;;  %v6517_v27 = vld [vmem:[#allocation11 + $0xc4] ss:$8 sps:$4 sm:$0xff]  }
 0x3a6   : > { %4283 = vmatprep.subr.bf16.mxu1 %v6382_v29  ;;  %v6515_v29 = vld [vmem:[#allocation11 + $0xc0] ss:$8 sps:$4 sm:$0xff]  }
 0x3a7   : > { %4202 = vmatpush1.bf16.msra.mxu0 %v6377_v32  ;;  %v6520_v32 = vld [vmem:[#allocation11 + $0xd4] ss:$8 sps:$4 sm:$0xff]  }
 0x3a8   : > { %4780 = vmatprep.subr.bf16.mxu0 %v6481_v30  ;;  %v6433_v30 = vld [vmem:[#allocation8 + $0x60c] ss:$16 sps:$4 sm:$0xff]  }
 0x3a9   : > { %4284 = vmatpush1.bf16.msra.mxu1 %v6380_v20  ;;  %v6427_v20 = vld [vmem:[#allocation8 + $0x5cc] ss:$16 sps:$4 sm:$0xff]  }
 0x3aa   : > { %4294 = vmatprep.subr.bf16.mxu1 %v6385_v52  ;;  %4204 = vmatmul.mubr.bf16.vlgmr.msra.gmra.mrb[0].mxu0 %v7734_v11  ;;  %v6518_v52 = vld [vmem:[#allocation11 + $0xd0] ss:$8 sps:$4 sm:$0xff]  }
 0x3ab   : > { %4781 = vmatpush1.bf16.msra.mxu0 %v6479_v47  ;;  %v6428_v47 = vld [vmem:[#allocation8 + $0x5e8] ss:$16 sps:$4 sm:$0xff]  }
 0x3ac   : > { %4286 = vmatmul.mubr.bf16.vlgmr.msra.gmra.mrb[4].mxu1 %v7714_v53  ;;  %4782 = vmatprep.subr.bf16.mxu0 %v6484_v38  ;;  %v6485_v53 = vld [vmem:[#allocation11 + $0x20] ss:$8 sps:$4 sm:$0xff]  }
 0x3ad   : > { %4295 = vmatpush1.bf16.msra.mxu1 %v6383_v34  ;;  %4326 = vmatprep.mubr.bf16.mxu1 %v7720_v35  ;;  %v6488_v35 = vld [vmem:[#allocation11 + $0x30] ss:$8 sps:$4 sm:$0xff]   ;;  %v6425_v34 = vld [vmem:[#allocation8 + $0x5c8] ss:$16 sps:$4 sm:$0xff]  }
 0x3ae   : > { %4296 = vmatprep.subr.bf16.mxu1 %v6388_v36  ;;  %v6430_v36 = vld [vmem:[#allocation8 + $0x5ec] ss:$16 sps:$4 sm:$0xff]  }
 0x3af   : > { %4783 = vmatpush1.bf16.msra.mxu0 %v6482_v40  ;;  %v6436_v38 = vld [vmem:[#allocation8 + $0x62c] ss:$16 sps:$4 sm:$0xff]  }
 0x3b0   : > { %4784 = vmatprep.subr.bf16.mxu0 %v6487_v41  ;;  %v6439_v40 = vld [vmem:[#allocation8 + $0x64c] ss:$16 sps:$4 sm:$0xff]   ;;  %v6437_v41 = vld [vmem:[#allocation8 + $0x648] ss:$16 sps:$4 sm:$0xff]  }
 0x3b1   : > { %4297 = vmatpush1.bf16.msra.mxu1 %v6386_v37  ;;  %v6431_v37 = vld [vmem:[#allocation8 + $0x608] ss:$16 sps:$4 sm:$0xff]  }
 0x3b2   : > { %4298 = vmatprep.subr.bf16.mxu1 %v6391_v39  ;;  %v6434_v39 = vld [vmem:[#allocation8 + $0x628] ss:$16 sps:$4 sm:$0xff]  }
 0x3b3   : > { %4785 = vmatpush1.bf16.msra.mxu0 %v6485_v53  ;;  %v6445_v53 = vld [vmem:[#allocation8 + $0x68c] ss:$16 sps:$4 sm:$0xff]  }
 0x3b4   : > { %4786 = vmatprep.subr.bf16.mxu0 %v6490_v45  ;;  %v6451_v45 = vld [vmem:[#allocation8 + $0x6cc] ss:$16 sps:$4 sm:$0xff]  }
 0x3b5   : > { %4299 = vmatpush1.bf16.msra.mxu1 %v6389_v42  ;;  %v6442_v42 = vld [vmem:[#allocation8 + $0x66c] ss:$16 sps:$4 sm:$0xff]  }
 0x3b6   : > { %4300 = vmatprep.subr.bf16.mxu1 %v6394_v43  ;;  %v6440_v43 = vld [vmem:[#allocation8 + $0x668] ss:$16 sps:$4 sm:$0xff]  }
 0x3b7   : > { %4787 = vmatpush1.bf16.msra.mxu0 %v6488_v35  ;;  %v6523_v35 = vld [vmem:[#allocation11 + $0xe4] ss:$8 sps:$4 sm:$0xff]  }
 0x3b8   : > { %4788 = vmatprep.subr.bf16.mxu0 %v6493_v46  ;;  %v6521_v46 = vld [vmem:[#allocation11 + $0xe0] ss:$8 sps:$4 sm:$0xff]  }
 0x3b9   : > { %4301 = vmatpush1.bf16.msra.mxu1 %v6392_v17  ;;  %v6443_v17 = vld [vmem:[#allocation8 + $0x688] ss:$16 sps:$4 sm:$0xff]  }
 0x3ba   : > { %4302 = vmatprep.subr.bf16.mxu1 %v6397_v44  ;;  %v6448_v44 = vld [vmem:[#allocation8 + $0x6ac] ss:$16 sps:$4 sm:$0xff]  }
 0x3bb   : > { %4789 = vmatpush1.bf16.msra.mxu0 %v6491_v50  ;;  %v6449_v50 = vld [vmem:[#allocation8 + $0x6c8] ss:$16 sps:$4 sm:$0xff]  }
 0x3bc   : > { %4790 = vmatprep.subr.bf16.mxu0 %v6496_v51 }
 0x3bd   : > { %4303 = vmatpush1.bf16.msra.mxu1 %v6395_v48 }
 0x3be   : > { %4304 = vmatprep.subr.bf16.mxu1 %v6400_v49 }
 0x3bf   : > { %4791 = vmatpush1.bf16.msra.mxu0 %v6494_v58  ;;  %v6524_v58 = vld [vmem:[#allocation11 + $0xf0] ss:$8 sps:$4 sm:$0xff]  }
 0x3c0   : > { %4792 = vmatprep.subr.bf16.mxu0 %v6499_v61  ;;  %v6452_v61 = vld [vmem:[#allocation8 + $0x6e8] ss:$16 sps:$4 sm:$0xff]  }
 0x3c1   : > { %4305 = vmatpush1.bf16.msra.mxu1 %v6398_v56  ;;  %v6454_v56 = vld [vmem:[#allocation8 + $0x6ec] ss:$16 sps:$4 sm:$0xff]  }
 0x3c2   : > { %4306 = vmatprep.subr.bf16.mxu1 %v6403_v57  ;;  %v6526_v57 = vld [vmem:[#allocation11 + $0xf4] ss:$8 sps:$4 sm:$0xff]  }
 0x3c3   : > { %4793 = vmatpush1.bf16.msra.mxu0 %v6497_v60  ;;  %v6455_v60 = vld [vmem:[#allocation8 + $0x708] ss:$16 sps:$4 sm:$0xff]  }
 0x3c4   : > { %4794 = vmatprep.subr.bf16.mxu0 %v6502_v0  ;;  %v6460_v0 = vld [vmem:[#allocation8 + $0x72c] ss:$16 sps:$4 sm:$0xff]  }
 0x3c5   : > { %4307 = vmatpush1.bf16.msra.mxu1 %v6401_v59  ;;  %v6457_v59 = vld [vmem:[#allocation8 + $0x70c] ss:$16 sps:$4 sm:$0xff]  }
 0x3c6   : > { %4308 = vmatprep.subr.bf16.mxu1 %v6406_v62  ;;  %v6529_v62 = vld [vmem:[#allocation11 + $0x104] ss:$8 sps:$4 sm:$0xff]  }
 0x3c7   : > { %4795 = vmatpush1.bf16.msra.mxu0 %v6500_v3  ;;  %v6461_v3 = vld [vmem:[#allocation8 + $0x748] ss:$16 sps:$4 sm:$0xff]  }
 0x3c8   : > { %4796 = vmatprep.subr.bf16.mxu0 %v6505_v6  ;;  %v6466_v6 = vld [vmem:[#allocation8 + $0x76c] ss:$16 sps:$4 sm:$0xff]  }
 0x3c9   : > { %4309 = vmatpush1.bf16.msra.mxu1 %v6404_v1  ;;  %v6458_v1 = vld [vmem:[#allocation8 + $0x728] ss:$16 sps:$4 sm:$0xff]  }
 0x3ca   : > { %4310 = vmatprep.subr.bf16.mxu1 %v6409_v2  ;;  %v6463_v2 = vld [vmem:[#allocation8 + $0x74c] ss:$16 sps:$4 sm:$0xff]  }
 0x3cb   : > { %4797 = vmatpush1.bf16.msra.mxu0 %v6503_v9  ;;  %v6467_v9 = vld [vmem:[#allocation8 + $0x788] ss:$16 sps:$4 sm:$0xff]  }
 0x3cc   : > { %4798 = vmatprep.subr.bf16.mxu0 %v6508_v10  ;;  %v6472_v10 = vld [vmem:[#allocation8 + $0x7ac] ss:$16 sps:$4 sm:$0xff]  }
 0x3cd   : > { %4311 = vmatpush1.bf16.msra.mxu1 %v6407_v7  ;;  %v6464_v7 = vld [vmem:[#allocation8 + $0x768] ss:$16 sps:$4 sm:$0xff]  }
 0x3ce   : > { %4312 = vmatprep.subr.bf16.mxu1 %v6412_v8  ;;  %v6469_v8 = vld [vmem:[#allocation8 + $0x78c] ss:$16 sps:$4 sm:$0xff]  }
 0x3cf   : > { %4799 = vmatpush1.bf16.msra.mxu0 %v6506_v14  ;;  %v6473_v14 = vld [vmem:[#allocation8 + $0x7c8] ss:$16 sps:$4 sm:$0xff]  }
 0x3d0   : > { %4800 = vmatprep.subr.bf16.mxu0 %v6511_v15  ;;  %v6478_v15 = vld [vmem:[#allocation8 + $0x7ec] ss:$16 sps:$4 sm:$0xff]  }
 0x3d1   : > { %4313 = vmatpush1.bf16.msra.mxu1 %v6410_v12  ;;  %v6470_v12 = vld [vmem:[#allocation8 + $0x7a8] ss:$16 sps:$4 sm:$0xff]  }
 0x3d2   : > { %4314 = vmatprep.subr.bf16.mxu1 %v6415_v13  ;;  %v6475_v13 = vld [vmem:[#allocation8 + $0x7cc] ss:$16 sps:$4 sm:$0xff]  }
 0x3d3   : > { %4801 = vmatpush1.bf16.msra.mxu0 %v6509_v18 }
 0x3d4   : > { %4802 = vmatprep.subr.bf16.mxu0 %v6514_v22 }
 0x3d5   : > { %4315 = vmatpush1.bf16.msra.mxu1 %v6413_v16  ;;  %v6476_v16 = vld [vmem:[#allocation8 + $0x7e8] ss:$16 sps:$4 sm:$0xff]  }
 0x3d6   : > { %4316 = vmatprep.subr.bf16.mxu1 %v6418_v19  ;;  %v7742_v19 = vld [vmem:[#allocation9] sm:$0xf] }
 0x3d7   : > { %4803 = vmatpush1.bf16.msra.mxu0 %v6512_v26  ;;  %v2751_v18 = vrot.slane %v7742_v19, %v7693_v23  ;;  %v2755_v22 = vrot.slane %v7742_v19, %v7678_v4 }
 0x3d8   : > { %4804 = vmatprep.subr.bf16.mxu0 %v6517_v27 }
 0x3d9   : > { %4317 = vmatpush1.bf16.msra.mxu1 %v6416_v25 }
 0x3da   : > { %4318 = vmatprep.subr.bf16.mxu1 %v6421_v54 }
 0x3db   : > { %4805 = vmatpush1.bf16.msra.mxu0 %v6515_v29 }
 0x3dc   : > { %4806 = vmatprep.subr.bf16.mxu0 %v6520_v32 }
 0x3dd   : > { %4319 = vmatpush1.bf16.msra.mxu1 %v6419_v55 }
 0x3de   : > { %4320 = vmatprep.subr.bf16.mxu1 %v6424_v28 }
 0x3df   : > { %4807 = vmatpush1.bf16.msra.mxu0 %v6518_v52 }
 0x3e0   : > { %4808 = vmatprep.subr.bf16.mxu0 %v6523_v35  ;;  %v6583_v35 = vld [vmem:[#allocation14 + $0x60] sm:$0xff]  }
 0x3e1   : > { %4321 = vmatpush1.bf16.msra.mxu1 %v6422_v33 }
 0x3e2   : > { %4322 = vmatprep.subr.bf16.mxu1 %v6427_v20 }
 0x3e3   : > { %4809 = vmatpush1.bf16.msra.mxu0 %v6521_v46  ;;  %v6544_v46 = vld [vmem:[#allocation11 + $0x154] ss:$8 sps:$4 sm:$0xff]  }
 0x3e4   : > { %4810 = vmatprep.subr.bf16.mxu0 %v6526_v57  ;;  %v6545_v57 = vld [vmem:[#allocation11 + $0x160] ss:$8 sps:$4 sm:$0xff]  }
 0x3e5   : > { %4323 = vmatpush1.bf16.msra.mxu1 %v6425_v34 }
 0x3e6   : > { %4324 = vmatprep.subr.bf16.mxu1 %v6430_v36  ;;  %v6532_v36 = vld [vmem:[#allocation11 + $0x114] ss:$8 sps:$4 sm:$0xff]  }
 0x3e7   : > { %4811 = vmatpush1.bf16.msra.mxu0 %v6524_v58  ;;  %v6550_v58 = vld [vmem:[#allocation11 + $0x174] ss:$8 sps:$4 sm:$0xff]  }
 0x3e8   : > { %4821 = vmatprep.subr.bf16.mxu0 %v6529_v62  ;;  %v6551_v62 = vld [vmem:[#allocation11 + $0x180] ss:$8 sps:$4 sm:$0xff]  }
 0x3e9   : > { %4325 = vmatpush1.bf16.msra.mxu1 %v6428_v47  ;;  %v6575_v47 = vld [vmem:[#allocation14 + $0x40] sm:$0xff]  }
 0x3ea   : > { %4335 = vmatprep.subr.bf16.mxu1 %v6433_v30  ;;  %v6576_v30 = vld [vmem:[#allocation14] sm:$0xff]  }
 0x3ec   : > { %4327 = vmatmul.mubr.bf16.vlgmr.msra.gmra.mrb[4].mxu1 %v7724_v21  ;;  %v6446_v21 = vld [vmem:[#allocation8 + $0x6a8] ss:$16 sps:$4 sm:$0xff]  }
 0x3ed   : > { %4336 = vmatpush1.bf16.msra.mxu1 %v6431_v37  ;;  %4367 = vmatprep.mubr.bf16.mxu1 %v7730_v31  ;;  %v6577_v37 = vld [vmem:[#allocation14 + $0x48] sm:$0xff]  }
 0x3ee   : > { %4337 = vmatprep.subr.bf16.mxu1 %v6436_v38  ;;  %v6530_v38 = vld [vmem:[#allocation11 + $0x110] ss:$8 sps:$4 sm:$0xff]  }
 0x3f1   : > { %4338 = vmatpush1.bf16.msra.mxu1 %v6434_v39  ;;  %v6535_v39 = vld [vmem:[#allocation11 + $0x124] ss:$8 sps:$4 sm:$0xff]  }
 0x3f2   : > { %4339 = vmatprep.subr.bf16.mxu1 %v6439_v40  ;;  %v6578_v40 = vld [vmem:[#allocation14 + $0x8] sm:$0xff]  }
 0x3f5   : > { %4340 = vmatpush1.bf16.msra.mxu1 %v6437_v41  ;;  %v6579_v41 = vld [vmem:[#allocation14 + $0x50] sm:$0xff]  }
 0x3f6   : > { %4341 = vmatprep.subr.bf16.mxu1 %v6442_v42  ;;  %v6533_v42 = vld [vmem:[#allocation11 + $0x120] ss:$8 sps:$4 sm:$0xff]  }
 0x3f9   : > { %4342 = vmatpush1.bf16.msra.mxu1 %v6440_v43  ;;  %v6538_v43 = vld [vmem:[#allocation11 + $0x134] ss:$8 sps:$4 sm:$0xff]  }
 0x3fa   : > { %4343 = vmatprep.subr.bf16.mxu1 %v6445_v53  ;;  %v6580_v53 = vld [vmem:[#allocation14 + $0x10] sm:$0xff]  }
 0x3fd   : > { %4344 = vmatpush1.bf16.msra.mxu1 %v6443_v17  ;;  %v6581_v17 = vld [vmem:[#allocation14 + $0x58] sm:$0xff]  }
 0x3fe   : > { %4345 = vmatprep.subr.bf16.mxu1 %v6448_v44  ;;  %v6536_v44 = vld [vmem:[#allocation11 + $0x130] ss:$8 sps:$4 sm:$0xff]  }
 0x3ff   : > { %v4082_v31 = vpop.f32.mrb[0].mxu1 }
 0x400   : > { %v4084_v48 = vpop.f32.mrb[1].mxu1  ;;  %v4083_v25 = vadd.f32 %v4082_v31, %v2751_v18  ;;  %v6539_v31 = vld [vmem:[#allocation11 + $0x140] ss:$8 sps:$4 sm:$0xff]   ;;  %v2763_v18 = vrot.slane %v7742_v19, %v2440_v5 }
 0x401   : > { %v4086_v49 = vpop.f32.mrb[2].mxu1  ;;  %4346 = vmatpush1.bf16.msra.mxu1 %v6446_v21  ;;  %v4085_v54 = vadd.f32 %v4084_v48, %v2755_v22  ;;  %v6541_v21 = vld [vmem:[#allocation11 + $0x144] ss:$8 sps:$4 sm:$0xff]   ;;  %v4448_v5 = vld [vmem:[#allocation12] sm:$0x3] }
 0x402   : > { %v4087_v51 = vpop.f32.mrb[3].mxu1  ;;  %4347 = vmatprep.subr.bf16.mxu1 %v6451_v45  ;;  %v6582_v45 = vld [vmem:[#allocation14 + $0x18] sm:$0xff]   ;;  %v6584_v48 = vld [vmem:[#allocation14 + $0x20] sm:$0xff]   ;;  %v6585_v49 = vld [vmem:[#allocation14 + $0x68] sm:$0xff]  }
 0x403   : > { %v6547_v51 = vld [vmem:[#allocation11 + $0x164] ss:$8 sps:$4 sm:$0xff]  }
 0x405   : > { %4348 = vmatpush1.bf16.msra.mxu1 %v6449_v50  ;;  %v6542_v50 = vld [vmem:[#allocation11 + $0x150] ss:$8 sps:$4 sm:$0xff]  }
 0x406   : > { %4349 = vmatprep.subr.bf16.mxu1 %v6454_v56  ;;  %v6586_v56 = vld [vmem:[#allocation14 + $0x28] sm:$0xff]  }
 0x409   : > { %4350 = vmatpush1.bf16.msra.mxu1 %v6452_v61  ;;  %v6548_v61 = vld [vmem:[#allocation11 + $0x170] ss:$8 sps:$4 sm:$0xff]  }
 0x40a   : > { %4351 = vmatprep.subr.bf16.mxu1 %v6457_v59  ;;  %v6553_v59 = vld [vmem:[#allocation11 + $0x184] ss:$8 sps:$4 sm:$0xff]  }
 0x40d   : > { %4352 = vmatpush1.bf16.msra.mxu1 %v6455_v60  ;;  %v6556_v60 = vld [vmem:[#allocation11 + $0x194] ss:$8 sps:$4 sm:$0xff]  }
 0x40e   : > { %4353 = vmatprep.subr.bf16.mxu1 %v6460_v0  ;;  %v6554_v0 = vld [vmem:[#allocation11 + $0x190] ss:$8 sps:$4 sm:$0xff]  }
 0x411   : > { %4354 = vmatpush1.bf16.msra.mxu1 %v6458_v1  ;;  %v6559_v1 = vld [vmem:[#allocation11 + $0x1a4] ss:$8 sps:$4 sm:$0xff]  }
 0x412   : > { %4355 = vmatprep.subr.bf16.mxu1 %v6463_v2  ;;  %v6557_v2 = vld [vmem:[#allocation11 + $0x1a0] ss:$8 sps:$4 sm:$0xff]  }
 0x415   : > { %4356 = vmatpush1.bf16.msra.mxu1 %v6461_v3  ;;  %v6562_v3 = vld [vmem:[#allocation11 + $0x1b4] ss:$8 sps:$4 sm:$0xff]  }
 0x416   : > { %4357 = vmatprep.subr.bf16.mxu1 %v6466_v6  ;;  %v6560_v6 = vld [vmem:[#allocation11 + $0x1b0] ss:$8 sps:$4 sm:$0xff]  }
 0x419   : > { %4358 = vmatpush1.bf16.msra.mxu1 %v6464_v7  ;;  %v6565_v7 = vld [vmem:[#allocation11 + $0x1c4] ss:$8 sps:$4 sm:$0xff]  }
 0x41a   : > { %4359 = vmatprep.subr.bf16.mxu1 %v6469_v8  ;;  %v6563_v8 = vld [vmem:[#allocation11 + $0x1c0] ss:$8 sps:$4 sm:$0xff]  }
 0x41d   : > { %4360 = vmatpush1.bf16.msra.mxu1 %v6467_v9  ;;  %v6568_v9 = vld [vmem:[#allocation11 + $0x1d4] ss:$8 sps:$4 sm:$0xff]  }
 0x41e   : > { %4361 = vmatprep.subr.bf16.mxu1 %v6472_v10  ;;  %v6566_v10 = vld [vmem:[#allocation11 + $0x1d0] ss:$8 sps:$4 sm:$0xff]  }
 0x421   : > { %4362 = vmatpush1.bf16.msra.mxu1 %v6470_v12  ;;  %v6571_v12 = vld [vmem:[#allocation11 + $0x1e4] ss:$8 sps:$4 sm:$0xff]  }
 0x422   : > { %4363 = vmatprep.subr.bf16.mxu1 %v6475_v13  ;;  %v6569_v13 = vld [vmem:[#allocation11 + $0x1e0] ss:$8 sps:$4 sm:$0xff]  }
 0x425   : > { %4364 = vmatpush1.bf16.msra.mxu1 %v6473_v14  ;;  %v6574_v14 = vld [vmem:[#allocation11 + $0x1f4] ss:$8 sps:$4 sm:$0xff]  }
 0x426   : > { %4365 = vmatprep.subr.bf16.mxu1 %v6478_v15  ;;  %v6572_v15 = vld [vmem:[#allocation11 + $0x1f0] ss:$8 sps:$4 sm:$0xff]  }
 0x429   : > { %4366 = vmatpush1.bf16.msra.mxu1 %v6476_v16  ;;  %v2759_v16 = vrot.slane %v7742_v19, %v2436_v24  ;;  %v6589_v24 = vld [vmem:[#allocation14 + $0x78] sm:$0xff]   ;;  %v4453_v19 = vrot.slane %v4448_v5, %v7693_v23 }
 0x42a   : > { %5855 = vmatprep.subr.bf16.mxu1 %v6575_v47 }
 0x42c   : > { %4368 = vmatmul.mubr.bf16.vlgmr.msra.gmra.mrb[4].mxu1 %v7734_v11  ;;  %v6527_v11 = vld [vmem:[#allocation11 + $0x100] ss:$8 sps:$4 sm:$0xff]  }
 0x42d   : > { %5856 = vmatpush3.bf16.msra.mxu1 %v6576_v30 }
 0x42e   : > { %5857 = vmatprep.subr.bf16.mxu1 %v6577_v37 }
 0x431   : > { %5858 = vmatpush3.bf16.msra.mxu1 %v6578_v40 }
 0x432   : > { %5859 = vmatprep.subr.bf16.mxu1 %v6579_v41 }
 0x435   : > { %5860 = vmatpush3.bf16.msra.mxu1 %v6580_v53  ;;  %v5832_v53 = vld [vmem:[#allocation15] ss:$0 sm:$0xff] }
 0x436   : > { %5861 = vmatprep.subr.bf16.mxu1 %v6581_v17 }
 0x439   : > { %5862 = vmatpush3.bf16.msra.mxu1 %v6582_v45 }
 0x43a   : > { %5863 = vmatprep.subr.bf16.mxu1 %v6583_v35 }
 0x43d   : > { %5864 = vmatpush3.bf16.msra.mxu1 %v6584_v48 }
 0x43e   : > { %5865 = vmatprep.subr.bf16.mxu1 %v6585_v49 }
 0x441   : > { %5866 = vmatpush3.bf16.msra.mxu1 %v6586_v56 }
 0x47d   : > { %v4205_v26 = vpop.f32.mrb[0].mxu0 }
 0x47e   : > { %v5878_v27 = vadd.f32 %v4205_v26, %v4083_v25  ;;  %v4207_v55 = vpop.f32.mrb[1].mxu0 }
 0x47f   : > { %v5880_v28 = vadd.f32 %v4207_v55, %v4085_v54  ;;  %v4209_v29 = vpop.f32.mrb[2].mxu0 }
 0x480   : > { %v4376_v32 = vmax.f32 %v5878_v27, 0.0  ;;  %v4210_v33 = vpop.f32.mrb[3].mxu0 }
 0x481   : > { %v4377_v20 = vmax.f32 %v5880_v28, 0.0 }
 0x482   : > { %v4380_v34 = vpack.c.bf16 %v4376_v32, %v4376_v32 }
 0x483   : > { %v4381_v52 = vpack.c.bf16 %v4377_v20, %v4377_v20  ;;  %v6587_v20 = vld [vmem:[#allocation14 + $0x70] sm:$0xff]  }
 0x484   : > { %5867 = vmatprep.subr.bf16.mxu1 %v6587_v20 }
 0x485   : > { %4812 = vmatprep.mubr.bf16.mxu0 %v4381_v52  ;;  %v6588_v52 = vld [vmem:[#allocation14 + $0x30] sm:$0xff]  }
 0x486   : > { %4813 = vmatmul.mubr.bf16.vlgmr.msra.gmra.mrb[4].mxu0 %v4380_v34  ;;  %5868 = vmatpush3.bf16.msra.mxu1 %v6588_v52 }
 0x487   : > { %4822 = vmatpush1.bf16.msra.mxu0 %v6527_v11  ;;  %5869 = vmatprep.subr.bf16.mxu1 %v6589_v24  ;;  %v4457_v11 = vrot.slane %v4448_v5, %v7678_v4 }
 0x488   : > { %4823 = vmatprep.subr.bf16.mxu0 %v6532_v36 }
 0x48a   : > { %5870 = vmatpush3.bf16.msra.mxu1 %v6590_v63 }
 0x48b   : > { %4824 = vmatpush1.bf16.msra.mxu0 %v6530_v38 }
 0x48c   : > { %4825 = vmatprep.subr.bf16.mxu0 %v6535_v39 }
 0x48f   : > { %4826 = vmatpush1.bf16.msra.mxu0 %v6533_v42 }
 0x490   : > { %4827 = vmatprep.subr.bf16.mxu0 %v6538_v43 }
 0x493   : > { %4828 = vmatpush1.bf16.msra.mxu0 %v6536_v44 }
 0x494   : > { %4829 = vmatprep.subr.bf16.mxu0 %v6541_v21 }
 0x497   : > { %4830 = vmatpush1.bf16.msra.mxu0 %v6539_v31 }
 0x498   : > { %4831 = vmatprep.subr.bf16.mxu0 %v6544_v46 }
 0x49b   : > { %4832 = vmatpush1.bf16.msra.mxu0 %v6542_v50 }
 0x49c   : > { %4833 = vmatprep.subr.bf16.mxu0 %v6547_v51 }
 0x49f   : > { %4834 = vmatpush1.bf16.msra.mxu0 %v6545_v57 }
 0x4a0   : > { %4835 = vmatprep.subr.bf16.mxu0 %v6550_v58 }
 0x4a3   : > { %4836 = vmatpush1.bf16.msra.mxu0 %v6548_v61 }
 0x4a4   : > { %4837 = vmatprep.subr.bf16.mxu0 %v6553_v59 }
 0x4a7   : > { %4838 = vmatpush1.bf16.msra.mxu0 %v6551_v62 }
 0x4a8   : > { %4839 = vmatprep.subr.bf16.mxu0 %v6556_v60 }
 0x4ab   : > { %4840 = vmatpush1.bf16.msra.mxu0 %v6554_v0 }
 0x4ac   : > { %4841 = vmatprep.subr.bf16.mxu0 %v6559_v1 }
 0x4af   : > { %4842 = vmatpush1.bf16.msra.mxu0 %v6557_v2 }
 0x4b0   : > { %4843 = vmatprep.subr.bf16.mxu0 %v6562_v3 }
 0x4b3   : > { %4844 = vmatpush1.bf16.msra.mxu0 %v6560_v6 }
 0x4b4   : > { %4845 = vmatprep.subr.bf16.mxu0 %v6565_v7 }
 0x4b7   : > { %4846 = vmatpush1.bf16.msra.mxu0 %v6563_v8 }
 0x4b8   : > { %4847 = vmatprep.subr.bf16.mxu0 %v6568_v9 }
 0x4bb   : > { %4848 = vmatpush1.bf16.msra.mxu0 %v6566_v10 }
 0x4bc   : > { %4849 = vmatprep.subr.bf16.mxu0 %v6571_v12 }
 0x4bf   : > { %4850 = vmatpush1.bf16.msra.mxu0 %v6569_v13 }
 0x4c0   : > { %4851 = vmatprep.subr.bf16.mxu0 %v6574_v14 }
 0x4c3   : > { %4852 = vmatpush1.bf16.msra.mxu0 %v6572_v15 }
 0x4ff   : > { %v4369_v22 = vpop.f32.mrb[4].mxu1 }
 0x500   : > { %v5881_v25 = vadd.f32 %v4369_v22, %v2759_v16  ;;  %v4371_v54 = vpop.f32.mrb[5].mxu1 }
 0x501   : > { %v5882_v26 = vadd.f32 %v4371_v54, %v2763_v18  ;;  %v4373_v27 = vpop.f32.mrb[6].mxu1 }
 0x502   : > { %v4378_v55 = vmax.f32 %v5881_v25, 0.0  ;;  %v4374_v28 = vpop.f32.mrb[7].mxu1 }
 0x503   : > { %v4379_v29 = vmax.f32 %v5882_v26, 0.0 }
 0x504   : > { %v4382_v33 = vpack.c.bf16 %v4378_v55, %v4378_v55 }
 0x505   : > { %v4383_v32 = vpack.c.bf16 %v4379_v29, %v4379_v29 }
 0x507   : > { %4853 = vmatprep.mubr.bf16.mxu0 %v4383_v32 }
 0x508   : > { %4854 = vmatmul.mubr.bf16.vlgmr.msra.gmra.mrb[4].mxu0 %v4382_v33 }
 0x5db   : > { %v4855_v34 = vpop.f32.mrb[4].mxu0 }
 0x5dc   : > { %v5883_v36 = vadd.f32 %v4855_v34, %v4453_v19  ;;  %v4857_v47 = vpop.f32.mrb[5].mxu0 }
 0x5dd   : > { %v5884_v30 = vadd.f32 %v4857_v47, %v4457_v11  ;;  %v4859_v37 = vpop.f32.mrb[6].mxu0 }
 0x5de   : > { %v4862_v38 = vmax.f32 %v5883_v36, 0.0  ;;  %v4860_v39 = vpop.f32.mrb[7].mxu0 }
 0x5df   : > { %v4863_v40 = vmax.f32 %v5884_v30, 0.0 }
 0x5e0   : > { %v4864_v42 = vpack.c.bf16 %v4862_v38, %v4862_v38 }
 0x5e1   : > { %v4865_v41 = vpack.c.bf16 %v4863_v40, %v4863_v40 }
 0x5e3   : > { %5033 = vmatprep.mubr.bf16.mxu1 %v4865_v41 }
 0x5e4   : > { %5034 = vmatmul.mubr.bf16.vlgmr.msra.gmra.mrb[8].mxu1 %v4864_v42 }
 0x6b7   : > { %v5871_v43 = vpop.f32.mrb[8].mxu1 }
 0x6b8   : > { %v5872_v17 = vpop.f32.mrb[9].mxu1 }
 0x6b9   : > { %v5873_v44 = vadd.f32 %v5872_v17, %v5871_v43  ;;  %v5874_v23 = vpop.f32.mrb[10].mxu1 }
 0x6ba   : > { %v5875_v21 = vpop.f32.mrb[11].mxu1 }
 0x6bb   : > { %v5036_v4 = vadd.f32 %v5873_v44, %v5832_v53 }
 0x6bd   : > { %5041 = vst [vmem:[%s483_s23] sm:$0xff] %v5036_v4 }
 0x6be PF: > { %s7881_s3 = sld [smem:[#allocation25_spill]]  ;;  %s7882_s15 = sld [smem:[#allocation36_spill]] }
 0x6bf   : > { %s5056_s2 = sshll.u32 %s483_s23, 4  ;;  %s5043_s28 = scalar_lea.sflag [#allocation5], %s481_s6  ;;  %s5057_s2 = int_to_ptr.vmem [resolvable:$true] %s5056_s2 }
 0x6c0   : > { %s6817_s1 = scalar_lea.vmem %s5057_s2, 128  ;;  %p7884_p7 = scmp.ne.s32.totalorder %s7870_s20, 0 }
 0x6c1   : > { %p6818_p2 = scmp.ne.s32.totalorder %s5057_s2, %s6817_s1  ;;  %s6974_s16 = smov [#allocation17]  }
 0x6c2   : > { %s6821_s7 = sshll.u32 %s6974_s16, 4  ;;  %s6822_s7 = int_to_ptr.vmem [resolvable:$false] %s6821_s7 }
 0x6c3   : > { %p6819_p6 = pnand %p6818_p2, %p7884_p7  ;;  %s6823_s8 = scalar_lea.vmem %s6822_s7, 256 }
 0x6c4   : > { %s5850_s5 = sshll.u32 %s7881_s3, 7  ;;  %s7883_s22 = smov %s7882_s15 }
 0x6c5   : > { %s7762_s21 = scalar_lea.hbm %s7882_s15, %s5850_s5  ;;  %p6820_p1 = pneg %p6819_p6 }
 0x6c6   : > { %p6824_p10 = scmp.lt.s32.totalorder %s5057_s2, %s6822_s7  ;;  %p6825_p5 = scmp.lt.s32.totalorder %s6823_s8, %s6817_s1 }
 0x6c8   : > { %p6826_p13 = por %p6825_p5, %p6824_p10 }
 0x6ca   : > { %p6827_p0 = pnand %p6826_p13, %p6820_p1 }
 0x6cc   : > { %6830 = shalt.err (!%p6827_p0)
}
 0x6cd   : > { %s6831_s6 = scalar_lea.hbm %s7762_s21, 128  ;;  %s6835_s3 = scalar_lea.hbm %s7883_s22, 256 }
 0x6ce   : > { %p6832_p3 = scmp.ne.s32.totalorder %s7762_s21, %s6831_s6  ;;  %p6836_p8 = scmp.lt.u32.totalorder %s7762_s21, %s7883_s22 }
 0x6cf   : > { %p6837_p9 = scmp.lt.u32.totalorder %s6835_s3, %s6831_s6  ;;  %p6839_p2 = scmp.lt.u32.totalorder %s6831_s6, %s7762_s21 }
 0x6d0   : > { %p6833_p4 = pnand %p6832_p3, %p7884_p7 }
 0x6d1   : > { %p6838_p12 = por %p6837_p9, %p6836_p8 }
 0x6d2   : > { %p6834_p11 = pneg %p6833_p4 }
 0x6d3   : > { %p6840_p6 = por %p6839_p2, %p6838_p12 }
 0x6d5   : > { %p6841_p1 = pnand %p6840_p6, %p6834_p11 }
 0x6d7   : > { %6844 = shalt.err (!%p6841_p1)
}
 0x6d8   : > { %5939 = dma.vmem_to_hbm [thread:$0]  (%p7884_p7), %s5057_s2, 128, %s7762_s21, %s5043_s28  }
 0x6d9 PF: > { %p5986_p10 = scmp.ge.s32.totalorder %s6955_s19, 2  ;;  %s5068_s8 = sand.u32 1, %s6915_s30  }
 0x6da   : > { %p7885_p5 = scmp.ne.s32.totalorder %s7871_s24, 0  ;;  %s5069_s26 = scalar_lea.sflag [#allocation5], %s5068_s8 }
 0x6dc   : > { %p5968_p13 = pnand %p5986_p10, %p7885_p5 }
 0x6de   : > { %6910 = dma.done.wait (!%p5968_p13), %s5069_s26, 128  }
 0x6df   : > { %6912 = vsyncadd (!%p5968_p13), %s5069_s26, 4294967168  ;;  %s29_s19 = sadd.s32 1, %s6955_s19   ;;  %s7886_s30 = smov %s6919_s10 }
 0x6e0   : > { %p26_p0 = scmp.ge.s32.totalorder %s29_s19, 6   ;;  %s7887_s10 = smov %s6923_s11 }
 0x6e1   : > { %s7888_s11 = smov %s7286_s12  ;;  %s7889_s12 = smov %s6931_s13 }
 0x6e2   : > { %s7890_s13 = smov %s6935_s14  ;;  %s7891_s14 = smov %s7269_s9 }
 0x6e3   : > { %s7892_s15 = smov %s6947_s17  ;;  %s7893_s16 = smov %s6951_s18 }
 0x6e4   : > { %s7894_s17 = smov %s7897_s4  ;;  %s7895_s18 = smov %s7901_s27 }
 0x6e5   :  { %28 = sbr.rel (!%p26_p0) target bundleno = 24 (0x18), region = 140 }
 0x6ec   :  { %5074 = vsyncpa [#allocation4], 1 }
 0x6ed   :  { %5076 = vsyncpa [#allocation4 + $0x1], 1 }
 0x6ee   :  { %5077 = vsyncpa [#allocation7], 1 }
 0x6ef   :  { %5078 = vsyncpa [#allocation10], 1 }
 0x6f0   :  { %5079 = vsyncpa [#allocation13], 1 }
 0x6f1   :  { %5080 = vsyncpa [#allocation16], 1 }
 0x6f2   :  { %5081 = vsyncpa [#allocation5], 1 }
 0x6f3   :  { %5083 = vsyncpa [#allocation5 + $0x1], 1 }

</bundles_post_ra>
